<compile_context>
chip_gen: v5e
topology: v5e:2x2
jax: 0.10.0
libtpu: 0.0.40
codegen_flags: <defaults>
</compile_context>

<pallas_src>
import functools

import jax
import jax.numpy as jnp
from jax.experimental import pallas as pl
from jax.experimental.pallas import tpu as pltpu


# Ample at these toy sizes; re-derive for large shapes (v7x has 64 MiB total VMEM).
_VMEM_LIMIT = 32 * 1024 * 1024


# ---------------------------------------------------------------------------
# GRU gate math (PyTorch order r, z, n).  `gi` already holds x@W_ih + b_ih,
# `gh` holds h@W_hh + b_hh.  `gate` is the per-gate width: 2H for the fused
# bidirectional encoder state [h_fwd | h_bwd], H2 for the decoder.
# ---------------------------------------------------------------------------
def _gru_gates(gi, gh, h, gate):
    r = jax.nn.sigmoid(gi[:, :gate] + gh[:, :gate])
    z = jax.nn.sigmoid(gi[:, gate:2 * gate] + gh[:, gate:2 * gate])
    n = jnp.tanh(gi[:, 2 * gate:] + r * gh[:, 2 * gate:])
    return (1.0 - z) * n + z * h


# ---------------------------------------------------------------------------
# Fused bidirectional GRU encoder: input projection + both directions in ONE
# kernel.  Gate layout is per-gate interleaved [r_f r_b | z_f z_b | n_f n_b]
# (each block 2H wide) so the fwd|bwd state [h_f | h_b] is updated with a single
# block-diagonal (2H, 6H) matmul per timestep and a single elementwise pass.
# ---------------------------------------------------------------------------
def _bigru_kernel(x_ref, wih_ref, bih_ref, whh_ref, bhh_ref,
                  out_ref, hid_ref, *, hidden_dim, seq_len, batch):
    H, S, B = hidden_dim, seq_len, batch
    G = 2 * H                                    # fused fwd|bwd per-gate width
    E = x_ref.shape[-1]

    # (1) Fused input projection for BOTH directions: one bf16 GEMM, f32 accum.
    x = x_ref[...].reshape(S * B, E)
    gi = (jnp.dot(x, wih_ref[...], preferred_element_type=jnp.float32)
          + bih_ref[...]).reshape(S, B, 3 * G)

    # Within every per-gate 2H block, lanes [H:2H) belong to the backward
    # direction, which reads its input gates time-reversed.
    bwd_gi = (jax.lax.broadcasted_iota(jnp.int32, (B, 3 * G), 1) % G) >= H
    bwd_h = jax.lax.broadcasted_iota(jnp.int32, (B, G), 1) >= H

    # (2) Recurrence: ONE (B,2H)x(2H,6H) MXU push per step (block-diagonal W_hh).
    h = jnp.zeros((B, G), jnp.float32)           # [h_fwd | h_bwd]
    states = []
    # Static unroll (small fixed S).
    # TODO(synk): switch to lax.fori_loop + time-chunked BlockSpec for long sequences.
    for t in range(S):
        gi_t = jnp.where(bwd_gi, gi[S - 1 - t], gi[t])
        gh = (jnp.dot(h, whh_ref[...], preferred_element_type=jnp.float32)
              + bhh_ref[...])
        h = _gru_gates(gi_t, gh, h, G)
        states.append(h)

    # Final hidden [h_fwd(T-1) | h_bwd(0)] == torch.cat([hid[0], hid[1]], dim=1).
    hid_ref[...] = h.astype(hid_ref.dtype)

    # (3) enc_out[t] = [h_fwd(t) | h_bwd(t)]: backward lanes come from the mirrored
    #     step.  Buffered states are stored once as a whole (B, S, 2H) slab in the
    #     batch-major layout the attention kernel consumes (no wrapper transpose).
    out_steps = [jnp.where(bwd_h, states[S - 1 - t], states[t]) for t in range(S)]
    out_ref[...] = jnp.stack(out_steps, axis=1).astype(out_ref.dtype)


def bigru_pallas(x_tm, wih, bih, whh_bd, bhh):
    """x_tm: (S, B, E) time-major bf16 embeddings.  Returns
    (enc_out: (B, S, 2H) f32, hid: (B, 2H) f32)."""
    S, B, _ = x_tm.shape
    G = whh_bd.shape[0]                          # 2H
    return pl.pallas_call(
        functools.partial(_bigru_kernel, hidden_dim=G // 2, seq_len=S, batch=B),
        out_shape=(jax.ShapeDtypeStruct((B, S, G), jnp.float32),
                   jax.ShapeDtypeStruct((B, G), jnp.float32)),
        compiler_params=pltpu.CompilerParams(vmem_limit_bytes=_VMEM_LIMIT),
    )(x_tm, wih, bih, whh_bd, bhh)


# ---------------------------------------------------------------------------
# Unidirectional decoder GRU: input projection + recurrence in ONE kernel.
# ---------------------------------------------------------------------------
def _gru_kernel(x_ref, h0_ref, wih_ref, bih_ref, whh_ref, bhh_ref,
                out_ref, hid_ref, *, hidden_dim, seq_len, batch):
    Hd, S, B = hidden_dim, seq_len, batch
    E = x_ref.shape[-1]

    x = x_ref[...].reshape(S * B, E)
    gi = (jnp.dot(x, wih_ref[...], preferred_element_type=jnp.float32)
          + bih_ref[...]).reshape(S, B, 3 * Hd)

    h = h0_ref[...].astype(jnp.float32)
    states = []
    for t in range(S):                           # static unroll (small fixed S)
        gh = (jnp.dot(h, whh_ref[...], preferred_element_type=jnp.float32)
              + bhh_ref[...])
        h = _gru_gates(gi[t], gh, h, Hd)
        states.append(h)

    hid_ref[...] = h.astype(hid_ref.dtype)
    out_ref[...] = jnp.stack(states, axis=1).astype(out_ref.dtype)   # (B, S, Hd)


def gru_pallas(x_tm, h0, wih, bih, whh, bhh):
    """x_tm: (S, B, E) bf16; h0: (B, Hd) f32.  Returns
    (dec_out: (B, S, Hd) f32, hid: (B, Hd) f32)."""
    S, B, _ = x_tm.shape
    Hd = whh.shape[0]
    return pl.pallas_call(
        functools.partial(_gru_kernel, hidden_dim=Hd, seq_len=S, batch=B),
        out_shape=(jax.ShapeDtypeStruct((B, S, Hd), jnp.float32),
                   jax.ShapeDtypeStruct((B, Hd), jnp.float32)),
        compiler_params=pltpu.CompilerParams(vmem_limit_bytes=_VMEM_LIMIT),
    )(x_tm, h0, wih, bih, whh, bhh)


# ---------------------------------------------------------------------------
# Attention + tanh + attfc + fc, gridded over batch (parallel axis for v7x's
# two TensorCores).  attfc weight is pre-split so the (S_dec, 4H) concat is
# never materialized: attfc(tanh(cat(a_h, dec))) == tanh(a_h)@Wa + tanh(dec)@Wd + b.
# The fc output is padded to a 128-lane multiple (lane-dense store); the wrapper
# slices the real vocab back out.
# ---------------------------------------------------------------------------
def _attn_head_kernel(enc_ref, dec_ref, wa_ref, wd_ref, ab_ref, fcw_ref, fcb_ref,
                      out_ref):
    enc = enc_ref[...].astype(jnp.float32)       # (S_enc, 2H)
    dec = dec_ref[...].astype(jnp.float32)       # (S_dec, 2H)

    # scores = dec @ enc^T ; softmax over S_enc ; a_h = p @ enc
    s = jax.lax.dot_general(dec, enc, (((1,), (1,)), ((), ())),
                            preferred_element_type=jnp.float32)   # (S_dec, S_enc)
    s = s - jnp.max(s, axis=-1, keepdims=True)
    p = jnp.exp(s)
    p = p * pl.reciprocal(jnp.sum(p, axis=-1, keepdims=True), approx=True)
    a_h = jnp.dot(p, enc, preferred_element_type=jnp.float32)     # (S_dec, 2H)

    # attfc on the implicit concat, then fc (bf16 weights, f32 accumulation).
    h1 = (jnp.dot(jnp.tanh(a_h).astype(wa_ref.dtype), wa_ref[...],
                  preferred_element_type=jnp.float32)
          + jnp.dot(jnp.tanh(dec).astype(wd_ref.dtype), wd_ref[...],
                    preferred_element_type=jnp.float32)
          + ab_ref[...])                                          # (S_dec, 2H)
    out_ref[...] = (jnp.dot(h1.astype(fcw_ref.dtype), fcw_ref[...],
                            preferred_element_type=jnp.float32)
                    + fcb_ref[...]).astype(out_ref.dtype)         # (S_dec, V_pad)


def attn_head_pallas(enc_out, dec_out, wa, wd, ab, fcw_pad, fcb_pad):
    """enc_out: (B, S_enc, 2H), dec_out: (B, S_dec, 2H) -> (B, S_dec, V_pad)."""
    B, S_dec, H2 = dec_out.shape
    S_enc = enc_out.shape[1]
    V_pad = fcw_pad.shape[1]
    return pl.pallas_call(
        _attn_head_kernel,
        grid=(B,),
        in_specs=[
            pl.BlockSpec((None, S_enc, H2), lambda b: (b, 0, 0)),
            pl.BlockSpec((None, S_dec, H2), lambda b: (b, 0, 0)),
            pl.BlockSpec((H2, H2), lambda b: (0, 0)),
            pl.BlockSpec((H2, H2), lambda b: (0, 0)),
            pl.BlockSpec((1, H2), lambda b: (0, 0)),
            pl.BlockSpec((H2, V_pad), lambda b: (0, 0)),
            pl.BlockSpec((1, V_pad), lambda b: (0, 0)),
        ],
        out_specs=pl.BlockSpec((None, S_dec, V_pad), lambda b: (b, 0, 0)),
        out_shape=jax.ShapeDtypeStruct((B, S_dec, V_pad), jnp.float32),
        compiler_params=pltpu.CompilerParams(
            dimension_semantics=("parallel",),
            vmem_limit_bytes=_VMEM_LIMIT),
    )(enc_out, dec_out, wa, wd, ab, fcw_pad, fcb_pad)


# ---------------------------------------------------------------------------
# Parameter construction (deterministic, PyTorch-equivalent layouts, (in, out)
# orientation) and one-time conversion into kernel-friendly layouts.
# ---------------------------------------------------------------------------
def init_params(key, enc_vocab, dec_vocab, emb_dim, hid_dim):
    def u(k, shape, scale=0.1):
        return jax.random.uniform(k, shape, jnp.float32, -scale, scale)

    ks = jax.random.split(key, 20)
    H, E = hid_dim, emb_dim
    H2 = 2 * hid_dim
    p = {}
    p["enc_emb"] = u(ks[0], (enc_vocab, E))
    p["dec_emb"] = u(ks[1], (dec_vocab, E))
    # encoder bidirectional GRU (input E, hidden H), forward / backward dirs
    p["enc_wih_f"] = u(ks[2], (E, 3 * H));  p["enc_whh_f"] = u(ks[3], (H, 3 * H))
    p["enc_bih_f"] = u(ks[4], (1, 3 * H));  p["enc_bhh_f"] = u(ks[5], (1, 3 * H))
    p["enc_wih_b"] = u(ks[6], (E, 3 * H));  p["enc_whh_b"] = u(ks[7], (H, 3 * H))
    p["enc_bih_b"] = u(ks[8], (1, 3 * H));  p["enc_bhh_b"] = u(ks[9], (1, 3 * H))
    # decoder GRU (input E, hidden 2H)  [mode='concat']
    p["dec_wih"] = u(ks[10], (E, 3 * H2)); p["dec_whh"] = u(ks[11], (H2, 3 * H2))
    p["dec_bih"] = u(ks[12], (1, 3 * H2)); p["dec_bhh"] = u(ks[13], (1, 3 * H2))
    # attfc: Linear(4H -> 2H);  fc: Linear(2H -> dec_vocab)
    p["attfc_w"] = u(ks[14], (4 * hid_dim, H2)); p["attfc_b"] = u(ks[15], (1, H2))
    p["fc_w"] = u(ks[16], (H2, dec_vocab));      p["fc_b"] = u(ks[17], (1, dec_vocab))
    return p


def prepare_params(p, hid_dim, dec_vocab):
    """One-time conversion to kernel layouts: gate-interleaved encoder weights,
    block-diagonal W_hh, bf16 GEMM operands, 128-padded fc."""
    H = hid_dim
    G = 2 * H
    V_pad = ((dec_vocab + 127) // 128) * 128

    def interleave(wf, wb):
        # (..., 3H)+(..., 3H) with gate blocks [r|z|n] -> (..., 6H) laid out
        # [r_f r_b | z_f z_b | n_f n_b].
        parts = []
        for g in range(3):
            parts.append(wf[..., g * H:(g + 1) * H])
            parts.append(wb[..., g * H:(g + 1) * H])
        return jnp.concatenate(parts, axis=-1)

    whh_bd = jnp.zeros((G, 3 * G), jnp.float32)
    for g in range(3):
        whh_bd = whh_bd.at[:H, g * G:g * G + H].set(p["enc_whh_f"][:, g * H:(g + 1) * H])
        whh_bd = whh_bd.at[H:, g * G + H:(g + 1) * G].set(p["enc_whh_b"][:, g * H:(g + 1) * H])

    kp = {
        "enc_emb": p["enc_emb"].astype(jnp.bfloat16),
        "dec_emb": p["dec_emb"].astype(jnp.bfloat16),
        "enc_wih": interleave(p["enc_wih_f"], p["enc_wih_b"]).astype(jnp.bfloat16),
        "enc_bih": interleave(p["enc_bih_f"], p["enc_bih_b"]),
        "enc_whh": whh_bd,
        "enc_bhh": interleave(p["enc_bhh_f"], p["enc_bhh_b"]),
        "dec_wih": p["dec_wih"].astype(jnp.bfloat16),
        "dec_bih": p["dec_bih"],
        "dec_whh": p["dec_whh"],
        "dec_bhh": p["dec_bhh"],
        "attfc_wa": p["attfc_w"][:G, :].astype(jnp.bfloat16),   # rows acting on a_h
        "attfc_wd": p["attfc_w"][G:, :].astype(jnp.bfloat16),   # rows acting on dec_out
        "attfc_b": p["attfc_b"],
        "fc_w": jnp.zeros((G, V_pad), jnp.bfloat16).at[:, :dec_vocab].set(
            p["fc_w"].astype(jnp.bfloat16)),
        "fc_b": jnp.zeros((1, V_pad), jnp.float32).at[:, :dec_vocab].set(p["fc_b"]),
    }
    return kp


# ---------------------------------------------------------------------------
# Full Seq2seq forward (inference).
# ---------------------------------------------------------------------------
def seq2seq_forward(params, enc_token_ids, dec_token_ids, *, dec_vocab):
    # TODO(synk): embedding gather has no clean Pallas equivalent at these sizes;
    # left to XLA.  Gathering with transposed ids yields time-major activations
    # directly (no activation transpose).  nn.Dropout is identity at inference.
    x_e = jnp.take(params["enc_emb"], enc_token_ids.T, axis=0)   # (S_enc, B, E) bf16
    x_d = jnp.take(params["dec_emb"], dec_token_ids.T, axis=0)   # (S_dec, B, E) bf16

    # ---- Encoder (fused input projection + bidirectional recurrence) ----
    enc_out, hid = bigru_pallas(x_e, params["enc_wih"], params["enc_bih"],
                                params["enc_whh"], params["enc_bhh"])
    # enc_out: (B, S_enc, 2H);  hid = cat(h_fwd, h_bwd): (B, 2H)

    # ---- Decoder GRU (hidden 2H, mode='concat') ----
    dec_out, dec_hid = gru_pallas(x_d, hid, params["dec_wih"], params["dec_bih"],
                                  params["dec_whh"], params["dec_bhh"])
    # dec_out: (B, S_dec, 2H)

    # ---- Attention + attfc + fc ----
    logits_pad = attn_head_pallas(enc_out, dec_out, params["attfc_wa"],
                                  params["attfc_wd"], params["attfc_b"],
                                  params["fc_w"], params["fc_b"])
    out = logits_pad[..., :dec_vocab]                            # (B, S_dec, V)
    return out, dec_hid[None]                                    # hid: (1, B, 2H)


if __name__ == "__main__":
    ENC_VOCAB, DEC_VOCAB = 50, 60
    EMB, HID = 32, 32
    B, S_ENC, S_DEC = 2, 10, 8

    key = jax.random.PRNGKey(0)
    k_p, k_e, k_d = jax.random.split(key, 3)
    raw_params = init_params(k_p, ENC_VOCAB, DEC_VOCAB, EMB, HID)
    params = prepare_params(raw_params, HID, DEC_VOCAB)

    enc_ids = jax.random.randint(k_e, (B, S_ENC), 0, ENC_VOCAB, dtype=jnp.int32)
    dec_ids = jax.random.randint(k_d, (B, S_DEC), 0, DEC_VOCAB, dtype=jnp.int32)

    fwd = jax.jit(functools.partial(seq2seq_forward, dec_vocab=DEC_VOCAB))
    out, hid = fwd(params, enc_ids, dec_ids)
    jax.block_until_ready((out, hid))

    assert out.shape == (B, S_DEC, DEC_VOCAB), out.shape
    assert hid.shape == (1, B, 2 * HID), hid.shape
    assert bool(jnp.all(jnp.isfinite(out))) and bool(jnp.all(jnp.isfinite(hid)))
    print("KERNEL_OK")
</pallas_src>

<mosaic_0001>
module attributes {stable_mosaic.version = 11 : i64} {
  func.func @_bigru_kernel(%arg0: memref<10x2x32xbf16, #tpu.memory_space<vmem>>, %arg1: memref<32x192xbf16, #tpu.memory_space<vmem>>, %arg2: memref<1x192xf32, #tpu.memory_space<vmem>>, %arg3: memref<64x192xf32, #tpu.memory_space<vmem>>, %arg4: memref<1x192xf32, #tpu.memory_space<vmem>>, %arg5: memref<2x10x64xf32, #tpu.memory_space<vmem>>, %arg6: memref<2x64xf32, #tpu.memory_space<vmem>>) attributes {dimension_semantics = [], scalar_prefetch = 0 : i64, scratch_operands = 0 : i64, tpu.core_type = #tpu.core_type<tc>} {
    %c0 = arith.constant 0 : index
    %c0_0 = arith.constant 0 : index
    %c0_1 = arith.constant 0 : index
    %0 = vector.load %arg0[%c0, %c0_0, %c0_1] : memref<10x2x32xbf16, #tpu.memory_space<vmem>>, vector<10x2x32xbf16>
    %1 = vector.shape_cast %0 : vector<10x2x32xbf16> to vector<20x32xbf16>
    %c0_2 = arith.constant 0 : index
    %c0_3 = arith.constant 0 : index
    %2 = vector.load %arg1[%c0_2, %c0_3] : memref<32x192xbf16, #tpu.memory_space<vmem>>, vector<32x192xbf16>
    %cst = arith.constant dense<0.000000e+00> : vector<20x192xf32>
    %3 = tpu.matmul %1, %2, %cst {dimension_numbers = #tpu.dot_dimension_numbers<[1], [0], [0], [1], [0, 0, 1, 1], [], []>} : vector<20x32xbf16>, vector<32x192xbf16>, vector<20x192xf32> -> vector<20x192xf32>
    %c0_4 = arith.constant 0 : index
    %c0_5 = arith.constant 0 : index
    %4 = vector.load %arg2[%c0_4, %c0_5] : memref<1x192xf32, #tpu.memory_space<vmem>>, vector<1x192xf32>
    %5 = vector.broadcast %4 : vector<1x192xf32> to vector<20x192xf32>
    %6 = arith.addf %3, %5 : vector<20x192xf32>
    %7 = vector.shape_cast %6 : vector<20x192xf32> to vector<10x2x192xf32>
    %8 = tpu.iota {dimensions = array<i32: 1>} : vector<2x192xi32>
    %c64_i32 = arith.constant 64 : i32
    %c0_i32 = arith.constant 0 : i32
    %9 = arith.cmpi eq, %c64_i32, %c0_i32 : i32
    %c1_i32 = arith.constant 1 : i32
    %10 = arith.select %9, %c1_i32, %c64_i32 : i32
    %11 = vector.broadcast %10 : i32 to vector<2x192xi32>
    %12 = arith.remsi %8, %11 : vector<2x192xi32>
    %c0_i32_6 = arith.constant 0 : i32
    %13 = vector.broadcast %c0_i32_6 : i32 to vector<2x192xi32>
    %14 = arith.cmpi ne, %12, %13 : vector<2x192xi32>
    %c0_i32_7 = arith.constant 0 : i32
    %15 = vector.broadcast %c0_i32_7 : i32 to vector<2x192xi32>
    %16 = arith.cmpi slt, %12, %15 : vector<2x192xi32>
    %c0_i32_8 = arith.constant 0 : i32
    %17 = arith.cmpi slt, %10, %c0_i32_8 : i32
    %18 = vector.broadcast %17 : i1 to vector<2x192xi1>
    %19 = vector.broadcast %18 : vector<2x192xi1> to vector<2x192xi1>
    %20 = arith.xori %16, %19 : vector<2x192xi1>
    %21 = arith.andi %20, %14 : vector<2x192xi1>
    %22 = vector.broadcast %10 : i32 to vector<2x192xi32>
    %23 = arith.addi %12, %22 : vector<2x192xi32>
    %24 = arith.select %21, %23, %12 : vector<2x192xi1>, vector<2x192xi32>
    %c32_i32 = arith.constant 32 : i32
    %25 = vector.broadcast %c32_i32 : i32 to vector<2x192xi32>
    %26 = arith.cmpi sge, %24, %25 : vector<2x192xi32>
    %27 = tpu.iota {dimensions = array<i32: 1>} : vector<2x64xi32>
    %c32_i32_9 = arith.constant 32 : i32
    %28 = vector.broadcast %c32_i32_9 : i32 to vector<2x64xi32>
    %29 = arith.cmpi sge, %27, %28 : vector<2x64xi32>
    %cst_10 = arith.constant 0.000000e+00 : f32
    %30 = vector.broadcast %cst_10 : f32 to vector<2x64xf32>
    %31 = vector.extract_strided_slice %7 {offsets = [9, 0, 0], sizes = [1, 2, 192], strides = [1, 1, 1]} : vector<10x2x192xf32> to vector<1x2x192xf32>
    %32 = vector.shape_cast %31 : vector<1x2x192xf32> to vector<2x192xf32>
    %33 = vector.extract_strided_slice %7 {offsets = [0, 0, 0], sizes = [1, 2, 192], strides = [1, 1, 1]} : vector<10x2x192xf32> to vector<1x2x192xf32>
    %34 = vector.shape_cast %33 : vector<1x2x192xf32> to vector<2x192xf32>
    %35 = arith.select %26, %32, %34 : vector<2x192xi1>, vector<2x192xf32>
    %c0_11 = arith.constant 0 : index
    %c0_12 = arith.constant 0 : index
    %36 = vector.load %arg3[%c0_11, %c0_12] : memref<64x192xf32, #tpu.memory_space<vmem>>, vector<64x192xf32>
    %cst_13 = arith.constant dense<0.000000e+00> : vector<2x192xf32>
    %37 = tpu.matmul %30, %36, %cst_13 {dimension_numbers = #tpu.dot_dimension_numbers<[1], [0], [0], [1], [0, 0, 1, 1], [], []>} : vector<2x64xf32>, vector<64x192xf32>, vector<2x192xf32> -> vector<2x192xf32>
    %c0_14 = arith.constant 0 : index
    %c0_15 = arith.constant 0 : index
    %38 = vector.load %arg4[%c0_14, %c0_15] : memref<1x192xf32, #tpu.memory_space<vmem>>, vector<1x192xf32>
    %39 = vector.broadcast %38 : vector<1x192xf32> to vector<2x192xf32>
    %40 = arith.addf %37, %39 : vector<2x192xf32>
    %41 = vector.extract_strided_slice %35 {offsets = [0, 0], sizes = [2, 64], strides = [1, 1]} : vector<2x192xf32> to vector<2x64xf32>
    %42 = vector.extract_strided_slice %40 {offsets = [0, 0], sizes = [2, 64], strides = [1, 1]} : vector<2x192xf32> to vector<2x64xf32>
    %43 = arith.addf %41, %42 : vector<2x64xf32>
    %44 = arith.negf %43 : vector<2x64xf32>
    %45 = math.exp %44 : vector<2x64xf32>
    %cst_16 = arith.constant 1.000000e+00 : f32
    %46 = vector.broadcast %cst_16 : f32 to vector<2x64xf32>
    %47 = arith.addf %46, %45 : vector<2x64xf32>
    %48 = arith.divf %46, %47 : vector<2x64xf32>
    %49 = vector.extract_strided_slice %35 {offsets = [0, 64], sizes = [2, 64], strides = [1, 1]} : vector<2x192xf32> to vector<2x64xf32>
    %50 = vector.extract_strided_slice %40 {offsets = [0, 64], sizes = [2, 64], strides = [1, 1]} : vector<2x192xf32> to vector<2x64xf32>
    %51 = arith.addf %49, %50 : vector<2x64xf32>
    %52 = arith.negf %51 : vector<2x64xf32>
    %53 = math.exp %52 : vector<2x64xf32>
    %cst_17 = arith.constant 1.000000e+00 : f32
    %54 = vector.broadcast %cst_17 : f32 to vector<2x64xf32>
    %55 = arith.addf %54, %53 : vector<2x64xf32>
    %56 = arith.divf %54, %55 : vector<2x64xf32>
    %57 = vector.extract_strided_slice %35 {offsets = [0, 128], sizes = [2, 64], strides = [1, 1]} : vector<2x192xf32> to vector<2x64xf32>
    %58 = vector.extract_strided_slice %40 {offsets = [0, 128], sizes = [2, 64], strides = [1, 1]} : vector<2x192xf32> to vector<2x64xf32>
    %59 = arith.mulf %48, %58 : vector<2x64xf32>
    %60 = arith.addf %57, %59 : vector<2x64xf32>
    %61 = math.tanh %60 : vector<2x64xf32>
    %cst_18 = arith.constant 1.000000e+00 : f32
    %62 = vector.broadcast %cst_18 : f32 to vector<2x64xf32>
    %63 = arith.subf %62, %56 : vector<2x64xf32>
    %64 = arith.mulf %63, %61 : vector<2x64xf32>
    %65 = arith.mulf %56, %30 : vector<2x64xf32>
    %66 = arith.addf %64, %65 : vector<2x64xf32>
    %67 = vector.extract_strided_slice %7 {offsets = [8, 0, 0], sizes = [1, 2, 192], strides = [1, 1, 1]} : vector<10x2x192xf32> to vector<1x2x192xf32>
    %68 = vector.shape_cast %67 : vector<1x2x192xf32> to vector<2x192xf32>
    %69 = vector.extract_strided_slice %7 {offsets = [1, 0, 0], sizes = [1, 2, 192], strides = [1, 1, 1]} : vector<10x2x192xf32> to vector<1x2x192xf32>
    %70 = vector.shape_cast %69 : vector<1x2x192xf32> to vector<2x192xf32>
    %71 = arith.select %26, %68, %70 : vector<2x192xi1>, vector<2x192xf32>
    %c0_19 = arith.constant 0 : index
    %c0_20 = arith.constant 0 : index
    %72 = vector.load %arg3[%c0_19, %c0_20] : memref<64x192xf32, #tpu.memory_space<vmem>>, vector<64x192xf32>
    %cst_21 = arith.constant dense<0.000000e+00> : vector<2x192xf32>
    %73 = tpu.matmul %66, %72, %cst_21 {dimension_numbers = #tpu.dot_dimension_numbers<[1], [0], [0], [1], [0, 0, 1, 1], [], []>} : vector<2x64xf32>, vector<64x192xf32>, vector<2x192xf32> -> vector<2x192xf32>
    %c0_22 = arith.constant 0 : index
    %c0_23 = arith.constant 0 : index
    %74 = vector.load %arg4[%c0_22, %c0_23] : memref<1x192xf32, #tpu.memory_space<vmem>>, vector<1x192xf32>
    %75 = vector.broadcast %74 : vector<1x192xf32> to vector<2x192xf32>
    %76 = arith.addf %73, %75 : vector<2x192xf32>
    %77 = vector.extract_strided_slice %71 {offsets = [0, 0], sizes = [2, 64], strides = [1, 1]} : vector<2x192xf32> to vector<2x64xf32>
    %78 = vector.extract_strided_slice %76 {offsets = [0, 0], sizes = [2, 64], strides = [1, 1]} : vector<2x192xf32> to vector<2x64xf32>
    %79 = arith.addf %77, %78 : vector<2x64xf32>
    %80 = arith.negf %79 : vector<2x64xf32>
    %81 = math.exp %80 : vector<2x64xf32>
    %cst_24 = arith.constant 1.000000e+00 : f32
    %82 = vector.broadcast %cst_24 : f32 to vector<2x64xf32>
    %83 = arith.addf %82, %81 : vector<2x64xf32>
    %84 = arith.divf %82, %83 : vector<2x64xf32>
    %85 = vector.extract_strided_slice %71 {offsets = [0, 64], sizes = [2, 64], strides = [1, 1]} : vector<2x192xf32> to vector<2x64xf32>
    %86 = vector.extract_strided_slice %76 {offsets = [0, 64], sizes = [2, 64], strides = [1, 1]} : vector<2x192xf32> to vector<2x64xf32>
    %87 = arith.addf %85, %86 : vector<2x64xf32>
    %88 = arith.negf %87 : vector<2x64xf32>
    %89 = math.exp %88 : vector<2x64xf32>
    %cst_25 = arith.constant 1.000000e+00 : f32
    %90 = vector.broadcast %cst_25 : f32 to vector<2x64xf32>
    %91 = arith.addf %90, %89 : vector<2x64xf32>
    %92 = arith.divf %90, %91 : vector<2x64xf32>
    %93 = vector.extract_strided_slice %71 {offsets = [0, 128], sizes = [2, 64], strides = [1, 1]} : vector<2x192xf32> to vector<2x64xf32>
    %94 = vector.extract_strided_slice %76 {offsets = [0, 128], sizes = [2, 64], strides = [1, 1]} : vector<2x192xf32> to vector<2x64xf32>
    %95 = arith.mulf %84, %94 : vector<2x64xf32>
    %96 = arith.addf %93, %95 : vector<2x64xf32>
    %97 = math.tanh %96 : vector<2x64xf32>
    %cst_26 = arith.constant 1.000000e+00 : f32
    %98 = vector.broadcast %cst_26 : f32 to vector<2x64xf32>
    %99 = arith.subf %98, %92 : vector<2x64xf32>
    %100 = arith.mulf %99, %97 : vector<2x64xf32>
    %101 = arith.mulf %92, %66 : vector<2x64xf32>
    %102 = arith.addf %100, %101 : vector<2x64xf32>
    %103 = vector.extract_strided_slice %7 {offsets = [7, 0, 0], sizes = [1, 2, 192], strides = [1, 1, 1]} : vector<10x2x192xf32> to vector<1x2x192xf32>
    %104 = vector.shape_cast %103 : vector<1x2x192xf32> to vector<2x192xf32>
    %105 = vector.extract_strided_slice %7 {offsets = [2, 0, 0], sizes = [1, 2, 192], strides = [1, 1, 1]} : vector<10x2x192xf32> to vector<1x2x192xf32>
    %106 = vector.shape_cast %105 : vector<1x2x192xf32> to vector<2x192xf32>
    %107 = arith.select %26, %104, %106 : vector<2x192xi1>, vector<2x192xf32>
    %c0_27 = arith.constant 0 : index
    %c0_28 = arith.constant 0 : index
    %108 = vector.load %arg3[%c0_27, %c0_28] : memref<64x192xf32, #tpu.memory_space<vmem>>, vector<64x192xf32>
    %cst_29 = arith.constant dense<0.000000e+00> : vector<2x192xf32>
    %109 = tpu.matmul %102, %108, %cst_29 {dimension_numbers = #tpu.dot_dimension_numbers<[1], [0], [0], [1], [0, 0, 1, 1], [], []>} : vector<2x64xf32>, vector<64x192xf32>, vector<2x192xf32> -> vector<2x192xf32>
    %c0_30 = arith.constant 0 : index
    %c0_31 = arith.constant 0 : index
    %110 = vector.load %arg4[%c0_30, %c0_31] : memref<1x192xf32, #tpu.memory_space<vmem>>, vector<1x192xf32>
    %111 = vector.broadcast %110 : vector<1x192xf32> to vector<2x192xf32>
    %112 = arith.addf %109, %111 : vector<2x192xf32>
    %113 = vector.extract_strided_slice %107 {offsets = [0, 0], sizes = [2, 64], strides = [1, 1]} : vector<2x192xf32> to vector<2x64xf32>
    %114 = vector.extract_strided_slice %112 {offsets = [0, 0], sizes = [2, 64], strides = [1, 1]} : vector<2x192xf32> to vector<2x64xf32>
    %115 = arith.addf %113, %114 : vector<2x64xf32>
    %116 = arith.negf %115 : vector<2x64xf32>
    %117 = math.exp %116 : vector<2x64xf32>
    %cst_32 = arith.constant 1.000000e+00 : f32
    %118 = vector.broadcast %cst_32 : f32 to vector<2x64xf32>
    %119 = arith.addf %118, %117 : vector<2x64xf32>
    %120 = arith.divf %118, %119 : vector<2x64xf32>
    %121 = vector.extract_strided_slice %107 {offsets = [0, 64], sizes = [2, 64], strides = [1, 1]} : vector<2x192xf32> to vector<2x64xf32>
    %122 = vector.extract_strided_slice %112 {offsets = [0, 64], sizes = [2, 64], strides = [1, 1]} : vector<2x192xf32> to vector<2x64xf32>
    %123 = arith.addf %121, %122 : vector<2x64xf32>
    %124 = arith.negf %123 : vector<2x64xf32>
    %125 = math.exp %124 : vector<2x64xf32>
    %cst_33 = arith.constant 1.000000e+00 : f32
    %126 = vector.broadcast %cst_33 : f32 to vector<2x64xf32>
    %127 = arith.addf %126, %125 : vector<2x64xf32>
    %128 = arith.divf %126, %127 : vector<2x64xf32>
    %129 = vector.extract_strided_slice %107 {offsets = [0, 128], sizes = [2, 64], strides = [1, 1]} : vector<2x192xf32> to vector<2x64xf32>
    %130 = vector.extract_strided_slice %112 {offsets = [0, 128], sizes = [2, 64], strides = [1, 1]} : vector<2x192xf32> to vector<2x64xf32>
    %131 = arith.mulf %120, %130 : vector<2x64xf32>
    %132 = arith.addf %129, %131 : vector<2x64xf32>
    %133 = math.tanh %132 : vector<2x64xf32>
    %cst_34 = arith.constant 1.000000e+00 : f32
    %134 = vector.broadcast %cst_34 : f32 to vector<2x64xf32>
    %135 = arith.subf %134, %128 : vector<2x64xf32>
    %136 = arith.mulf %135, %133 : vector<2x64xf32>
    %137 = arith.mulf %128, %102 : vector<2x64xf32>
    %138 = arith.addf %136, %137 : vector<2x64xf32>
    %139 = vector.extract_strided_slice %7 {offsets = [6, 0, 0], sizes = [1, 2, 192], strides = [1, 1, 1]} : vector<10x2x192xf32> to vector<1x2x192xf32>
    %140 = vector.shape_cast %139 : vector<1x2x192xf32> to vector<2x192xf32>
    %141 = vector.extract_strided_slice %7 {offsets = [3, 0, 0], sizes = [1, 2, 192], strides = [1, 1, 1]} : vector<10x2x192xf32> to vector<1x2x192xf32>
    %142 = vector.shape_cast %141 : vector<1x2x192xf32> to vector<2x192xf32>
    %143 = arith.select %26, %140, %142 : vector<2x192xi1>, vector<2x192xf32>
    %c0_35 = arith.constant 0 : index
    %c0_36 = arith.constant 0 : index
    %144 = vector.load %arg3[%c0_35, %c0_36] : memref<64x192xf32, #tpu.memory_space<vmem>>, vector<64x192xf32>
    %cst_37 = arith.constant dense<0.000000e+00> : vector<2x192xf32>
    %145 = tpu.matmul %138, %144, %cst_37 {dimension_numbers = #tpu.dot_dimension_numbers<[1], [0], [0], [1], [0, 0, 1, 1], [], []>} : vector<2x64xf32>, vector<64x192xf32>, vector<2x192xf32> -> vector<2x192xf32>
    %c0_38 = arith.constant 0 : index
    %c0_39 = arith.constant 0 : index
    %146 = vector.load %arg4[%c0_38, %c0_39] : memref<1x192xf32, #tpu.memory_space<vmem>>, vector<1x192xf32>
    %147 = vector.broadcast %146 : vector<1x192xf32> to vector<2x192xf32>
    %148 = arith.addf %145, %147 : vector<2x192xf32>
    %149 = vector.extract_strided_slice %143 {offsets = [0, 0], sizes = [2, 64], strides = [1, 1]} : vector<2x192xf32> to vector<2x64xf32>
    %150 = vector.extract_strided_slice %148 {offsets = [0, 0], sizes = [2, 64], strides = [1, 1]} : vector<2x192xf32> to vector<2x64xf32>
    %151 = arith.addf %149, %150 : vector<2x64xf32>
    %152 = arith.negf %151 : vector<2x64xf32>
    %153 = math.exp %152 : vector<2x64xf32>
    %cst_40 = arith.constant 1.000000e+00 : f32
    %154 = vector.broadcast %cst_40 : f32 to vector<2x64xf32>
    %155 = arith.addf %154, %153 : vector<2x64xf32>
    %156 = arith.divf %154, %155 : vector<2x64xf32>
    %157 = vector.extract_strided_slice %143 {offsets = [0, 64], sizes = [2, 64], strides = [1, 1]} : vector<2x192xf32> to vector<2x64xf32>
    %158 = vector.extract_strided_slice %148 {offsets = [0, 64], sizes = [2, 64], strides = [1, 1]} : vector<2x192xf32> to vector<2x64xf32>
    %159 = arith.addf %157, %158 : vector<2x64xf32>
    %160 = arith.negf %159 : vector<2x64xf32>
    %161 = math.exp %160 : vector<2x64xf32>
    %cst_41 = arith.constant 1.000000e+00 : f32
    %162 = vector.broadcast %cst_41 : f32 to vector<2x64xf32>
    %163 = arith.addf %162, %161 : vector<2x64xf32>
    %164 = arith.divf %162, %163 : vector<2x64xf32>
    %165 = vector.extract_strided_slice %143 {offsets = [0, 128], sizes = [2, 64], strides = [1, 1]} : vector<2x192xf32> to vector<2x64xf32>
    %166 = vector.extract_strided_slice %148 {offsets = [0, 128], sizes = [2, 64], strides = [1, 1]} : vector<2x192xf32> to vector<2x64xf32>
    %167 = arith.mulf %156, %166 : vector<2x64xf32>
    %168 = arith.addf %165, %167 : vector<2x64xf32>
    %169 = math.tanh %168 : vector<2x64xf32>
    %cst_42 = arith.constant 1.000000e+00 : f32
    %170 = vector.broadcast %cst_42 : f32 to vector<2x64xf32>
    %171 = arith.subf %170, %164 : vector<2x64xf32>
    %172 = arith.mulf %171, %169 : vector<2x64xf32>
    %173 = arith.mulf %164, %138 : vector<2x64xf32>
    %174 = arith.addf %172, %173 : vector<2x64xf32>
    %175 = vector.extract_strided_slice %7 {offsets = [5, 0, 0], sizes = [1, 2, 192], strides = [1, 1, 1]} : vector<10x2x192xf32> to vector<1x2x192xf32>
    %176 = vector.shape_cast %175 : vector<1x2x192xf32> to vector<2x192xf32>
    %177 = vector.extract_strided_slice %7 {offsets = [4, 0, 0], sizes = [1, 2, 192], strides = [1, 1, 1]} : vector<10x2x192xf32> to vector<1x2x192xf32>
    %178 = vector.shape_cast %177 : vector<1x2x192xf32> to vector<2x192xf32>
    %179 = arith.select %26, %176, %178 : vector<2x192xi1>, vector<2x192xf32>
    %c0_43 = arith.constant 0 : index
    %c0_44 = arith.constant 0 : index
    %180 = vector.load %arg3[%c0_43, %c0_44] : memref<64x192xf32, #tpu.memory_space<vmem>>, vector<64x192xf32>
    %cst_45 = arith.constant dense<0.000000e+00> : vector<2x192xf32>
    %181 = tpu.matmul %174, %180, %cst_45 {dimension_numbers = #tpu.dot_dimension_numbers<[1], [0], [0], [1], [0, 0, 1, 1], [], []>} : vector<2x64xf32>, vector<64x192xf32>, vector<2x192xf32> -> vector<2x192xf32>
    %c0_46 = arith.constant 0 : index
    %c0_47 = arith.constant 0 : index
    %182 = vector.load %arg4[%c0_46, %c0_47] : memref<1x192xf32, #tpu.memory_space<vmem>>, vector<1x192xf32>
    %183 = vector.broadcast %182 : vector<1x192xf32> to vector<2x192xf32>
    %184 = arith.addf %181, %183 : vector<2x192xf32>
    %185 = vector.extract_strided_slice %179 {offsets = [0, 0], sizes = [2, 64], strides = [1, 1]} : vector<2x192xf32> to vector<2x64xf32>
    %186 = vector.extract_strided_slice %184 {offsets = [0, 0], sizes = [2, 64], strides = [1, 1]} : vector<2x192xf32> to vector<2x64xf32>
    %187 = arith.addf %185, %186 : vector<2x64xf32>
    %188 = arith.negf %187 : vector<2x64xf32>
    %189 = math.exp %188 : vector<2x64xf32>
    %cst_48 = arith.constant 1.000000e+00 : f32
    %190 = vector.broadcast %cst_48 : f32 to vector<2x64xf32>
    %191 = arith.addf %190, %189 : vector<2x64xf32>
    %192 = arith.divf %190, %191 : vector<2x64xf32>
    %193 = vector.extract_strided_slice %179 {offsets = [0, 64], sizes = [2, 64], strides = [1, 1]} : vector<2x192xf32> to vector<2x64xf32>
    %194 = vector.extract_strided_slice %184 {offsets = [0, 64], sizes = [2, 64], strides = [1, 1]} : vector<2x192xf32> to vector<2x64xf32>
    %195 = arith.addf %193, %194 : vector<2x64xf32>
    %196 = arith.negf %195 : vector<2x64xf32>
    %197 = math.exp %196 : vector<2x64xf32>
    %cst_49 = arith.constant 1.000000e+00 : f32
    %198 = vector.broadcast %cst_49 : f32 to vector<2x64xf32>
    %199 = arith.addf %198, %197 : vector<2x64xf32>
    %200 = arith.divf %198, %199 : vector<2x64xf32>
    %201 = vector.extract_strided_slice %179 {offsets = [0, 128], sizes = [2, 64], strides = [1, 1]} : vector<2x192xf32> to vector<2x64xf32>
    %202 = vector.extract_strided_slice %184 {offsets = [0, 128], sizes = [2, 64], strides = [1, 1]} : vector<2x192xf32> to vector<2x64xf32>
    %203 = arith.mulf %192, %202 : vector<2x64xf32>
    %204 = arith.addf %201, %203 : vector<2x64xf32>
    %205 = math.tanh %204 : vector<2x64xf32>
    %cst_50 = arith.constant 1.000000e+00 : f32
    %206 = vector.broadcast %cst_50 : f32 to vector<2x64xf32>
    %207 = arith.subf %206, %200 : vector<2x64xf32>
    %208 = arith.mulf %207, %205 : vector<2x64xf32>
    %209 = arith.mulf %200, %174 : vector<2x64xf32>
    %210 = arith.addf %208, %209 : vector<2x64xf32>
    %211 = vector.extract_strided_slice %7 {offsets = [4, 0, 0], sizes = [1, 2, 192], strides = [1, 1, 1]} : vector<10x2x192xf32> to vector<1x2x192xf32>
    %212 = vector.shape_cast %211 : vector<1x2x192xf32> to vector<2x192xf32>
    %213 = vector.extract_strided_slice %7 {offsets = [5, 0, 0], sizes = [1, 2, 192], strides = [1, 1, 1]} : vector<10x2x192xf32> to vector<1x2x192xf32>
    %214 = vector.shape_cast %213 : vector<1x2x192xf32> to vector<2x192xf32>
    %215 = arith.select %26, %212, %214 : vector<2x192xi1>, vector<2x192xf32>
    %c0_51 = arith.constant 0 : index
    %c0_52 = arith.constant 0 : index
    %216 = vector.load %arg3[%c0_51, %c0_52] : memref<64x192xf32, #tpu.memory_space<vmem>>, vector<64x192xf32>
    %cst_53 = arith.constant dense<0.000000e+00> : vector<2x192xf32>
    %217 = tpu.matmul %210, %216, %cst_53 {dimension_numbers = #tpu.dot_dimension_numbers<[1], [0], [0], [1], [0, 0, 1, 1], [], []>} : vector<2x64xf32>, vector<64x192xf32>, vector<2x192xf32> -> vector<2x192xf32>
    %c0_54 = arith.constant 0 : index
    %c0_55 = arith.constant 0 : index
    %218 = vector.load %arg4[%c0_54, %c0_55] : memref<1x192xf32, #tpu.memory_space<vmem>>, vector<1x192xf32>
    %219 = vector.broadcast %218 : vector<1x192xf32> to vector<2x192xf32>
    %220 = arith.addf %217, %219 : vector<2x192xf32>
    %221 = vector.extract_strided_slice %215 {offsets = [0, 0], sizes = [2, 64], strides = [1, 1]} : vector<2x192xf32> to vector<2x64xf32>
    %222 = vector.extract_strided_slice %220 {offsets = [0, 0], sizes = [2, 64], strides = [1, 1]} : vector<2x192xf32> to vector<2x64xf32>
    %223 = arith.addf %221, %222 : vector<2x64xf32>
    %224 = arith.negf %223 : vector<2x64xf32>
    %225 = math.exp %224 : vector<2x64xf32>
    %cst_56 = arith.constant 1.000000e+00 : f32
    %226 = vector.broadcast %cst_56 : f32 to vector<2x64xf32>
    %227 = arith.addf %226, %225 : vector<2x64xf32>
    %228 = arith.divf %226, %227 : vector<2x64xf32>
    %229 = vector.extract_strided_slice %215 {offsets = [0, 64], sizes = [2, 64], strides = [1, 1]} : vector<2x192xf32> to vector<2x64xf32>
    %230 = vector.extract_strided_slice %220 {offsets = [0, 64], sizes = [2, 64], strides = [1, 1]} : vector<2x192xf32> to vector<2x64xf32>
    %231 = arith.addf %229, %230 : vector<2x64xf32>
    %232 = arith.negf %231 : vector<2x64xf32>
    %233 = math.exp %232 : vector<2x64xf32>
    %cst_57 = arith.constant 1.000000e+00 : f32
    %234 = vector.broadcast %cst_57 : f32 to vector<2x64xf32>
    %235 = arith.addf %234, %233 : vector<2x64xf32>
    %236 = arith.divf %234, %235 : vector<2x64xf32>
    %237 = vector.extract_strided_slice %215 {offsets = [0, 128], sizes = [2, 64], strides = [1, 1]} : vector<2x192xf32> to vector<2x64xf32>
    %238 = vector.extract_strided_slice %220 {offsets = [0, 128], sizes = [2, 64], strides = [1, 1]} : vector<2x192xf32> to vector<2x64xf32>
    %239 = arith.mulf %228, %238 : vector<2x64xf32>
    %240 = arith.addf %237, %239 : vector<2x64xf32>
    %241 = math.tanh %240 : vector<2x64xf32>
    %cst_58 = arith.constant 1.000000e+00 : f32
    %242 = vector.broadcast %cst_58 : f32 to vector<2x64xf32>
    %243 = arith.subf %242, %236 : vector<2x64xf32>
    %244 = arith.mulf %243, %241 : vector<2x64xf32>
    %245 = arith.mulf %236, %210 : vector<2x64xf32>
    %246 = arith.addf %244, %245 : vector<2x64xf32>
    %247 = vector.extract_strided_slice %7 {offsets = [3, 0, 0], sizes = [1, 2, 192], strides = [1, 1, 1]} : vector<10x2x192xf32> to vector<1x2x192xf32>
    %248 = vector.shape_cast %247 : vector<1x2x192xf32> to vector<2x192xf32>
    %249 = vector.extract_strided_slice %7 {offsets = [6, 0, 0], sizes = [1, 2, 192], strides = [1, 1, 1]} : vector<10x2x192xf32> to vector<1x2x192xf32>
    %250 = vector.shape_cast %249 : vector<1x2x192xf32> to vector<2x192xf32>
    %251 = arith.select %26, %248, %250 : vector<2x192xi1>, vector<2x192xf32>
    %c0_59 = arith.constant 0 : index
    %c0_60 = arith.constant 0 : index
    %252 = vector.load %arg3[%c0_59, %c0_60] : memref<64x192xf32, #tpu.memory_space<vmem>>, vector<64x192xf32>
    %cst_61 = arith.constant dense<0.000000e+00> : vector<2x192xf32>
    %253 = tpu.matmul %246, %252, %cst_61 {dimension_numbers = #tpu.dot_dimension_numbers<[1], [0], [0], [1], [0, 0, 1, 1], [], []>} : vector<2x64xf32>, vector<64x192xf32>, vector<2x192xf32> -> vector<2x192xf32>
    %c0_62 = arith.constant 0 : index
    %c0_63 = arith.constant 0 : index
    %254 = vector.load %arg4[%c0_62, %c0_63] : memref<1x192xf32, #tpu.memory_space<vmem>>, vector<1x192xf32>
    %255 = vector.broadcast %254 : vector<1x192xf32> to vector<2x192xf32>
    %256 = arith.addf %253, %255 : vector<2x192xf32>
    %257 = vector.extract_strided_slice %251 {offsets = [0, 0], sizes = [2, 64], strides = [1, 1]} : vector<2x192xf32> to vector<2x64xf32>
    %258 = vector.extract_strided_slice %256 {offsets = [0, 0], sizes = [2, 64], strides = [1, 1]} : vector<2x192xf32> to vector<2x64xf32>
    %259 = arith.addf %257, %258 : vector<2x64xf32>
    %260 = arith.negf %259 : vector<2x64xf32>
    %261 = math.exp %260 : vector<2x64xf32>
    %cst_64 = arith.constant 1.000000e+00 : f32
    %262 = vector.broadcast %cst_64 : f32 to vector<2x64xf32>
    %263 = arith.addf %262, %261 : vector<2x64xf32>
    %264 = arith.divf %262, %263 : vector<2x64xf32>
    %265 = vector.extract_strided_slice %251 {offsets = [0, 64], sizes = [2, 64], strides = [1, 1]} : vector<2x192xf32> to vector<2x64xf32>
    %266 = vector.extract_strided_slice %256 {offsets = [0, 64], sizes = [2, 64], strides = [1, 1]} : vector<2x192xf32> to vector<2x64xf32>
    %267 = arith.addf %265, %266 : vector<2x64xf32>
    %268 = arith.negf %267 : vector<2x64xf32>
    %269 = math.exp %268 : vector<2x64xf32>
    %cst_65 = arith.constant 1.000000e+00 : f32
    %270 = vector.broadcast %cst_65 : f32 to vector<2x64xf32>
    %271 = arith.addf %270, %269 : vector<2x64xf32>
    %272 = arith.divf %270, %271 : vector<2x64xf32>
    %273 = vector.extract_strided_slice %251 {offsets = [0, 128], sizes = [2, 64], strides = [1, 1]} : vector<2x192xf32> to vector<2x64xf32>
    %274 = vector.extract_strided_slice %256 {offsets = [0, 128], sizes = [2, 64], strides = [1, 1]} : vector<2x192xf32> to vector<2x64xf32>
    %275 = arith.mulf %264, %274 : vector<2x64xf32>
    %276 = arith.addf %273, %275 : vector<2x64xf32>
    %277 = math.tanh %276 : vector<2x64xf32>
    %cst_66 = arith.constant 1.000000e+00 : f32
    %278 = vector.broadcast %cst_66 : f32 to vector<2x64xf32>
    %279 = arith.subf %278, %272 : vector<2x64xf32>
    %280 = arith.mulf %279, %277 : vector<2x64xf32>
    %281 = arith.mulf %272, %246 : vector<2x64xf32>
    %282 = arith.addf %280, %281 : vector<2x64xf32>
    %283 = vector.extract_strided_slice %7 {offsets = [2, 0, 0], sizes = [1, 2, 192], strides = [1, 1, 1]} : vector<10x2x192xf32> to vector<1x2x192xf32>
    %284 = vector.shape_cast %283 : vector<1x2x192xf32> to vector<2x192xf32>
    %285 = vector.extract_strided_slice %7 {offsets = [7, 0, 0], sizes = [1, 2, 192], strides = [1, 1, 1]} : vector<10x2x192xf32> to vector<1x2x192xf32>
    %286 = vector.shape_cast %285 : vector<1x2x192xf32> to vector<2x192xf32>
    %287 = arith.select %26, %284, %286 : vector<2x192xi1>, vector<2x192xf32>
    %c0_67 = arith.constant 0 : index
    %c0_68 = arith.constant 0 : index
    %288 = vector.load %arg3[%c0_67, %c0_68] : memref<64x192xf32, #tpu.memory_space<vmem>>, vector<64x192xf32>
    %cst_69 = arith.constant dense<0.000000e+00> : vector<2x192xf32>
    %289 = tpu.matmul %282, %288, %cst_69 {dimension_numbers = #tpu.dot_dimension_numbers<[1], [0], [0], [1], [0, 0, 1, 1], [], []>} : vector<2x64xf32>, vector<64x192xf32>, vector<2x192xf32> -> vector<2x192xf32>
    %c0_70 = arith.constant 0 : index
    %c0_71 = arith.constant 0 : index
    %290 = vector.load %arg4[%c0_70, %c0_71] : memref<1x192xf32, #tpu.memory_space<vmem>>, vector<1x192xf32>
    %291 = vector.broadcast %290 : vector<1x192xf32> to vector<2x192xf32>
    %292 = arith.addf %289, %291 : vector<2x192xf32>
    %293 = vector.extract_strided_slice %287 {offsets = [0, 0], sizes = [2, 64], strides = [1, 1]} : vector<2x192xf32> to vector<2x64xf32>
    %294 = vector.extract_strided_slice %292 {offsets = [0, 0], sizes = [2, 64], strides = [1, 1]} : vector<2x192xf32> to vector<2x64xf32>
    %295 = arith.addf %293, %294 : vector<2x64xf32>
    %296 = arith.negf %295 : vector<2x64xf32>
    %297 = math.exp %296 : vector<2x64xf32>
    %cst_72 = arith.constant 1.000000e+00 : f32
    %298 = vector.broadcast %cst_72 : f32 to vector<2x64xf32>
    %299 = arith.addf %298, %297 : vector<2x64xf32>
    %300 = arith.divf %298, %299 : vector<2x64xf32>
    %301 = vector.extract_strided_slice %287 {offsets = [0, 64], sizes = [2, 64], strides = [1, 1]} : vector<2x192xf32> to vector<2x64xf32>
    %302 = vector.extract_strided_slice %292 {offsets = [0, 64], sizes = [2, 64], strides = [1, 1]} : vector<2x192xf32> to vector<2x64xf32>
    %303 = arith.addf %301, %302 : vector<2x64xf32>
    %304 = arith.negf %303 : vector<2x64xf32>
    %305 = math.exp %304 : vector<2x64xf32>
    %cst_73 = arith.constant 1.000000e+00 : f32
    %306 = vector.broadcast %cst_73 : f32 to vector<2x64xf32>
    %307 = arith.addf %306, %305 : vector<2x64xf32>
    %308 = arith.divf %306, %307 : vector<2x64xf32>
    %309 = vector.extract_strided_slice %287 {offsets = [0, 128], sizes = [2, 64], strides = [1, 1]} : vector<2x192xf32> to vector<2x64xf32>
    %310 = vector.extract_strided_slice %292 {offsets = [0, 128], sizes = [2, 64], strides = [1, 1]} : vector<2x192xf32> to vector<2x64xf32>
    %311 = arith.mulf %300, %310 : vector<2x64xf32>
    %312 = arith.addf %309, %311 : vector<2x64xf32>
    %313 = math.tanh %312 : vector<2x64xf32>
    %cst_74 = arith.constant 1.000000e+00 : f32
    %314 = vector.broadcast %cst_74 : f32 to vector<2x64xf32>
    %315 = arith.subf %314, %308 : vector<2x64xf32>
    %316 = arith.mulf %315, %313 : vector<2x64xf32>
    %317 = arith.mulf %308, %282 : vector<2x64xf32>
    %318 = arith.addf %316, %317 : vector<2x64xf32>
    %319 = vector.extract_strided_slice %7 {offsets = [1, 0, 0], sizes = [1, 2, 192], strides = [1, 1, 1]} : vector<10x2x192xf32> to vector<1x2x192xf32>
    %320 = vector.shape_cast %319 : vector<1x2x192xf32> to vector<2x192xf32>
    %321 = vector.extract_strided_slice %7 {offsets = [8, 0, 0], sizes = [1, 2, 192], strides = [1, 1, 1]} : vector<10x2x192xf32> to vector<1x2x192xf32>
    %322 = vector.shape_cast %321 : vector<1x2x192xf32> to vector<2x192xf32>
    %323 = arith.select %26, %320, %322 : vector<2x192xi1>, vector<2x192xf32>
    %c0_75 = arith.constant 0 : index
    %c0_76 = arith.constant 0 : index
    %324 = vector.load %arg3[%c0_75, %c0_76] : memref<64x192xf32, #tpu.memory_space<vmem>>, vector<64x192xf32>
    %cst_77 = arith.constant dense<0.000000e+00> : vector<2x192xf32>
    %325 = tpu.matmul %318, %324, %cst_77 {dimension_numbers = #tpu.dot_dimension_numbers<[1], [0], [0], [1], [0, 0, 1, 1], [], []>} : vector<2x64xf32>, vector<64x192xf32>, vector<2x192xf32> -> vector<2x192xf32>
    %c0_78 = arith.constant 0 : index
    %c0_79 = arith.constant 0 : index
    %326 = vector.load %arg4[%c0_78, %c0_79] : memref<1x192xf32, #tpu.memory_space<vmem>>, vector<1x192xf32>
    %327 = vector.broadcast %326 : vector<1x192xf32> to vector<2x192xf32>
    %328 = arith.addf %325, %327 : vector<2x192xf32>
    %329 = vector.extract_strided_slice %323 {offsets = [0, 0], sizes = [2, 64], strides = [1, 1]} : vector<2x192xf32> to vector<2x64xf32>
    %330 = vector.extract_strided_slice %328 {offsets = [0, 0], sizes = [2, 64], strides = [1, 1]} : vector<2x192xf32> to vector<2x64xf32>
    %331 = arith.addf %329, %330 : vector<2x64xf32>
    %332 = arith.negf %331 : vector<2x64xf32>
    %333 = math.exp %332 : vector<2x64xf32>
    %cst_80 = arith.constant 1.000000e+00 : f32
    %334 = vector.broadcast %cst_80 : f32 to vector<2x64xf32>
    %335 = arith.addf %334, %333 : vector<2x64xf32>
    %336 = arith.divf %334, %335 : vector<2x64xf32>
    %337 = vector.extract_strided_slice %323 {offsets = [0, 64], sizes = [2, 64], strides = [1, 1]} : vector<2x192xf32> to vector<2x64xf32>
    %338 = vector.extract_strided_slice %328 {offsets = [0, 64], sizes = [2, 64], strides = [1, 1]} : vector<2x192xf32> to vector<2x64xf32>
    %339 = arith.addf %337, %338 : vector<2x64xf32>
    %340 = arith.negf %339 : vector<2x64xf32>
    %341 = math.exp %340 : vector<2x64xf32>
    %cst_81 = arith.constant 1.000000e+00 : f32
    %342 = vector.broadcast %cst_81 : f32 to vector<2x64xf32>
    %343 = arith.addf %342, %341 : vector<2x64xf32>
    %344 = arith.divf %342, %343 : vector<2x64xf32>
    %345 = vector.extract_strided_slice %323 {offsets = [0, 128], sizes = [2, 64], strides = [1, 1]} : vector<2x192xf32> to vector<2x64xf32>
    %346 = vector.extract_strided_slice %328 {offsets = [0, 128], sizes = [2, 64], strides = [1, 1]} : vector<2x192xf32> to vector<2x64xf32>
    %347 = arith.mulf %336, %346 : vector<2x64xf32>
    %348 = arith.addf %345, %347 : vector<2x64xf32>
    %349 = math.tanh %348 : vector<2x64xf32>
    %cst_82 = arith.constant 1.000000e+00 : f32
    %350 = vector.broadcast %cst_82 : f32 to vector<2x64xf32>
    %351 = arith.subf %350, %344 : vector<2x64xf32>
    %352 = arith.mulf %351, %349 : vector<2x64xf32>
    %353 = arith.mulf %344, %318 : vector<2x64xf32>
    %354 = arith.addf %352, %353 : vector<2x64xf32>
    %355 = vector.extract_strided_slice %7 {offsets = [0, 0, 0], sizes = [1, 2, 192], strides = [1, 1, 1]} : vector<10x2x192xf32> to vector<1x2x192xf32>
    %356 = vector.shape_cast %355 : vector<1x2x192xf32> to vector<2x192xf32>
    %357 = vector.extract_strided_slice %7 {offsets = [9, 0, 0], sizes = [1, 2, 192], strides = [1, 1, 1]} : vector<10x2x192xf32> to vector<1x2x192xf32>
    %358 = vector.shape_cast %357 : vector<1x2x192xf32> to vector<2x192xf32>
    %359 = arith.select %26, %356, %358 : vector<2x192xi1>, vector<2x192xf32>
    %c0_83 = arith.constant 0 : index
    %c0_84 = arith.constant 0 : index
    %360 = vector.load %arg3[%c0_83, %c0_84] : memref<64x192xf32, #tpu.memory_space<vmem>>, vector<64x192xf32>
    %cst_85 = arith.constant dense<0.000000e+00> : vector<2x192xf32>
    %361 = tpu.matmul %354, %360, %cst_85 {dimension_numbers = #tpu.dot_dimension_numbers<[1], [0], [0], [1], [0, 0, 1, 1], [], []>} : vector<2x64xf32>, vector<64x192xf32>, vector<2x192xf32> -> vector<2x192xf32>
    %c0_86 = arith.constant 0 : index
    %c0_87 = arith.constant 0 : index
    %362 = vector.load %arg4[%c0_86, %c0_87] : memref<1x192xf32, #tpu.memory_space<vmem>>, vector<1x192xf32>
    %363 = vector.broadcast %362 : vector<1x192xf32> to vector<2x192xf32>
    %364 = arith.addf %361, %363 : vector<2x192xf32>
    %365 = vector.extract_strided_slice %359 {offsets = [0, 0], sizes = [2, 64], strides = [1, 1]} : vector<2x192xf32> to vector<2x64xf32>
    %366 = vector.extract_strided_slice %364 {offsets = [0, 0], sizes = [2, 64], strides = [1, 1]} : vector<2x192xf32> to vector<2x64xf32>
    %367 = arith.addf %365, %366 : vector<2x64xf32>
    %368 = arith.negf %367 : vector<2x64xf32>
    %369 = math.exp %368 : vector<2x64xf32>
    %cst_88 = arith.constant 1.000000e+00 : f32
    %370 = vector.broadcast %cst_88 : f32 to vector<2x64xf32>
    %371 = arith.addf %370, %369 : vector<2x64xf32>
    %372 = arith.divf %370, %371 : vector<2x64xf32>
    %373 = vector.extract_strided_slice %359 {offsets = [0, 64], sizes = [2, 64], strides = [1, 1]} : vector<2x192xf32> to vector<2x64xf32>
    %374 = vector.extract_strided_slice %364 {offsets = [0, 64], sizes = [2, 64], strides = [1, 1]} : vector<2x192xf32> to vector<2x64xf32>
    %375 = arith.addf %373, %374 : vector<2x64xf32>
    %376 = arith.negf %375 : vector<2x64xf32>
    %377 = math.exp %376 : vector<2x64xf32>
    %cst_89 = arith.constant 1.000000e+00 : f32
    %378 = vector.broadcast %cst_89 : f32 to vector<2x64xf32>
    %379 = arith.addf %378, %377 : vector<2x64xf32>
    %380 = arith.divf %378, %379 : vector<2x64xf32>
    %381 = vector.extract_strided_slice %359 {offsets = [0, 128], sizes = [2, 64], strides = [1, 1]} : vector<2x192xf32> to vector<2x64xf32>
    %382 = vector.extract_strided_slice %364 {offsets = [0, 128], sizes = [2, 64], strides = [1, 1]} : vector<2x192xf32> to vector<2x64xf32>
    %383 = arith.mulf %372, %382 : vector<2x64xf32>
    %384 = arith.addf %381, %383 : vector<2x64xf32>
    %385 = math.tanh %384 : vector<2x64xf32>
    %cst_90 = arith.constant 1.000000e+00 : f32
    %386 = vector.broadcast %cst_90 : f32 to vector<2x64xf32>
    %387 = arith.subf %386, %380 : vector<2x64xf32>
    %388 = arith.mulf %387, %385 : vector<2x64xf32>
    %389 = arith.mulf %380, %354 : vector<2x64xf32>
    %390 = arith.addf %388, %389 : vector<2x64xf32>
    %c0_91 = arith.constant 0 : index
    %c0_92 = arith.constant 0 : index
    %391 = vector.load %arg6[%c0_91, %c0_92] : memref<2x64xf32, #tpu.memory_space<vmem>>, vector<2x64xf32>
    tpu.vector_store %arg6[%c0_91, %c0_92], %390 {strides = array<i32>} : memref<2x64xf32, #tpu.memory_space<vmem>>, vector<2x64xf32>,
    %392 = arith.select %29, %390, %66 : vector<2x64xi1>, vector<2x64xf32>
    %393 = arith.select %29, %354, %102 : vector<2x64xi1>, vector<2x64xf32>
    %394 = arith.select %29, %318, %138 : vector<2x64xi1>, vector<2x64xf32>
    %395 = arith.select %29, %282, %174 : vector<2x64xi1>, vector<2x64xf32>
    %396 = arith.select %29, %246, %210 : vector<2x64xi1>, vector<2x64xf32>
    %397 = arith.select %29, %210, %246 : vector<2x64xi1>, vector<2x64xf32>
    %398 = arith.select %29, %174, %282 : vector<2x64xi1>, vector<2x64xf32>
    %399 = arith.select %29, %138, %318 : vector<2x64xi1>, vector<2x64xf32>
    %400 = arith.select %29, %102, %354 : vector<2x64xi1>, vector<2x64xf32>
    %401 = arith.select %29, %66, %390 : vector<2x64xi1>, vector<2x64xf32>
    %402 = vector.shape_cast %392 : vector<2x64xf32> to vector<2x1x64xf32>
    %403 = vector.shape_cast %393 : vector<2x64xf32> to vector<2x1x64xf32>
    %404 = vector.shape_cast %394 : vector<2x64xf32> to vector<2x1x64xf32>
    %405 = vector.shape_cast %395 : vector<2x64xf32> to vector<2x1x64xf32>
    %406 = vector.shape_cast %396 : vector<2x64xf32> to vector<2x1x64xf32>
    %407 = vector.shape_cast %397 : vector<2x64xf32> to vector<2x1x64xf32>
    %408 = vector.shape_cast %398 : vector<2x64xf32> to vector<2x1x64xf32>
    %409 = vector.shape_cast %399 : vector<2x64xf32> to vector<2x1x64xf32>
    %410 = vector.shape_cast %400 : vector<2x64xf32> to vector<2x1x64xf32>
    %411 = vector.shape_cast %401 : vector<2x64xf32> to vector<2x1x64xf32>
    %412 = tpu.concatenate %402, %403, %404, %405, %406, %407, %408, %409, %410, %411 in 1 : vector<2x1x64xf32>, vector<2x1x64xf32>, vector<2x1x64xf32>, vector<2x1x64xf32>, vector<2x1x64xf32>, vector<2x1x64xf32>, vector<2x1x64xf32>, vector<2x1x64xf32>, vector<2x1x64xf32>, vector<2x1x64xf32> -> vector<2x10x64xf32>
    %c0_93 = arith.constant 0 : index
    %c0_94 = arith.constant 0 : index
    %c0_95 = arith.constant 0 : index
    %413 = vector.load %arg5[%c0_93, %c0_94, %c0_95] : memref<2x10x64xf32, #tpu.memory_space<vmem>>, vector<2x10x64xf32>
    tpu.vector_store %arg5[%c0_93, %c0_94, %c0_95], %412 {strides = array<i32>} : memref<2x10x64xf32, #tpu.memory_space<vmem>>, vector<2x10x64xf32>,
    return
  }
}

module attributes {stable_mosaic.version = 11 : i64} {
  func.func @_attn_head_kernel(%arg0: i32, %arg1: memref<1x10x64xf32, #tpu.memory_space<vmem>>, %arg2: memref<1x8x64xf32, #tpu.memory_space<vmem>>, %arg3: memref<64x64xbf16, #tpu.memory_space<vmem>>, %arg4: memref<64x64xbf16, #tpu.memory_space<vmem>>, %arg5: memref<1x64xf32, #tpu.memory_space<vmem>>, %arg6: memref<64x128xbf16, #tpu.memory_space<vmem>>, %arg7: memref<1x128xf32, #tpu.memory_space<vmem>>, %arg8: memref<1x8x128xf32, #tpu.memory_space<vmem>>) attributes {dimension_semantics = [#tpu.dimension_semantics<parallel>], iteration_bounds = array<i64: 2>, scalar_prefetch = 0 : i64, scratch_operands = 0 : i64, tpu.core_type = #tpu.core_type<tc>, window_params = [{transform_indices = @transform_0, window_bounds = array<i64: 1, 10, 64>}, {transform_indices = @transform_1, window_bounds = array<i64: 1, 8, 64>}, {pipeline_mode = #tpu.pipeline_mode<synchronous>, transform_indices = @transform_2, window_bounds = array<i64: 64, 64>}, {pipeline_mode = #tpu.pipeline_mode<synchronous>, transform_indices = @transform_3, window_bounds = array<i64: 64, 64>}, {pipeline_mode = #tpu.pipeline_mode<synchronous>, transform_indices = @transform_4, window_bounds = array<i64: 1, 64>}, {pipeline_mode = #tpu.pipeline_mode<synchronous>, transform_indices = @transform_5, window_bounds = array<i64: 64, 128>}, {pipeline_mode = #tpu.pipeline_mode<synchronous>, transform_indices = @transform_6, window_bounds = array<i64: 1, 128>}, {transform_indices = @transform_7, window_bounds = array<i64: 1, 8, 128>}]} {
    %c0 = arith.constant 0 : index
    %c0_0 = arith.constant 0 : index
    %c0_1 = arith.constant 0 : index
    %0 = vector.load %arg1[%c0, %c0_0, %c0_1] : memref<1x10x64xf32, #tpu.memory_space<vmem>>, vector<1x10x64xf32>
    %1 = vector.shape_cast %0 : vector<1x10x64xf32> to vector<10x64xf32>
    %c0_2 = arith.constant 0 : index
    %c0_3 = arith.constant 0 : index
    %c0_4 = arith.constant 0 : index
    %2 = vector.load %arg2[%c0_2, %c0_3, %c0_4] : memref<1x8x64xf32, #tpu.memory_space<vmem>>, vector<1x8x64xf32>
    %3 = vector.shape_cast %2 : vector<1x8x64xf32> to vector<8x64xf32>
    %cst = arith.constant dense<0.000000e+00> : vector<8x10xf32>
    %4 = tpu.matmul %3, %1, %cst {dimension_numbers = #tpu.dot_dimension_numbers<[1], [1], [0], [0], [0, 0, 1, 0], [], []>} : vector<8x64xf32>, vector<10x64xf32>, vector<8x10xf32> -> vector<8x10xf32>
    %cst_5 = arith.constant dense<0xFF800000> : vector<8xf32>
    %5 = vector.multi_reduction <maximumf>, %4, %cst_5 [1] : vector<8x10xf32> to vector<8xf32>
    %6 = vector.shape_cast %5 : vector<8xf32> to vector<8x1xf32>
    %7 = vector.broadcast %6 : vector<8x1xf32> to vector<8x10xf32>
    %8 = arith.subf %4, %7 : vector<8x10xf32>
    %9 = math.exp %8 : vector<8x10xf32>
    %cst_6 = arith.constant dense<0.000000e+00> : vector<8xf32>
    %10 = vector.multi_reduction <add>, %9, %cst_6 [1] : vector<8x10xf32> to vector<8xf32>
    %11 = vector.shape_cast %10 : vector<8xf32> to vector<8x1xf32>
    %12 = tpu.reciprocal %11 {approx = true} : vector<8x1xf32> -> vector<8x1xf32>
    %13 = vector.broadcast %12 : vector<8x1xf32> to vector<8x10xf32>
    %14 = arith.mulf %9, %13 : vector<8x10xf32>
    %cst_7 = arith.constant dense<0.000000e+00> : vector<8x64xf32>
    %15 = tpu.matmul %14, %1, %cst_7 {dimension_numbers = #tpu.dot_dimension_numbers<[1], [0], [0], [1], [0, 0, 1, 1], [], []>} : vector<8x10xf32>, vector<10x64xf32>, vector<8x64xf32> -> vector<8x64xf32>
    %16 = math.tanh %15 : vector<8x64xf32>
    %17 = arith.truncf %16 : vector<8x64xf32> to vector<8x64xbf16>
    %c0_8 = arith.constant 0 : index
    %c0_9 = arith.constant 0 : index
    %18 = vector.load %arg3[%c0_8, %c0_9] : memref<64x64xbf16, #tpu.memory_space<vmem>>, vector<64x64xbf16>
    %cst_10 = arith.constant dense<0.000000e+00> : vector<8x64xf32>
    %19 = tpu.matmul %17, %18, %cst_10 {dimension_numbers = #tpu.dot_dimension_numbers<[1], [0], [0], [1], [0, 0, 1, 1], [], []>} : vector<8x64xbf16>, vector<64x64xbf16>, vector<8x64xf32> -> vector<8x64xf32>
    %20 = math.tanh %3 : vector<8x64xf32>
    %21 = arith.truncf %20 : vector<8x64xf32> to vector<8x64xbf16>
    %c0_11 = arith.constant 0 : index
    %c0_12 = arith.constant 0 : index
    %22 = vector.load %arg4[%c0_11, %c0_12] : memref<64x64xbf16, #tpu.memory_space<vmem>>, vector<64x64xbf16>
    %cst_13 = arith.constant dense<0.000000e+00> : vector<8x64xf32>
    %23 = tpu.matmul %21, %22, %cst_13 {dimension_numbers = #tpu.dot_dimension_numbers<[1], [0], [0], [1], [0, 0, 1, 1], [], []>} : vector<8x64xbf16>, vector<64x64xbf16>, vector<8x64xf32> -> vector<8x64xf32>
    %24 = arith.addf %19, %23 : vector<8x64xf32>
    %c0_14 = arith.constant 0 : index
    %c0_15 = arith.constant 0 : index
    %25 = vector.load %arg5[%c0_14, %c0_15] : memref<1x64xf32, #tpu.memory_space<vmem>>, vector<1x64xf32>
    %26 = vector.broadcast %25 : vector<1x64xf32> to vector<8x64xf32>
    %27 = arith.addf %24, %26 : vector<8x64xf32>
    %28 = arith.truncf %27 : vector<8x64xf32> to vector<8x64xbf16>
    %c0_16 = arith.constant 0 : index
    %c0_17 = arith.constant 0 : index
    %29 = vector.load %arg6[%c0_16, %c0_17] : memref<64x128xbf16, #tpu.memory_space<vmem>>, vector<64x128xbf16>
    %cst_18 = arith.constant dense<0.000000e+00> : vector<8x128xf32>
    %30 = tpu.matmul %28, %29, %cst_18 {dimension_numbers = #tpu.dot_dimension_numbers<[1], [0], [0], [1], [0, 0, 1, 1], [], []>} : vector<8x64xbf16>, vector<64x128xbf16>, vector<8x128xf32> -> vector<8x128xf32>
    %c0_19 = arith.constant 0 : index
    %c0_20 = arith.constant 0 : index
    %31 = vector.load %arg7[%c0_19, %c0_20] : memref<1x128xf32, #tpu.memory_space<vmem>>, vector<1x128xf32>
    %32 = vector.broadcast %31 : vector<1x128xf32> to vector<8x128xf32>
    %33 = arith.addf %30, %32 : vector<8x128xf32>
    %c0_21 = arith.constant 0 : index
    %c0_22 = arith.constant 0 : index
    %c0_23 = arith.constant 0 : index
    %34 = vector.load %arg8[%c0_21, %c0_22, %c0_23] : memref<1x8x128xf32, #tpu.memory_space<vmem>>, vector<1x8x128xf32>
    %35 = vector.shape_cast %34 : vector<1x8x128xf32> to vector<8x128xf32>
    %36 = vector.shape_cast %33 : vector<8x128xf32> to vector<1x8x128xf32>
    tpu.vector_store %arg8[%c0_21, %c0_22, %c0_23], %36 {strides = array<i32>} : memref<1x8x128xf32, #tpu.memory_space<vmem>>, vector<1x8x128xf32>,
    return
  }
  func.func @transform_0(%arg0: i32) -> (i32, i32, i32) {
    %c0_i32 = arith.constant 0 : i32
    %c0_i32_0 = arith.constant 0 : i32
    %c0_i32_1 = arith.constant 0 : i32
    return %arg0, %c0_i32, %c0_i32_0 : i32, i32, i32
  }
  func.func @transform_1(%arg0: i32) -> (i32, i32, i32) {
    %c0_i32 = arith.constant 0 : i32
    %c0_i32_0 = arith.constant 0 : i32
    %c0_i32_1 = arith.constant 0 : i32
    return %arg0, %c0_i32, %c0_i32_0 : i32, i32, i32
  }
  func.func @transform_2(%arg0: i32) -> (i32, i32) {
    %c0_i32 = arith.constant 0 : i32
    %c0_i32_0 = arith.constant 0 : i32
    %c0_i32_1 = arith.constant 0 : i32
    return %c0_i32, %c0_i32_0 : i32, i32
  }
  func.func @transform_3(%arg0: i32) -> (i32, i32) {
    %c0_i32 = arith.constant 0 : i32
    %c0_i32_0 = arith.constant 0 : i32
    %c0_i32_1 = arith.constant 0 : i32
    return %c0_i32, %c0_i32_0 : i32, i32
  }
  func.func @transform_4(%arg0: i32) -> (i32, i32) {
    %c0_i32 = arith.constant 0 : i32
    %c0_i32_0 = arith.constant 0 : i32
    %c0_i32_1 = arith.constant 0 : i32
    return %c0_i32, %c0_i32_0 : i32, i32
  }
  func.func @transform_5(%arg0: i32) -> (i32, i32) {
    %c0_i32 = arith.constant 0 : i32
    %c0_i32_0 = arith.constant 0 : i32
    %c0_i32_1 = arith.constant 0 : i32
    return %c0_i32, %c0_i32_0 : i32, i32
  }
  func.func @transform_6(%arg0: i32) -> (i32, i32) {
    %c0_i32 = arith.constant 0 : i32
    %c0_i32_0 = arith.constant 0 : i32
    %c0_i32_1 = arith.constant 0 : i32
    return %c0_i32, %c0_i32_0 : i32, i32
  }
  func.func @transform_7(%arg0: i32) -> (i32, i32, i32) {
    %c0_i32 = arith.constant 0 : i32
    %c0_i32_0 = arith.constant 0 : i32
    %c0_i32_1 = arith.constant 0 : i32
    return %arg0, %c0_i32, %c0_i32_0 : i32, i32, i32
  }
}

module attributes {stable_mosaic.version = 11 : i64} {
  func.func @_gru_kernel(%arg0: memref<8x2x32xbf16, #tpu.memory_space<vmem>>, %arg1: memref<2x64xf32, #tpu.memory_space<vmem>>, %arg2: memref<32x192xbf16, #tpu.memory_space<vmem>>, %arg3: memref<1x192xf32, #tpu.memory_space<vmem>>, %arg4: memref<64x192xf32, #tpu.memory_space<vmem>>, %arg5: memref<1x192xf32, #tpu.memory_space<vmem>>, %arg6: memref<2x8x64xf32, #tpu.memory_space<vmem>>, %arg7: memref<2x64xf32, #tpu.memory_space<vmem>>) attributes {dimension_semantics = [], scalar_prefetch = 0 : i64, scratch_operands = 0 : i64, tpu.core_type = #tpu.core_type<tc>} {
    %c0 = arith.constant 0 : index
    %c0_0 = arith.constant 0 : index
    %c0_1 = arith.constant 0 : index
    %0 = vector.load %arg0[%c0, %c0_0, %c0_1] : memref<8x2x32xbf16, #tpu.memory_space<vmem>>, vector<8x2x32xbf16>
    %1 = vector.shape_cast %0 : vector<8x2x32xbf16> to vector<16x32xbf16>
    %c0_2 = arith.constant 0 : index
    %c0_3 = arith.constant 0 : index
    %2 = vector.load %arg2[%c0_2, %c0_3] : memref<32x192xbf16, #tpu.memory_space<vmem>>, vector<32x192xbf16>
    %cst = arith.constant dense<0.000000e+00> : vector<16x192xf32>
    %3 = tpu.matmul %1, %2, %cst {dimension_numbers = #tpu.dot_dimension_numbers<[1], [0], [0], [1], [0, 0, 1, 1], [], []>} : vector<16x32xbf16>, vector<32x192xbf16>, vector<16x192xf32> -> vector<16x192xf32>
    %c0_4 = arith.constant 0 : index
    %c0_5 = arith.constant 0 : index
    %4 = vector.load %arg3[%c0_4, %c0_5] : memref<1x192xf32, #tpu.memory_space<vmem>>, vector<1x192xf32>
    %5 = vector.broadcast %4 : vector<1x192xf32> to vector<16x192xf32>
    %6 = arith.addf %3, %5 : vector<16x192xf32>
    %7 = vector.shape_cast %6 : vector<16x192xf32> to vector<8x2x192xf32>
    %c0_6 = arith.constant 0 : index
    %c0_7 = arith.constant 0 : index
    %8 = vector.load %arg1[%c0_6, %c0_7] : memref<2x64xf32, #tpu.memory_space<vmem>>, vector<2x64xf32>
    %c0_8 = arith.constant 0 : index
    %c0_9 = arith.constant 0 : index
    %9 = vector.load %arg4[%c0_8, %c0_9] : memref<64x192xf32, #tpu.memory_space<vmem>>, vector<64x192xf32>
    %cst_10 = arith.constant dense<0.000000e+00> : vector<2x192xf32>
    %10 = tpu.matmul %8, %9, %cst_10 {dimension_numbers = #tpu.dot_dimension_numbers<[1], [0], [0], [1], [0, 0, 1, 1], [], []>} : vector<2x64xf32>, vector<64x192xf32>, vector<2x192xf32> -> vector<2x192xf32>
    %c0_11 = arith.constant 0 : index
    %c0_12 = arith.constant 0 : index
    %11 = vector.load %arg5[%c0_11, %c0_12] : memref<1x192xf32, #tpu.memory_space<vmem>>, vector<1x192xf32>
    %12 = vector.broadcast %11 : vector<1x192xf32> to vector<2x192xf32>
    %13 = arith.addf %10, %12 : vector<2x192xf32>
    %14 = vector.extract_strided_slice %7 {offsets = [0, 0, 0], sizes = [1, 2, 192], strides = [1, 1, 1]} : vector<8x2x192xf32> to vector<1x2x192xf32>
    %15 = vector.shape_cast %14 : vector<1x2x192xf32> to vector<2x192xf32>
    %16 = vector.extract_strided_slice %15 {offsets = [0, 0], sizes = [2, 64], strides = [1, 1]} : vector<2x192xf32> to vector<2x64xf32>
    %17 = vector.extract_strided_slice %13 {offsets = [0, 0], sizes = [2, 64], strides = [1, 1]} : vector<2x192xf32> to vector<2x64xf32>
    %18 = arith.addf %16, %17 : vector<2x64xf32>
    %19 = arith.negf %18 : vector<2x64xf32>
    %20 = math.exp %19 : vector<2x64xf32>
    %cst_13 = arith.constant 1.000000e+00 : f32
    %21 = vector.broadcast %cst_13 : f32 to vector<2x64xf32>
    %22 = arith.addf %21, %20 : vector<2x64xf32>
    %23 = arith.divf %21, %22 : vector<2x64xf32>
    %24 = vector.extract_strided_slice %15 {offsets = [0, 64], sizes = [2, 64], strides = [1, 1]} : vector<2x192xf32> to vector<2x64xf32>
    %25 = vector.extract_strided_slice %13 {offsets = [0, 64], sizes = [2, 64], strides = [1, 1]} : vector<2x192xf32> to vector<2x64xf32>
    %26 = arith.addf %24, %25 : vector<2x64xf32>
    %27 = arith.negf %26 : vector<2x64xf32>
    %28 = math.exp %27 : vector<2x64xf32>
    %cst_14 = arith.constant 1.000000e+00 : f32
    %29 = vector.broadcast %cst_14 : f32 to vector<2x64xf32>
    %30 = arith.addf %29, %28 : vector<2x64xf32>
    %31 = arith.divf %29, %30 : vector<2x64xf32>
    %32 = vector.extract_strided_slice %15 {offsets = [0, 128], sizes = [2, 64], strides = [1, 1]} : vector<2x192xf32> to vector<2x64xf32>
    %33 = vector.extract_strided_slice %13 {offsets = [0, 128], sizes = [2, 64], strides = [1, 1]} : vector<2x192xf32> to vector<2x64xf32>
    %34 = arith.mulf %23, %33 : vector<2x64xf32>
    %35 = arith.addf %32, %34 : vector<2x64xf32>
    %36 = math.tanh %35 : vector<2x64xf32>
    %cst_15 = arith.constant 1.000000e+00 : f32
    %37 = vector.broadcast %cst_15 : f32 to vector<2x64xf32>
    %38 = arith.subf %37, %31 : vector<2x64xf32>
    %39 = arith.mulf %38, %36 : vector<2x64xf32>
    %40 = arith.mulf %31, %8 : vector<2x64xf32>
    %41 = arith.addf %39, %40 : vector<2x64xf32>
    %c0_16 = arith.constant 0 : index
    %c0_17 = arith.constant 0 : index
    %42 = vector.load %arg4[%c0_16, %c0_17] : memref<64x192xf32, #tpu.memory_space<vmem>>, vector<64x192xf32>
    %cst_18 = arith.constant dense<0.000000e+00> : vector<2x192xf32>
    %43 = tpu.matmul %41, %42, %cst_18 {dimension_numbers = #tpu.dot_dimension_numbers<[1], [0], [0], [1], [0, 0, 1, 1], [], []>} : vector<2x64xf32>, vector<64x192xf32>, vector<2x192xf32> -> vector<2x192xf32>
    %c0_19 = arith.constant 0 : index
    %c0_20 = arith.constant 0 : index
    %44 = vector.load %arg5[%c0_19, %c0_20] : memref<1x192xf32, #tpu.memory_space<vmem>>, vector<1x192xf32>
    %45 = vector.broadcast %44 : vector<1x192xf32> to vector<2x192xf32>
    %46 = arith.addf %43, %45 : vector<2x192xf32>
    %47 = vector.extract_strided_slice %7 {offsets = [1, 0, 0], sizes = [1, 2, 192], strides = [1, 1, 1]} : vector<8x2x192xf32> to vector<1x2x192xf32>
    %48 = vector.shape_cast %47 : vector<1x2x192xf32> to vector<2x192xf32>
    %49 = vector.extract_strided_slice %48 {offsets = [0, 0], sizes = [2, 64], strides = [1, 1]} : vector<2x192xf32> to vector<2x64xf32>
    %50 = vector.extract_strided_slice %46 {offsets = [0, 0], sizes = [2, 64], strides = [1, 1]} : vector<2x192xf32> to vector<2x64xf32>
    %51 = arith.addf %49, %50 : vector<2x64xf32>
    %52 = arith.negf %51 : vector<2x64xf32>
    %53 = math.exp %52 : vector<2x64xf32>
    %cst_21 = arith.constant 1.000000e+00 : f32
    %54 = vector.broadcast %cst_21 : f32 to vector<2x64xf32>
    %55 = arith.addf %54, %53 : vector<2x64xf32>
    %56 = arith.divf %54, %55 : vector<2x64xf32>
    %57 = vector.extract_strided_slice %48 {offsets = [0, 64], sizes = [2, 64], strides = [1, 1]} : vector<2x192xf32> to vector<2x64xf32>
    %58 = vector.extract_strided_slice %46 {offsets = [0, 64], sizes = [2, 64], strides = [1, 1]} : vector<2x192xf32> to vector<2x64xf32>
    %59 = arith.addf %57, %58 : vector<2x64xf32>
    %60 = arith.negf %59 : vector<2x64xf32>
    %61 = math.exp %60 : vector<2x64xf32>
    %cst_22 = arith.constant 1.000000e+00 : f32
    %62 = vector.broadcast %cst_22 : f32 to vector<2x64xf32>
    %63 = arith.addf %62, %61 : vector<2x64xf32>
    %64 = arith.divf %62, %63 : vector<2x64xf32>
    %65 = vector.extract_strided_slice %48 {offsets = [0, 128], sizes = [2, 64], strides = [1, 1]} : vector<2x192xf32> to vector<2x64xf32>
    %66 = vector.extract_strided_slice %46 {offsets = [0, 128], sizes = [2, 64], strides = [1, 1]} : vector<2x192xf32> to vector<2x64xf32>
    %67 = arith.mulf %56, %66 : vector<2x64xf32>
    %68 = arith.addf %65, %67 : vector<2x64xf32>
    %69 = math.tanh %68 : vector<2x64xf32>
    %cst_23 = arith.constant 1.000000e+00 : f32
    %70 = vector.broadcast %cst_23 : f32 to vector<2x64xf32>
    %71 = arith.subf %70, %64 : vector<2x64xf32>
    %72 = arith.mulf %71, %69 : vector<2x64xf32>
    %73 = arith.mulf %64, %41 : vector<2x64xf32>
    %74 = arith.addf %72, %73 : vector<2x64xf32>
    %c0_24 = arith.constant 0 : index
    %c0_25 = arith.constant 0 : index
    %75 = vector.load %arg4[%c0_24, %c0_25] : memref<64x192xf32, #tpu.memory_space<vmem>>, vector<64x192xf32>
    %cst_26 = arith.constant dense<0.000000e+00> : vector<2x192xf32>
    %76 = tpu.matmul %74, %75, %cst_26 {dimension_numbers = #tpu.dot_dimension_numbers<[1], [0], [0], [1], [0, 0, 1, 1], [], []>} : vector<2x64xf32>, vector<64x192xf32>, vector<2x192xf32> -> vector<2x192xf32>
    %c0_27 = arith.constant 0 : index
    %c0_28 = arith.constant 0 : index
    %77 = vector.load %arg5[%c0_27, %c0_28] : memref<1x192xf32, #tpu.memory_space<vmem>>, vector<1x192xf32>
    %78 = vector.broadcast %77 : vector<1x192xf32> to vector<2x192xf32>
    %79 = arith.addf %76, %78 : vector<2x192xf32>
    %80 = vector.extract_strided_slice %7 {offsets = [2, 0, 0], sizes = [1, 2, 192], strides = [1, 1, 1]} : vector<8x2x192xf32> to vector<1x2x192xf32>
    %81 = vector.shape_cast %80 : vector<1x2x192xf32> to vector<2x192xf32>
    %82 = vector.extract_strided_slice %81 {offsets = [0, 0], sizes = [2, 64], strides = [1, 1]} : vector<2x192xf32> to vector<2x64xf32>
    %83 = vector.extract_strided_slice %79 {offsets = [0, 0], sizes = [2, 64], strides = [1, 1]} : vector<2x192xf32> to vector<2x64xf32>
    %84 = arith.addf %82, %83 : vector<2x64xf32>
    %85 = arith.negf %84 : vector<2x64xf32>
    %86 = math.exp %85 : vector<2x64xf32>
    %cst_29 = arith.constant 1.000000e+00 : f32
    %87 = vector.broadcast %cst_29 : f32 to vector<2x64xf32>
    %88 = arith.addf %87, %86 : vector<2x64xf32>
    %89 = arith.divf %87, %88 : vector<2x64xf32>
    %90 = vector.extract_strided_slice %81 {offsets = [0, 64], sizes = [2, 64], strides = [1, 1]} : vector<2x192xf32> to vector<2x64xf32>
    %91 = vector.extract_strided_slice %79 {offsets = [0, 64], sizes = [2, 64], strides = [1, 1]} : vector<2x192xf32> to vector<2x64xf32>
    %92 = arith.addf %90, %91 : vector<2x64xf32>
    %93 = arith.negf %92 : vector<2x64xf32>
    %94 = math.exp %93 : vector<2x64xf32>
    %cst_30 = arith.constant 1.000000e+00 : f32
    %95 = vector.broadcast %cst_30 : f32 to vector<2x64xf32>
    %96 = arith.addf %95, %94 : vector<2x64xf32>
    %97 = arith.divf %95, %96 : vector<2x64xf32>
    %98 = vector.extract_strided_slice %81 {offsets = [0, 128], sizes = [2, 64], strides = [1, 1]} : vector<2x192xf32> to vector<2x64xf32>
    %99 = vector.extract_strided_slice %79 {offsets = [0, 128], sizes = [2, 64], strides = [1, 1]} : vector<2x192xf32> to vector<2x64xf32>
    %100 = arith.mulf %89, %99 : vector<2x64xf32>
    %101 = arith.addf %98, %100 : vector<2x64xf32>
    %102 = math.tanh %101 : vector<2x64xf32>
    %cst_31 = arith.constant 1.000000e+00 : f32
    %103 = vector.broadcast %cst_31 : f32 to vector<2x64xf32>
    %104 = arith.subf %103, %97 : vector<2x64xf32>
    %105 = arith.mulf %104, %102 : vector<2x64xf32>
    %106 = arith.mulf %97, %74 : vector<2x64xf32>
    %107 = arith.addf %105, %106 : vector<2x64xf32>
    %c0_32 = arith.constant 0 : index
    %c0_33 = arith.constant 0 : index
    %108 = vector.load %arg4[%c0_32, %c0_33] : memref<64x192xf32, #tpu.memory_space<vmem>>, vector<64x192xf32>
    %cst_34 = arith.constant dense<0.000000e+00> : vector<2x192xf32>
    %109 = tpu.matmul %107, %108, %cst_34 {dimension_numbers = #tpu.dot_dimension_numbers<[1], [0], [0], [1], [0, 0, 1, 1], [], []>} : vector<2x64xf32>, vector<64x192xf32>, vector<2x192xf32> -> vector<2x192xf32>
    %c0_35 = arith.constant 0 : index
    %c0_36 = arith.constant 0 : index
    %110 = vector.load %arg5[%c0_35, %c0_36] : memref<1x192xf32, #tpu.memory_space<vmem>>, vector<1x192xf32>
    %111 = vector.broadcast %110 : vector<1x192xf32> to vector<2x192xf32>
    %112 = arith.addf %109, %111 : vector<2x192xf32>
    %113 = vector.extract_strided_slice %7 {offsets = [3, 0, 0], sizes = [1, 2, 192], strides = [1, 1, 1]} : vector<8x2x192xf32> to vector<1x2x192xf32>
    %114 = vector.shape_cast %113 : vector<1x2x192xf32> to vector<2x192xf32>
    %115 = vector.extract_strided_slice %114 {offsets = [0, 0], sizes = [2, 64], strides = [1, 1]} : vector<2x192xf32> to vector<2x64xf32>
    %116 = vector.extract_strided_slice %112 {offsets = [0, 0], sizes = [2, 64], strides = [1, 1]} : vector<2x192xf32> to vector<2x64xf32>
    %117 = arith.addf %115, %116 : vector<2x64xf32>
    %118 = arith.negf %117 : vector<2x64xf32>
    %119 = math.exp %118 : vector<2x64xf32>
    %cst_37 = arith.constant 1.000000e+00 : f32
    %120 = vector.broadcast %cst_37 : f32 to vector<2x64xf32>
    %121 = arith.addf %120, %119 : vector<2x64xf32>
    %122 = arith.divf %120, %121 : vector<2x64xf32>
    %123 = vector.extract_strided_slice %114 {offsets = [0, 64], sizes = [2, 64], strides = [1, 1]} : vector<2x192xf32> to vector<2x64xf32>
    %124 = vector.extract_strided_slice %112 {offsets = [0, 64], sizes = [2, 64], strides = [1, 1]} : vector<2x192xf32> to vector<2x64xf32>
    %125 = arith.addf %123, %124 : vector<2x64xf32>
    %126 = arith.negf %125 : vector<2x64xf32>
    %127 = math.exp %126 : vector<2x64xf32>
    %cst_38 = arith.constant 1.000000e+00 : f32
    %128 = vector.broadcast %cst_38 : f32 to vector<2x64xf32>
    %129 = arith.addf %128, %127 : vector<2x64xf32>
    %130 = arith.divf %128, %129 : vector<2x64xf32>
    %131 = vector.extract_strided_slice %114 {offsets = [0, 128], sizes = [2, 64], strides = [1, 1]} : vector<2x192xf32> to vector<2x64xf32>
    %132 = vector.extract_strided_slice %112 {offsets = [0, 128], sizes = [2, 64], strides = [1, 1]} : vector<2x192xf32> to vector<2x64xf32>
    %133 = arith.mulf %122, %132 : vector<2x64xf32>
    %134 = arith.addf %131, %133 : vector<2x64xf32>
    %135 = math.tanh %134 : vector<2x64xf32>
    %cst_39 = arith.constant 1.000000e+00 : f32
    %136 = vector.broadcast %cst_39 : f32 to vector<2x64xf32>
    %137 = arith.subf %136, %130 : vector<2x64xf32>
    %138 = arith.mulf %137, %135 : vector<2x64xf32>
    %139 = arith.mulf %130, %107 : vector<2x64xf32>
    %140 = arith.addf %138, %139 : vector<2x64xf32>
    %c0_40 = arith.constant 0 : index
    %c0_41 = arith.constant 0 : index
    %141 = vector.load %arg4[%c0_40, %c0_41] : memref<64x192xf32, #tpu.memory_space<vmem>>, vector<64x192xf32>
    %cst_42 = arith.constant dense<0.000000e+00> : vector<2x192xf32>
    %142 = tpu.matmul %140, %141, %cst_42 {dimension_numbers = #tpu.dot_dimension_numbers<[1], [0], [0], [1], [0, 0, 1, 1], [], []>} : vector<2x64xf32>, vector<64x192xf32>, vector<2x192xf32> -> vector<2x192xf32>
    %c0_43 = arith.constant 0 : index
    %c0_44 = arith.constant 0 : index
    %143 = vector.load %arg5[%c0_43, %c0_44] : memref<1x192xf32, #tpu.memory_space<vmem>>, vector<1x192xf32>
    %144 = vector.broadcast %143 : vector<1x192xf32> to vector<2x192xf32>
    %145 = arith.addf %142, %144 : vector<2x192xf32>
    %146 = vector.extract_strided_slice %7 {offsets = [4, 0, 0], sizes = [1, 2, 192], strides = [1, 1, 1]} : vector<8x2x192xf32> to vector<1x2x192xf32>
    %147 = vector.shape_cast %146 : vector<1x2x192xf32> to vector<2x192xf32>
    %148 = vector.extract_strided_slice %147 {offsets = [0, 0], sizes = [2, 64], strides = [1, 1]} : vector<2x192xf32> to vector<2x64xf32>
    %149 = vector.extract_strided_slice %145 {offsets = [0, 0], sizes = [2, 64], strides = [1, 1]} : vector<2x192xf32> to vector<2x64xf32>
    %150 = arith.addf %148, %149 : vector<2x64xf32>
    %151 = arith.negf %150 : vector<2x64xf32>
    %152 = math.exp %151 : vector<2x64xf32>
    %cst_45 = arith.constant 1.000000e+00 : f32
    %153 = vector.broadcast %cst_45 : f32 to vector<2x64xf32>
    %154 = arith.addf %153, %152 : vector<2x64xf32>
    %155 = arith.divf %153, %154 : vector<2x64xf32>
    %156 = vector.extract_strided_slice %147 {offsets = [0, 64], sizes = [2, 64], strides = [1, 1]} : vector<2x192xf32> to vector<2x64xf32>
    %157 = vector.extract_strided_slice %145 {offsets = [0, 64], sizes = [2, 64], strides = [1, 1]} : vector<2x192xf32> to vector<2x64xf32>
    %158 = arith.addf %156, %157 : vector<2x64xf32>
    %159 = arith.negf %158 : vector<2x64xf32>
    %160 = math.exp %159 : vector<2x64xf32>
    %cst_46 = arith.constant 1.000000e+00 : f32
    %161 = vector.broadcast %cst_46 : f32 to vector<2x64xf32>
    %162 = arith.addf %161, %160 : vector<2x64xf32>
    %163 = arith.divf %161, %162 : vector<2x64xf32>
    %164 = vector.extract_strided_slice %147 {offsets = [0, 128], sizes = [2, 64], strides = [1, 1]} : vector<2x192xf32> to vector<2x64xf32>
    %165 = vector.extract_strided_slice %145 {offsets = [0, 128], sizes = [2, 64], strides = [1, 1]} : vector<2x192xf32> to vector<2x64xf32>
    %166 = arith.mulf %155, %165 : vector<2x64xf32>
    %167 = arith.addf %164, %166 : vector<2x64xf32>
    %168 = math.tanh %167 : vector<2x64xf32>
    %cst_47 = arith.constant 1.000000e+00 : f32
    %169 = vector.broadcast %cst_47 : f32 to vector<2x64xf32>
    %170 = arith.subf %169, %163 : vector<2x64xf32>
    %171 = arith.mulf %170, %168 : vector<2x64xf32>
    %172 = arith.mulf %163, %140 : vector<2x64xf32>
    %173 = arith.addf %171, %172 : vector<2x64xf32>
    %c0_48 = arith.constant 0 : index
    %c0_49 = arith.constant 0 : index
    %174 = vector.load %arg4[%c0_48, %c0_49] : memref<64x192xf32, #tpu.memory_space<vmem>>, vector<64x192xf32>
    %cst_50 = arith.constant dense<0.000000e+00> : vector<2x192xf32>
    %175 = tpu.matmul %173, %174, %cst_50 {dimension_numbers = #tpu.dot_dimension_numbers<[1], [0], [0], [1], [0, 0, 1, 1], [], []>} : vector<2x64xf32>, vector<64x192xf32>, vector<2x192xf32> -> vector<2x192xf32>
    %c0_51 = arith.constant 0 : index
    %c0_52 = arith.constant 0 : index
    %176 = vector.load %arg5[%c0_51, %c0_52] : memref<1x192xf32, #tpu.memory_space<vmem>>, vector<1x192xf32>
    %177 = vector.broadcast %176 : vector<1x192xf32> to vector<2x192xf32>
    %178 = arith.addf %175, %177 : vector<2x192xf32>
    %179 = vector.extract_strided_slice %7 {offsets = [5, 0, 0], sizes = [1, 2, 192], strides = [1, 1, 1]} : vector<8x2x192xf32> to vector<1x2x192xf32>
    %180 = vector.shape_cast %179 : vector<1x2x192xf32> to vector<2x192xf32>
    %181 = vector.extract_strided_slice %180 {offsets = [0, 0], sizes = [2, 64], strides = [1, 1]} : vector<2x192xf32> to vector<2x64xf32>
    %182 = vector.extract_strided_slice %178 {offsets = [0, 0], sizes = [2, 64], strides = [1, 1]} : vector<2x192xf32> to vector<2x64xf32>
    %183 = arith.addf %181, %182 : vector<2x64xf32>
    %184 = arith.negf %183 : vector<2x64xf32>
    %185 = math.exp %184 : vector<2x64xf32>
    %cst_53 = arith.constant 1.000000e+00 : f32
    %186 = vector.broadcast %cst_53 : f32 to vector<2x64xf32>
    %187 = arith.addf %186, %185 : vector<2x64xf32>
    %188 = arith.divf %186, %187 : vector<2x64xf32>
    %189 = vector.extract_strided_slice %180 {offsets = [0, 64], sizes = [2, 64], strides = [1, 1]} : vector<2x192xf32> to vector<2x64xf32>
    %190 = vector.extract_strided_slice %178 {offsets = [0, 64], sizes = [2, 64], strides = [1, 1]} : vector<2x192xf32> to vector<2x64xf32>
    %191 = arith.addf %189, %190 : vector<2x64xf32>
    %192 = arith.negf %191 : vector<2x64xf32>
    %193 = math.exp %192 : vector<2x64xf32>
    %cst_54 = arith.constant 1.000000e+00 : f32
    %194 = vector.broadcast %cst_54 : f32 to vector<2x64xf32>
    %195 = arith.addf %194, %193 : vector<2x64xf32>
    %196 = arith.divf %194, %195 : vector<2x64xf32>
    %197 = vector.extract_strided_slice %180 {offsets = [0, 128], sizes = [2, 64], strides = [1, 1]} : vector<2x192xf32> to vector<2x64xf32>
    %198 = vector.extract_strided_slice %178 {offsets = [0, 128], sizes = [2, 64], strides = [1, 1]} : vector<2x192xf32> to vector<2x64xf32>
    %199 = arith.mulf %188, %198 : vector<2x64xf32>
    %200 = arith.addf %197, %199 : vector<2x64xf32>
    %201 = math.tanh %200 : vector<2x64xf32>
    %cst_55 = arith.constant 1.000000e+00 : f32
    %202 = vector.broadcast %cst_55 : f32 to vector<2x64xf32>
    %203 = arith.subf %202, %196 : vector<2x64xf32>
    %204 = arith.mulf %203, %201 : vector<2x64xf32>
    %205 = arith.mulf %196, %173 : vector<2x64xf32>
    %206 = arith.addf %204, %205 : vector<2x64xf32>
    %c0_56 = arith.constant 0 : index
    %c0_57 = arith.constant 0 : index
    %207 = vector.load %arg4[%c0_56, %c0_57] : memref<64x192xf32, #tpu.memory_space<vmem>>, vector<64x192xf32>
    %cst_58 = arith.constant dense<0.000000e+00> : vector<2x192xf32>
    %208 = tpu.matmul %206, %207, %cst_58 {dimension_numbers = #tpu.dot_dimension_numbers<[1], [0], [0], [1], [0, 0, 1, 1], [], []>} : vector<2x64xf32>, vector<64x192xf32>, vector<2x192xf32> -> vector<2x192xf32>
    %c0_59 = arith.constant 0 : index
    %c0_60 = arith.constant 0 : index
    %209 = vector.load %arg5[%c0_59, %c0_60] : memref<1x192xf32, #tpu.memory_space<vmem>>, vector<1x192xf32>
    %210 = vector.broadcast %209 : vector<1x192xf32> to vector<2x192xf32>
    %211 = arith.addf %208, %210 : vector<2x192xf32>
    %212 = vector.extract_strided_slice %7 {offsets = [6, 0, 0], sizes = [1, 2, 192], strides = [1, 1, 1]} : vector<8x2x192xf32> to vector<1x2x192xf32>
    %213 = vector.shape_cast %212 : vector<1x2x192xf32> to vector<2x192xf32>
    %214 = vector.extract_strided_slice %213 {offsets = [0, 0], sizes = [2, 64], strides = [1, 1]} : vector<2x192xf32> to vector<2x64xf32>
    %215 = vector.extract_strided_slice %211 {offsets = [0, 0], sizes = [2, 64], strides = [1, 1]} : vector<2x192xf32> to vector<2x64xf32>
    %216 = arith.addf %214, %215 : vector<2x64xf32>
    %217 = arith.negf %216 : vector<2x64xf32>
    %218 = math.exp %217 : vector<2x64xf32>
    %cst_61 = arith.constant 1.000000e+00 : f32
    %219 = vector.broadcast %cst_61 : f32 to vector<2x64xf32>
    %220 = arith.addf %219, %218 : vector<2x64xf32>
    %221 = arith.divf %219, %220 : vector<2x64xf32>
    %222 = vector.extract_strided_slice %213 {offsets = [0, 64], sizes = [2, 64], strides = [1, 1]} : vector<2x192xf32> to vector<2x64xf32>
    %223 = vector.extract_strided_slice %211 {offsets = [0, 64], sizes = [2, 64], strides = [1, 1]} : vector<2x192xf32> to vector<2x64xf32>
    %224 = arith.addf %222, %223 : vector<2x64xf32>
    %225 = arith.negf %224 : vector<2x64xf32>
    %226 = math.exp %225 : vector<2x64xf32>
    %cst_62 = arith.constant 1.000000e+00 : f32
    %227 = vector.broadcast %cst_62 : f32 to vector<2x64xf32>
    %228 = arith.addf %227, %226 : vector<2x64xf32>
    %229 = arith.divf %227, %228 : vector<2x64xf32>
    %230 = vector.extract_strided_slice %213 {offsets = [0, 128], sizes = [2, 64], strides = [1, 1]} : vector<2x192xf32> to vector<2x64xf32>
    %231 = vector.extract_strided_slice %211 {offsets = [0, 128], sizes = [2, 64], strides = [1, 1]} : vector<2x192xf32> to vector<2x64xf32>
    %232 = arith.mulf %221, %231 : vector<2x64xf32>
    %233 = arith.addf %230, %232 : vector<2x64xf32>
    %234 = math.tanh %233 : vector<2x64xf32>
    %cst_63 = arith.constant 1.000000e+00 : f32
    %235 = vector.broadcast %cst_63 : f32 to vector<2x64xf32>
    %236 = arith.subf %235, %229 : vector<2x64xf32>
    %237 = arith.mulf %236, %234 : vector<2x64xf32>
    %238 = arith.mulf %229, %206 : vector<2x64xf32>
    %239 = arith.addf %237, %238 : vector<2x64xf32>
    %c0_64 = arith.constant 0 : index
    %c0_65 = arith.constant 0 : index
    %240 = vector.load %arg4[%c0_64, %c0_65] : memref<64x192xf32, #tpu.memory_space<vmem>>, vector<64x192xf32>
    %cst_66 = arith.constant dense<0.000000e+00> : vector<2x192xf32>
    %241 = tpu.matmul %239, %240, %cst_66 {dimension_numbers = #tpu.dot_dimension_numbers<[1], [0], [0], [1], [0, 0, 1, 1], [], []>} : vector<2x64xf32>, vector<64x192xf32>, vector<2x192xf32> -> vector<2x192xf32>
    %c0_67 = arith.constant 0 : index
    %c0_68 = arith.constant 0 : index
    %242 = vector.load %arg5[%c0_67, %c0_68] : memref<1x192xf32, #tpu.memory_space<vmem>>, vector<1x192xf32>
    %243 = vector.broadcast %242 : vector<1x192xf32> to vector<2x192xf32>
    %244 = arith.addf %241, %243 : vector<2x192xf32>
    %245 = vector.extract_strided_slice %7 {offsets = [7, 0, 0], sizes = [1, 2, 192], strides = [1, 1, 1]} : vector<8x2x192xf32> to vector<1x2x192xf32>
    %246 = vector.shape_cast %245 : vector<1x2x192xf32> to vector<2x192xf32>
    %247 = vector.extract_strided_slice %246 {offsets = [0, 0], sizes = [2, 64], strides = [1, 1]} : vector<2x192xf32> to vector<2x64xf32>
    %248 = vector.extract_strided_slice %244 {offsets = [0, 0], sizes = [2, 64], strides = [1, 1]} : vector<2x192xf32> to vector<2x64xf32>
    %249 = arith.addf %247, %248 : vector<2x64xf32>
    %250 = arith.negf %249 : vector<2x64xf32>
    %251 = math.exp %250 : vector<2x64xf32>
    %cst_69 = arith.constant 1.000000e+00 : f32
    %252 = vector.broadcast %cst_69 : f32 to vector<2x64xf32>
    %253 = arith.addf %252, %251 : vector<2x64xf32>
    %254 = arith.divf %252, %253 : vector<2x64xf32>
    %255 = vector.extract_strided_slice %246 {offsets = [0, 64], sizes = [2, 64], strides = [1, 1]} : vector<2x192xf32> to vector<2x64xf32>
    %256 = vector.extract_strided_slice %244 {offsets = [0, 64], sizes = [2, 64], strides = [1, 1]} : vector<2x192xf32> to vector<2x64xf32>
    %257 = arith.addf %255, %256 : vector<2x64xf32>
    %258 = arith.negf %257 : vector<2x64xf32>
    %259 = math.exp %258 : vector<2x64xf32>
    %cst_70 = arith.constant 1.000000e+00 : f32
    %260 = vector.broadcast %cst_70 : f32 to vector<2x64xf32>
    %261 = arith.addf %260, %259 : vector<2x64xf32>
    %262 = arith.divf %260, %261 : vector<2x64xf32>
    %263 = vector.extract_strided_slice %246 {offsets = [0, 128], sizes = [2, 64], strides = [1, 1]} : vector<2x192xf32> to vector<2x64xf32>
    %264 = vector.extract_strided_slice %244 {offsets = [0, 128], sizes = [2, 64], strides = [1, 1]} : vector<2x192xf32> to vector<2x64xf32>
    %265 = arith.mulf %254, %264 : vector<2x64xf32>
    %266 = arith.addf %263, %265 : vector<2x64xf32>
    %267 = math.tanh %266 : vector<2x64xf32>
    %cst_71 = arith.constant 1.000000e+00 : f32
    %268 = vector.broadcast %cst_71 : f32 to vector<2x64xf32>
    %269 = arith.subf %268, %262 : vector<2x64xf32>
    %270 = arith.mulf %269, %267 : vector<2x64xf32>
    %271 = arith.mulf %262, %239 : vector<2x64xf32>
    %272 = arith.addf %270, %271 : vector<2x64xf32>
    %c0_72 = arith.constant 0 : index
    %c0_73 = arith.constant 0 : index
    %273 = vector.load %arg7[%c0_72, %c0_73] : memref<2x64xf32, #tpu.memory_space<vmem>>, vector<2x64xf32>
    tpu.vector_store %arg7[%c0_72, %c0_73], %272 {strides = array<i32>} : memref<2x64xf32, #tpu.memory_space<vmem>>, vector<2x64xf32>,
    %274 = vector.shape_cast %41 : vector<2x64xf32> to vector<2x1x64xf32>
    %275 = vector.shape_cast %74 : vector<2x64xf32> to vector<2x1x64xf32>
    %276 = vector.shape_cast %107 : vector<2x64xf32> to vector<2x1x64xf32>
    %277 = vector.shape_cast %140 : vector<2x64xf32> to vector<2x1x64xf32>
    %278 = vector.shape_cast %173 : vector<2x64xf32> to vector<2x1x64xf32>
    %279 = vector.shape_cast %206 : vector<2x64xf32> to vector<2x1x64xf32>
    %280 = vector.shape_cast %239 : vector<2x64xf32> to vector<2x1x64xf32>
    %281 = vector.shape_cast %272 : vector<2x64xf32> to vector<2x1x64xf32>
    %282 = tpu.concatenate %274, %275, %276, %277, %278, %279, %280, %281 in 1 : vector<2x1x64xf32>, vector<2x1x64xf32>, vector<2x1x64xf32>, vector<2x1x64xf32>, vector<2x1x64xf32>, vector<2x1x64xf32>, vector<2x1x64xf32>, vector<2x1x64xf32> -> vector<2x8x64xf32>
    %c0_74 = arith.constant 0 : index
    %c0_75 = arith.constant 0 : index
    %c0_76 = arith.constant 0 : index
    %283 = vector.load %arg6[%c0_74, %c0_75, %c0_76] : memref<2x8x64xf32, #tpu.memory_space<vmem>>, vector<2x8x64xf32>
    tpu.vector_store %arg6[%c0_74, %c0_75, %c0_76], %282 {strides = array<i32>} : memref<2x8x64xf32, #tpu.memory_space<vmem>>, vector<2x8x64xf32>,
    return
  }
}

</mosaic_0001>

<bundles_post_ra>
// kernel: seq2seq_forward.5
= control target key start
LH: loop header
LB: loop body
LE: loop exit
PB: predicated region body
PF: predicated region fallthrough
CT: control target
= control target key end

     0   :  { %12 = vsyncpa [#allocation3], 0  ;;  %s1064_s0 = inlined_call_operand.vmem [shape: f32[2,10,64], index: 0, kind: input, shape index: {}]   ;;  %s1065_s1 = inlined_call_operand.vmem [shape: f32[2,8,64], index: 1, kind: input, shape index: {}]   ;;  %s1066_s2 = inlined_call_operand.vmem [shape: bf16[64,64], index: 2, kind: input, shape index: {}]   ;;  %s1067_s3 = inlined_call_operand.vmem [shape: bf16[64,64], index: 3, kind: input, shape index: {}]   ;;  %s1068_s4 = inlined_call_operand.vmem [shape: f32[1,64], index: 4, kind: input, shape index: {}]   ;;  %s1069_s5 = inlined_call_operand.hbm [shape: bf16[64,128], index: 5, kind: input, shape index: {}]   ;;  %s1070_s6 = inlined_call_operand.vmem [shape: f32[1,128], index: 6, kind: input, shape index: {}]   ;;  %s1071_s7 = inlined_call_operand.hbm [shape: f32[2,8,128], index: 7, kind: output, shape index: {}]  }
   0x1   :  { %13 = vsyncpa [#allocation4], 0 }
   0x2   :  { %15 = vsyncpa [#allocation4 + $0x1], 0  ;;  %s927_s24 = smov 0   ;;  %s929_s25 = smov 0  }
   0x3   :  { %s931_s26 = smov 0   ;;  %s933_s27 = smov 0  }
   0x4 LB: > { %s948_s28 = sadd.s32 4294967295, %s882_s27   ;;  %s641_s29 = sadd.s32 4294967294, %s882_s27   ;;  %s882_s27 = sphi %s933_s27, %s1077_s27   ;;  %s878_s26 = sphi %s931_s26, %s1076_s26   ;;  %s874_s25 = sphi %s929_s25, %s1075_s25   ;;  %s870_s24 = sphi %s927_s24, %s1074_s24  }
   0x5   : > { %s952_s30 = sadd.s32 1, %s882_s27   ;;  %s185_s8 = sadd.s32 1, %s878_s26 }
   0x6   : > { %s182_s9 = ssub.s32 %s882_s27, %s952_s30  ;;  %p195_p0 = scmp.ne.s32.totalorder %s878_s26, %s874_s25 }
   0x7   : > { %p183_p1 = scmp.eq.s32.totalorder %s182_s9, 0  ;;  %p196_p2 = scmp.eq.s32.totalorder %s948_s28, 1 }
   0x8   : > { %p201_p3 = scmp.ne.s32.totalorder %s874_s25, %s870_s24  ;;  %p202_p4 = scmp.eq.s32.totalorder %s641_s29, 1 }
   0x9   : > { %s963_s10 = scalar_select %p183_p1, %s878_s26, %s185_s8  }
   0xa   : > { %p965_p5 = por %p196_p2, %p195_p0  ;;  %p969_p6 = por %p202_p4, %p201_p3 }
   0xb   : > { %p642_p7 = scmp.ge.s32.totalorder %s882_s27, 1  ;;  %p209_p8 = scmp.lt.s32.totalorder %s882_s27, 3 }
   0xc   : > { %p738_p9 = scmp.eq.s32.totalorder %s948_s28, 0  ;;  %s229_s15 = sshll.u32 %s1069_s5, 4  ;;  %s230_s15 = int_to_ptr.hbm [resolvable:$true] %s229_s15 }
   0xd   : > { %p210_p10 = pnand %p642_p7, %p209_p8  ;;  %s884_s16 = smov [#allocation2]  }
   0xe   : > { %s231_s17 = sshll.u32 %s884_s16, 4  ;;  %s885_s18 = smov 64   ;;  %s232_s17 = int_to_ptr.vmem [resolvable:$true] %s231_s17 }
   0xf   : > { %p730_p11 = pneg %p210_p10  ;;  %s886_s19 = smov 4  }
  0x10   : > { %265 = sbr.rel (%p210_p10) target bundleno = 823 (0x337), region = 48 }
  0x11   : > { %p731_p12 = pnand %p738_p9, %p730_p11 }
  0x13   : > { %733 = dma.hbm_to_vmem [thread:$0]  (!%p731_p12), %s230_s15, 512, %s232_s17, [#allocation3], %s885_s18, %s885_s18, %s886_s19  }
  0x15   : > { %861 = dma.done.wait (%p738_p9), [#allocation3], 512  }
  0x16   : > { %863 = vsyncadd (%p738_p9), [#allocation3], 4294966784  ;;  %p302_p13 = scmp.lt.s32.totalorder %s948_s28, 1  ;;  %vm315_vm0 = vcmask 523264   ;;  %vm345_vm1 = vcmask 80896   ;;  %vm360_vm2 = vcmask 1041408  }
  0x17   : > { %v719_v10 = vld [vmem:[%s1067_s3 + $0x18] sm:$0xff]  ;;  %v718_v12 = vld [vmem:[%s1067_s3 + $0x10] sm:$0xff]  ;;  %v717_v14 = vld [vmem:[%s1067_s3 + $0x8] sm:$0xff]  ;;  %s299_s19 = sand.u32 1, %s874_s25   ;;  %s836_s22 = scalar_lea.hbm %s1071_s7, 16 }
  0x18   : > { %s303_s20 = scalar_select %p302_p13, %s948_s28, 1  ;;  %v715_v11 = vld [vmem:[%s1066_s2 + $0x18] sm:$0xff]  ;;  %434 = vmatpush.bf16.msra.mxu2 %v719_v10  ;;  %v714_v13 = vld [vmem:[%s1066_s2 + $0x10] sm:$0xff]  ;;  %v716_v15 = vld [vmem:[%s1067_s3] sm:$0xff] }
  0x19   : > { %474 = vmatpush.bf16.msra.mxu3 %v715_v11  ;;  %v713_v21 = vld [vmem:[%s1066_s2 + $0x8] sm:$0xff]  ;;  %v712_v22 = vld [vmem:[%s1066_s2] sm:$0xff]  ;;  %v723_v26 = vld [vmem:[#allocation2 + $0x18] sm:$0xff]  ;;  %s543_s16 = scalar_lea.sflag [#allocation4], %s299_s19 }
  0x1a   : > { %s711_s21 = sshll.u32 %s303_s20, 4  ;;  %s650_s8 = sshll.u32 %s303_s20, 3  ;;  %532 = vmatpush.bf16.msra.mxu1 %v723_v26  ;;  %v722_v27 = vld [vmem:[#allocation2 + $0x10] sm:$0xff]  ;;  %v721_v29 = vld [vmem:[#allocation2 + $0x8] sm:$0xff]  ;;  %v720_v31 = vld [vmem:[#allocation2] sm:$0xff] }
  0x1b   : > { %s306_s29 = scalar_lea.vmem %s1064_s0, %s711_s21  ;;  %s310_s14 = scalar_lea.vmem %s1065_s1, %s650_s8  ;;  %v776_v32 = vld [vmem:[%s1068_s4] ss:$0 sm:$0xff] }
  0x1c   : > { %v313_v0 = vld [vmem:[%s306_s29 + $0x8] sm:$0x3]  ;;  %v312_v1 = vld [vmem:[%s306_s29] sm:$0xff]  ;;  %435 = vmatpush.bf16.msra.mxu2 %v718_v12  ;;  %s708_s20 = sshll.u32 %s948_s28, 3  ;;  %s647_s21 = sshll.u32 %s299_s19, 3 }
  0x1d   : > { %651 = vmatpush.xpose.msk.msra.mxu0 %vm315_vm0, %v313_v0  ;;  %v314_v2 = vld [vmem:[%s310_s14] sm:$0xff]  ;;  %475 = vmatpush.bf16.msra.mxu3 %v714_v13  ;;  %s553_s29 = scalar_lea.hbm %s1071_s7, %s708_s20  ;;  %s301_s13 = scalar_lea.vmem [#allocation5], %s647_s21 }
  0x1e   : > { %533 = vmatpush.bf16.msra.mxu1 %v722_v27  ;;  %v777_v38 = vld [vmem:[%s1070_s6] ss:$0 sm:$0xff]  ;;  %s555_s14 = sshll.u32 %s301_s13, 4  ;;  %s557_s15 = sshll.u32 %s553_s29, 4  ;;  %s556_s14 = int_to_ptr.vmem [resolvable:$true] %s555_s14  ;;  %s558_s15 = int_to_ptr.hbm [resolvable:$true] %s557_s15 }
  0x1f   : > { %s830_s28 = sshra.s32 %s558_s15, 4  ;;  %s831_s28 = int_to_ptr.hbm [resolvable:$true] %s830_s28 }
  0x20   : > { %436 = vmatpush.bf16.msra.mxu2 %v717_v14  ;;  %s832_s17 = scalar_lea.hbm %s831_s28, 8  ;;  %p837_p3 = scmp.lt.s32.totalorder %s831_s28, %s1071_s7 }
  0x21   : > { %652 = vmatpush.xpose.msk.msra.mxu0 %vm315_vm0, %v312_v1  ;;  %476 = vmatpush.bf16.msra.mxu3 %v713_v21  ;;  %p833_p0 = scmp.ne.s32.totalorder %s831_s28, %s832_s17  ;;  %p838_p4 = scmp.lt.s32.totalorder %s836_s22, %s832_s17 }
  0x22   : > { %534 = vmatpush.bf16.msra.mxu1 %v721_v29 }
  0x23   : > { %p834_p1 = pnand %p833_p0, %p965_p5  ;;  %p839_p7 = por %p838_p4, %p837_p3 }
  0x24   : > { %653 = vmatmul.msk.f32.vlgmr.msra.gmra.mxu0 %vm315_vm0, %v314_v2  ;;  %437 = vmatpush.bf16.msra.mxu2 %v716_v15 }
  0x25   : > { %654 = vmatpush.msk.msrb.mxu0 %vm360_vm2, %v313_v0  ;;  %477 = vmatpush.bf16.msra.mxu3 %v712_v22  ;;  %p835_p2 = pneg %p834_p1 }
  0x26   : > { %535 = vmatpush.bf16.msra.mxu1 %v720_v31 }
  0x27   : > { %378 = vmatpush.msrb.mxu0 %v312_v1  ;;  %p840_p8 = pnand %p839_p7, %p835_p2 }
  0xa1   : > { %v342_v3 = vpop.f32.mrf.mxu0 }
  0xa2   : > { %v346_v4 = vsel %vm345_vm1, %v342_v3, -inf }
  0xa3   : > { %347 = vmax.xlane.f32.xlu0 %v346_v4 }
 0x116   : > { %v348_v5 = vpop.xlane.xlu0 %347 }
 0x117   : > { %v349_v6 = vsub.f32 %v342_v3, %v348_v5 }
 0x119   : > { %v350_v7 = vmul.f32 1.442695, %v349_v6 }
 0x11b   : > { %778 = vpow2.f32 %v350_v7 }
 0x121   : > { %v779_v8 = vpop.eup %778 }
 0x122   : > { %v352_v9 = vsel %vm345_vm1, %v779_v8, 0.0 }
 0x123   : > { %353 = vadd.xlane.f32.xlu0 %v352_v9 }
 0x196   : > { %v354_v16 = vpop.xlane.xlu0 %353 }
 0x197   : > { %780 = vrcp.f32 %v354_v16 }
 0x198   : > { %782 = vtanh.f32 %v314_v2 }
 0x19d   : > { %v781_v17 = vpop.eup %780 }
 0x19e   : > { %v356_v18 = vmul.f32 %v781_v17, %v779_v8  ;;  %v783_v19 = vpop.eup %782 }
 0x19f   : > { %v394_v20 = vpack.c.bf16 %v783_v19, %v783_v19 }
 0x1a0   : > { %655 = vmatmul.msk.f32.vlgmr.msrb.gmra.mxu0 %vm345_vm1, %v356_v18 }
 0x1a1   : > { %672 = vmatmul.msk.bf16.vlgmr.msra.gmra.mxu2 %vm315_vm0, %v394_v20 }
 0x21d   : > { %v380_v23 = vpop.f32.mrf.mxu0 }
 0x21e   : > { %784 = vtanh.f32 %v380_v23 }
 0x224   : > { %v785_v24 = vpop.eup %784  ;;  %v439_v28 = vpop.f32.mrf.mxu2 }
 0x225   : > { %v384_v25 = vpack.c.bf16 %v785_v24, %v785_v24 }
 0x227   : > { %689 = vmatmul.msk.bf16.vlgmr.msra.gmra.mxu3 %vm315_vm0, %v384_v25 }
 0x22c   : > { %v441_v30 = vpop.f32.mrf.mxu2 }
 0x2aa   : > { %v479_v33 = vpop.f32.mrf.mxu3 }
 0x2ab   : > { %v480_v34 = vadd.f32 %v479_v33, %v439_v28 }
 0x2ad   : > { %v487_v35 = vadd.f32 %v776_v32, %v480_v34 }
 0x2af   : > { %v488_v36 = vpack.c.bf16 %v487_v35, %v487_v35 }
 0x2b1   : > { %706 = vmatmul.msk.bf16.vlgmr.msra.gmra.mxu1 %vm315_vm0, %v488_v36 }
 0x2b2   : > { %v481_v37 = vpop.f32.mrf.mxu3 }
 0x32e   : > { %v537_v39 = vpop.f32.mrf.mxu1 }
 0x32f   : > { %v538_v40 = vadd.f32 %v777_v38, %v537_v39 }
 0x331   : > { %541 = vst [vmem:[%s301_s13] sm:$0xff] %v538_v40 }
 0x332   : > { %843 = shalt.err (!%p840_p8)
}
 0x333   : > { %728 = dma.vmem_to_hbm [thread:$0]  (%p965_p5), %s556_s14, 128, %s558_s15, %s543_s16  }
 0x336   : > { %v539_v41 = vpop.f32.mrf.mxu1 }
 0x337 PF: > { %p740_p9 = scmp.ge.s32.totalorder %s882_s27, 2  ;;  %s569_s19 = sand.u32 1, %s870_s24  }
 0x338   : > { %s570_s29 = scalar_lea.sflag [#allocation4], %s569_s19 }
 0x339   : > { %p735_p10 = pnand %p740_p9, %p969_p6 }
 0x33b   : > { %p736_p11 = pneg %p735_p10 }
 0x33d   : > { %865 = dma.done.wait (%p736_p11), %s570_s29, 128  }
 0x33e   : > { %867 = vsyncadd (%p736_p11), %s570_s29, 4294967168  ;;  %p18_p12 = scmp.ge.s32.totalorder %s952_s30, 4   ;;  %s1074_s24 = smov %s874_s25 }
 0x33f   : > { %s1075_s25 = smov %s878_s26  ;;  %s1076_s26 = smov %s963_s10 }
 0x340   : > { %s1077_s27 = smov %s952_s30  ;;  %20 = sbr.rel (!%p18_p12) target bundleno = 4 (0x4), region = 91 }
 0x345   :  { %576 = vsyncpa [#allocation3], 1 }
 0x346   :  { %578 = vsyncpa [#allocation3 + $0x1], 1 }
 0x347   :  { %579 = vsyncpa [#allocation4], 1 }
 0x348   :  { %581 = vsyncpa [#allocation4 + $0x1], 1 }

// kernel: seq2seq_forward.4
= control target key start
LH: loop header
LB: loop body
LE: loop exit
PB: predicated region body
PF: predicated region fallthrough
CT: control target
= control target key end

     0   :  { %s1649_s0 = inlined_call_operand.vmem [shape: bf16[8,2,32], index: 0, kind: input, shape index: {}]   ;;  %s1650_s1 = inlined_call_operand.vmem [shape: f32[2,64], index: 1, kind: input, shape index: {}]   ;;  %s1651_s2 = inlined_call_operand.vmem [shape: bf16[32,192], index: 2, kind: input, shape index: {}]   ;;  %s1652_s3 = inlined_call_operand.vmem [shape: f32[1,192], index: 3, kind: input, shape index: {}]   ;;  %s1653_s4 = inlined_call_operand.vmem [shape: f32[64,192], index: 4, kind: input, shape index: {}]   ;;  %s1654_s5 = inlined_call_operand.vmem [shape: f32[1,192], index: 5, kind: input, shape index: {}]   ;;  %s1655_s6 = inlined_call_operand.vmem [shape: f32[2,8,64], index: 6, kind: output, shape index: {0}]   ;;  %s1656_s7 = inlined_call_operand.hbm [shape: f32[2,64], index: 7, kind: output, shape index: {1}]  }
   0x1   :  { %v1153_v0 = vld [vmem:[%s1653_s4 + $0x70] sm:$0xff]  ;;  %v1158_v1 = vld [vmem:[%s1653_s4 + $0x60] sm:$0xff]  ;;  %v998_v3 = vld [vmem:[%s1651_s2 + $0x18] sm:$0xf0] }
   0x2   :  { %v1030_v2 = vld [vmem:[%s1651_s2 + $0x14] sm:$0xf]  ;;  %187 = vmatpush.msra.mxu2 %v1153_v0  ;;  %v996_v4 = vld [vmem:[%s1651_s2 + $0x10] sm:$0xf]  ;;  %v1031_v7 = vld [vmem:[%s1651_s2 + $0x14] sm:$0xf0] }
   0x3   :  { %v1001_v5 = vor.u32 %v1030_v2, %v998_v3  ;;  %v1173_v6 = vld [vmem:[%s1653_s4 + $0x50] sm:$0xff]  ;;  %v1028_v8 = vld [vmem:[%s1651_s2 + $0x4] sm:$0xf]  ;;  %v997_v9 = vor.u32 %v1031_v7, %v996_v4  ;;  %v990_v10 = vld [vmem:[%s1651_s2 + $0x8] sm:$0xf0] }
   0x4   :  { %188 = vmatpush.msra.mxu2 %v1158_v1  ;;  %v988_v11 = vld [vmem:[%s1651_s2] sm:$0xf]  ;;  %v993_v13 = vor.u32 %v1028_v8, %v990_v10  ;;  %v1029_v14 = vld [vmem:[%s1651_s2 + $0x4] sm:$0xf0]  ;;  %v1206_v18 = vld [vmem:[%s1653_s4 + $0x30] sm:$0xff] }
   0x5   :  { %112 = vmatpush.bf16.msra.mxu1 %v1001_v5  ;;  %v1191_v12 = vld [vmem:[%s1653_s4 + $0x40] sm:$0xff]  ;;  %98 = vmatpush.bf16.msra.mxu0 %v997_v9  ;;  %v989_v16 = vor.u32 %v1029_v14, %v988_v11  ;;  %v1229_v24 = vld [vmem:[%s1653_s4 + $0x78] sm:$0xff]  ;;  %v1238_v26 = vld [vmem:[%s1653_s4 + $0x68] sm:$0xff] }
   0x6   :  { %v27_v15 = vld [vmem:[%s1649_s0] sm:$0x1]  ;;  %189 = vmatpush.msra.mxu2 %v1173_v6  ;;  %v28_v17 = vld [vmem:[%s1649_s0 + $0x1] sm:$0x1]  ;;  %v29_v19 = vld [vmem:[%s1649_s0 + $0x2] sm:$0x1]  ;;  %207 = vmatpush.msra.mxu3 %v1229_v24 }
   0x7   :  { %v30_v20 = vld [vmem:[%s1649_s0 + $0x3] sm:$0x1]  ;;  %v31_v21 = vld [vmem:[%s1649_s0 + $0x4] sm:$0x1]  ;;  %46 = vst [vmem:[#allocation1] ss:$9 sm:$0xff] %v27_v15 }
   0x8   :  { %190 = vmatpush.msra.mxu2 %v1191_v12  ;;  %v32_v22 = vld [vmem:[%s1649_s0 + $0x5] sm:$0x1]  ;;  %49 = vst [vmem:[#allocation1 + $0x1] ss:$9 sm:$0xff] %v28_v17  ;;  %v33_v25 = vld [vmem:[%s1649_s0 + $0x6] sm:$0x1] }
   0x9   :  { %113 = vmatpush.bf16.msra.mxu1 %v993_v13  ;;  %v1224_v23 = vld [vmem:[%s1653_s4 + $0x20] sm:$0xff]  ;;  %99 = vmatpush.bf16.msra.mxu0 %v989_v16  ;;  %52 = vst [vmem:[#allocation1 + $0x2] ss:$9 sm:$0xff] %v29_v19  ;;  %v1246_v28 = vld [vmem:[%s1653_s4 + $0x10] sm:$0xff]  ;;  %v1254_v29 = vld [vmem:[%s1653_s4 + $0x58] sm:$0xff] }
   0xa   :  { %191 = vmatpush.msra.mxu2 %v1206_v18  ;;  %v34_v27 = vld [vmem:[%s1649_s0 + $0x7] sm:$0x1]  ;;  %55 = vst [vmem:[#allocation1 + $0x3] ss:$9 sm:$0xff] %v30_v20 }
   0xb   :  { %58 = vst [vmem:[#allocation1 + $0x4] ss:$9 sm:$0xff] %v31_v21 }
   0xc   :  { %192 = vmatpush.msra.mxu2 %v1224_v23 }
   0xd   :  { %270 = vmatpush.msrb.mxu0 %v1153_v0  ;;  %290 = vmatpush.msrb.mxu1 %v1229_v24 }
   0xe   :  { %13 = vsyncpa [#allocation3], 0  ;;  %61 = vst [vmem:[#allocation1 + $0x5] ss:$9 sm:$0xff] %v32_v22  ;;  %v1260_v30 = vld [vmem:[%s1653_s4] sm:$0xff]  ;;  %208 = vmatpush.msra.mxu3 %v1238_v26  ;;  %193 = vmatpush.msra.mxu2 %v1246_v28  ;;  %vm175_vm0 = vcmask 523264  }
   0xf   :  { %271 = vmatpush.msrb.mxu0 %v1158_v1  ;;  %64 = vst [vmem:[#allocation1 + $0x6] ss:$9 sm:$0xff] %v33_v25  ;;  %v1268_v31 = vld [vmem:[%s1650_s1] sm:$0x3]  ;;  %v1273_v32 = vld [vmem:[%s1653_s4 + $0x48] sm:$0xff]  ;;  %291 = vmatpush.msrb.mxu1 %v1238_v26  ;;  %v1282_v33 = vld [vmem:[%s1653_s4 + $0x38] sm:$0xff] }
  0x10   :  { %67 = vst [vmem:[#allocation1 + $0x7] ss:$9 sm:$0xff] %v34_v27  ;;  %209 = vmatpush.msra.mxu3 %v1254_v29  ;;  %194 = vmatpush.msra.mxu2 %v1260_v30  ;;  %v1291_v34 = vld [vmem:[%s1653_s4 + $0x28] sm:$0xff]  ;;  %vm89_vm1 = vcmask 261120   ;;  %v1303_v35 = vld [vmem:[%s1653_s4 + $0x18] sm:$0xff]  ;;  %vm126_vm2 = vcmask 1041408  }
  0x11   :  { %272 = vmatpush.msrb.mxu0 %v1173_v6  ;;  %292 = vmatpush.msrb.mxu1 %v1254_v29  ;;  %v1311_v37 = vld [vmem:[%s1653_s4 + $0x8] sm:$0xff]  ;;  %v39_v38 = vld [vmem:[%s1652_s3] sm:$0x3]  ;;  %vm128_vm3 = vcmask 1043458   ;;  %vm131_vm4 = vcmask 1045508   ;;  %vm134_vm5 = vcmask 1045504  }
  0x12   :  { %1004 = vmatmul.msk.f32.vlgmr.msra.gmra.mxu2 %vm175_vm0, %v1268_v31  ;;  %210 = vmatpush.msra.mxu3 %v1273_v32  ;;  %v169_v39 = vld [vmem:[%s1654_s5] sm:$0x3]  ;;  %v42_v40 = vperm.slane %v39_v38, 1  ;;  %v41_v41 = vperm.slane %v39_v38, 0  ;;  %s1108_s3 = smov 64   ;;  %s1109_s21 = smov [#allocation2]  }
  0x13   :  { %273 = vmatpush.msrb.mxu0 %v1191_v12  ;;  %293 = vmatpush.msrb.mxu1 %v1273_v32  ;;  %v1373_v42 = vperm.slane %v169_v39, 0  ;;  %v1398_v8 = vperm.slane %v169_v39, 1  ;;  %s973_s22 = sshll.u32 %s1109_s21, 4  ;;  %s975_s25 = sshll.u32 %s1656_s7, 4  ;;  %s974_s22 = int_to_ptr.vmem [resolvable:$true] %s973_s22  ;;  %s976_s25 = int_to_ptr.hbm [resolvable:$true] %s975_s25 }
  0x14   :  { %211 = vmatpush.msra.mxu3 %v1282_v33  ;;  %350 = vmatpush.msrb.mxu2 %v1153_v0 }
  0x15   :  { %274 = vmatpush.msrb.mxu0 %v1206_v18  ;;  %294 = vmatpush.msrb.mxu1 %v1282_v33 }
  0x16   :  { %212 = vmatpush.msra.mxu3 %v1291_v34  ;;  %351 = vmatpush.msrb.mxu2 %v1158_v1 }
  0x17   :  { %v68_v36 = vld [vmem:[#allocation1] sm:$0xff]  ;;  %275 = vmatpush.msrb.mxu0 %v1224_v23  ;;  %295 = vmatpush.msrb.mxu1 %v1291_v34 }
  0x18   :  { %1003 = vmatmul.msk.bf16.vlgmr.msra.gmra.mxu1 %vm89_vm1, %v68_v36  ;;  %1002 = vmatmul.msk.bf16.vlgmr.msra.gmra.mxu0 %vm89_vm1, %v68_v36 }
  0x19   :  { %213 = vmatpush.msra.mxu3 %v1303_v35  ;;  %276 = vmatpush.msrb.mxu0 %v1246_v28 }
  0x1a   :  { %296 = vmatpush.msrb.mxu1 %v1303_v35  ;;  %352 = vmatpush.msrb.mxu2 %v1173_v6 }
  0x1b   :  { %214 = vmatpush.msra.mxu3 %v1311_v37  ;;  %277 = vmatpush.msrb.mxu0 %v1260_v30 }
  0x1c   :  { %1005 = vmatmul.msk.f32.vlgmr.msra.gmra.mxu3 %vm175_vm0, %v1268_v31  ;;  %297 = vmatpush.msrb.mxu1 %v1311_v37 }
  0x1d   :  { %370 = vmatpush.msrb.mxu3 %v1229_v24  ;;  %353 = vmatpush.msrb.mxu2 %v1191_v12 }
  0x1e   :  { %430 = vmatpush.msra.mxu0 %v1153_v0  ;;  %450 = vmatpush.msra.mxu1 %v1229_v24 }
  0x1f   :  { %371 = vmatpush.msrb.mxu3 %v1238_v26  ;;  %354 = vmatpush.msrb.mxu2 %v1206_v18 }
  0x20   :  { %431 = vmatpush.msra.mxu0 %v1158_v1  ;;  %451 = vmatpush.msra.mxu1 %v1238_v26 }
  0x21   :  { %372 = vmatpush.msrb.mxu3 %v1254_v29  ;;  %355 = vmatpush.msrb.mxu2 %v1224_v23 }
  0x22   :  { %432 = vmatpush.msra.mxu0 %v1173_v6  ;;  %452 = vmatpush.msra.mxu1 %v1254_v29 }
  0x23   :  { %373 = vmatpush.msrb.mxu3 %v1273_v32  ;;  %356 = vmatpush.msrb.mxu2 %v1246_v28 }
  0x24   :  { %433 = vmatpush.msra.mxu0 %v1191_v12  ;;  %453 = vmatpush.msra.mxu1 %v1273_v32 }
  0x25   :  { %374 = vmatpush.msrb.mxu3 %v1282_v33  ;;  %357 = vmatpush.msrb.mxu2 %v1260_v30 }
  0x26   :  { %434 = vmatpush.msra.mxu0 %v1206_v18  ;;  %454 = vmatpush.msra.mxu1 %v1282_v33 }
  0x27   :  { %375 = vmatpush.msrb.mxu3 %v1291_v34  ;;  %510 = vmatpush.msra.mxu2 %v1153_v0 }
  0x28   :  { %435 = vmatpush.msra.mxu0 %v1224_v23  ;;  %455 = vmatpush.msra.mxu1 %v1291_v34 }
  0x29   :  { %376 = vmatpush.msrb.mxu3 %v1303_v35  ;;  %511 = vmatpush.msra.mxu2 %v1158_v1 }
  0x2a   :  { %436 = vmatpush.msra.mxu0 %v1246_v28  ;;  %456 = vmatpush.msra.mxu1 %v1303_v35 }
  0x2b   :  { %377 = vmatpush.msrb.mxu3 %v1311_v37  ;;  %512 = vmatpush.msra.mxu2 %v1173_v6 }
  0x2c   :  { %437 = vmatpush.msra.mxu0 %v1260_v30  ;;  %457 = vmatpush.msra.mxu1 %v1311_v37 }
  0x2d   :  { %530 = vmatpush.msra.mxu3 %v1229_v24  ;;  %513 = vmatpush.msra.mxu2 %v1191_v12 }
  0x2f   :  { %531 = vmatpush.msra.mxu3 %v1238_v26  ;;  %514 = vmatpush.msra.mxu2 %v1206_v18 }
  0x31   :  { %532 = vmatpush.msra.mxu3 %v1254_v29  ;;  %515 = vmatpush.msra.mxu2 %v1224_v23 }
  0x33   :  { %533 = vmatpush.msra.mxu3 %v1273_v32  ;;  %516 = vmatpush.msra.mxu2 %v1246_v28 }
  0x35   :  { %534 = vmatpush.msra.mxu3 %v1282_v33  ;;  %517 = vmatpush.msra.mxu2 %v1260_v30 }
  0x37   :  { %535 = vmatpush.msra.mxu3 %v1291_v34 }
  0x39   :  { %536 = vmatpush.msra.mxu3 %v1303_v35 }
  0x3b   :  { %537 = vmatpush.msra.mxu3 %v1311_v37 }
  0x95   :  { %v115_v43 = vpop.f32.mrf.mxu1  ;;  %v101_v44 = vpop.f32.mrf.mxu0 }
  0x96   :  { %v116_v45 = vadd.f32 %v115_v43, %v42_v40  ;;  %v102_v46 = vadd.f32 %v101_v44, %v41_v41  ;;  %v196_v47 = vpop.f32.mrf.mxu2 }
  0x97   :  { %v197_v48 = vadd.f32 %v196_v47, %v1373_v42 }
  0x98   :  { %v124_v49 = vrot.slane %v116_v45, 6 }
  0x9a   :  { %v127_v50 = vsel %vm126_vm2, %v102_v46, %v124_v49  ;;  %v1378_v51 = vsel %vm128_vm3, %v102_v46, %v124_v49  ;;  %v1381_v52 = vsel %vm131_vm4, %v102_v46, %v124_v49  ;;  %v1384_v53 = vsel %vm134_vm5, %v124_v49, %v102_v46 }
  0x9b   :  { %v219_v54 = vadd.f32 %v197_v48, %v127_v50  ;;  %v240_v21 = vrot.slane %v127_v50, 2  ;;  %v130_v46 = vrot.slane %v1378_v51, 2 }
  0x9d   :  { %v117_v55 = vpop.f32.mrf.mxu1  ;;  %v103_v56 = vpop.f32.mrf.mxu0  ;;  %v1006_v57 = vmul.f32 -1.442695, %v219_v54 }
  0x9e   :  { %v118_v58 = vadd.f32 %v117_v55, %v42_v40  ;;  %v104_v59 = vadd.f32 %v103_v56, %v41_v41 }
  0x9f   :  { %1034 = vpow2.f32 %v1006_v57  ;;  %v216_v10 = vpop.f32.mrf.mxu3 }
  0xa0   :  { %v125_v60 = vrot.slane %v118_v58, 6  ;;  %v217_v15 = vadd.f32 %v216_v10, %v1398_v8 }
  0xa2   :  { %v1387_v61 = vsel %vm126_vm2, %v104_v59, %v125_v60  ;;  %v1390_v62 = vsel %vm128_vm3, %v104_v59, %v125_v60  ;;  %v1393_v63 = vsel %vm131_vm4, %v104_v59, %v125_v60  ;;  %v1396_v2 = vsel %vm134_vm5, %v125_v60, %v104_v59 }
  0xa5   :  { %v1035_v3 = vpop.eup %1034 }
  0xa6   :  { %v223_v4 = vadd.f32 1.0, %v1035_v3 }
  0xa8   :  { %1036 = vrcp.f32 %v223_v4  ;;  %v235_v11 = vand.u32 2147483648, %v223_v4  ;;  %v233_v14 = vand.u32 2147483647, %v223_v4  ;;  %vm229_vm7 = vweird.f32 %v223_v4 }
  0xaa   :  { %v236_v17 = vor.u32 1.1754944e-38, %v235_v11  ;;  %vm234_vm9 = vcmp.eq.f32.partialorder %v233_v14, 8.507059e+37  ;;  %v323_v11 = vrot.slane %v130_v46, 2 }
  0xae   :  { %v1037_v5 = vpop.eup %1036 }
  0xaf   :  { %v225_v7 = vmul.f32 %v1037_v5, %v223_v4  ;;  %vm230_vm6 = vweird.f32 %v1037_v5 }
  0xb0   :  { %vm231_vm8 = vmor %vm229_vm7, %vm230_vm6 }
  0xb1   :  { %v226_v9 = vsub.f32 1.0, %v225_v7 }
  0xb3   :  { %v227_v13 = vmul.f32 %v1037_v5, %v226_v9 }
  0xb5   :  { %v228_v16 = vadd.f32 %v1037_v5, %v227_v13 }
  0xb7   :  { %v232_v19 = vsel %vm231_vm8, %v1037_v5, %v228_v16 }
  0xb8   :  { %v237_v20 = vsel %vm234_vm9, %v236_v17, %v232_v19 }
  0xb9   :  { %v239_v22 = vmul.f32 %v237_v20, %v217_v15  ;;  %v244_v38 = vsub.f32 1.0, %v237_v20 }
  0xbb   :  { %v242_v25 = vadd.f32 %v240_v21, %v239_v22 }
  0xbd   :  { %1038 = vtanh.f32 %v242_v25 }
  0xc3   :  { %v1039_v27 = vpop.eup %1038 }
  0xc4   :  { %246 = vrot.lane.b32.xlu0 %v1039_v27, %s1108_s3  ;;  %v133_v27 = vrot.slane %v1381_v52, 4 }
  0xcc   :  { %250 = vrot.lane.b32.xlu0 %v1268_v31, %s1108_s3 }
 0x136   :  { %v247_v36 = vpop.permute.xlu0 %246 }
 0x137   :  { %v249_v40 = vmul.f32 %v247_v36, %v244_v38 }
 0x13e   :  { %v251_v39 = vpop.permute.xlu0 %250 }
 0x13f   :  { %v253_v41 = vmul.f32 %v251_v39, %v237_v20 }
 0x141   :  { %v1404_v43 = vadd.f32 %v253_v41, %v249_v40 }
 0x143   :  { %256 = vst [vmem:[#allocation1] ss:$4 sm:$0xff] %v1404_v43 }
 0x14a   :  { %v257_v44 = vld.sshfl [vmem:[#allocation1] sm:$0xff pattern:$0x73625140] }
 0x14b   :  { %258 = vrot.lane.b32.xlu1 %v257_v44, %s1108_s3 }
 0x1bd   :  { %v259_v45 = vpop.permute.xlu1 %258 }
 0x1be   :  { %1007 = vmatmul.msk.f32.vlgmr.msrb.gmra.mxu0 %vm175_vm0, %v259_v45  ;;  %1008 = vmatmul.msk.f32.vlgmr.msrb.gmra.mxu1 %vm175_vm0, %v259_v45 }
 0x1bf   :  { %590 = vmatpush.msrb.mxu0 %v1153_v0  ;;  %610 = vmatpush.msrb.mxu1 %v1229_v24 }
 0x1c1   :  { %591 = vmatpush.msrb.mxu0 %v1158_v1  ;;  %611 = vmatpush.msrb.mxu1 %v1238_v26 }
 0x1c3   :  { %592 = vmatpush.msrb.mxu0 %v1173_v6  ;;  %612 = vmatpush.msrb.mxu1 %v1254_v29 }
 0x1c5   :  { %593 = vmatpush.msrb.mxu0 %v1191_v12  ;;  %613 = vmatpush.msrb.mxu1 %v1273_v32 }
 0x1c7   :  { %594 = vmatpush.msrb.mxu0 %v1206_v18  ;;  %614 = vmatpush.msrb.mxu1 %v1282_v33 }
 0x1c9   :  { %595 = vmatpush.msrb.mxu0 %v1224_v23  ;;  %615 = vmatpush.msrb.mxu1 %v1291_v34 }
 0x1cb   :  { %596 = vmatpush.msrb.mxu0 %v1246_v28  ;;  %616 = vmatpush.msrb.mxu1 %v1303_v35 }
 0x1cd   :  { %597 = vmatpush.msrb.mxu0 %v1260_v30  ;;  %617 = vmatpush.msrb.mxu1 %v1311_v37 }
 0x23b   :  { %v279_v31 = vpop.f32.mrf.mxu0  ;;  %v299_v3 = vpop.f32.mrf.mxu1 }
 0x23c   :  { %v280_v47 = vadd.f32 %v279_v31, %v1373_v42  ;;  %v300_v5 = vadd.f32 %v299_v3, %v1398_v8 }
 0x23e   :  { %v302_v48 = vadd.f32 %v280_v47, %v130_v46 }
 0x240   :  { %v1009_v49 = vmul.f32 -1.442695, %v302_v48 }
 0x242   :  { %1040 = vpow2.f32 %v1009_v49 }
 0x248   :  { %v1041_v50 = vpop.eup %1040 }
 0x249   :  { %v306_v54 = vadd.f32 1.0, %v1041_v50 }
 0x24b   :  { %1042 = vrcp.f32 %v306_v54  ;;  %v318_v58 = vand.u32 2147483648, %v306_v54  ;;  %v316_v60 = vand.u32 2147483647, %v306_v54  ;;  %vm312_vm11 = vweird.f32 %v306_v54 }
 0x24d   :  { %v319_v51 = vor.u32 1.1754944e-38, %v318_v58  ;;  %vm317_vm13 = vcmp.eq.f32.partialorder %v316_v60, 8.507059e+37  ;;  %v403_v58 = vrot.slane %v133_v27, 2 }
 0x251   :  { %v1043_v55 = vpop.eup %1042 }
 0x252   :  { %v308_v56 = vmul.f32 %v1043_v55, %v306_v54  ;;  %vm313_vm10 = vweird.f32 %v1043_v55 }
 0x253   :  { %vm314_vm12 = vmor %vm312_vm11, %vm313_vm10 }
 0x254   :  { %v309_v57 = vsub.f32 1.0, %v308_v56 }
 0x256   :  { %v310_v59 = vmul.f32 %v1043_v55, %v309_v57 }
 0x258   :  { %v311_v4 = vadd.f32 %v1043_v55, %v310_v59 }
 0x25a   :  { %v315_v7 = vsel %vm314_vm12, %v1043_v55, %v311_v4 }
 0x25b   :  { %v320_v9 = vsel %vm317_vm13, %v319_v51, %v315_v7 }
 0x25c   :  { %v322_v10 = vmul.f32 %v320_v9, %v300_v5  ;;  %v327_v15 = vsub.f32 1.0, %v320_v9  ;;  %v333_v17 = vmul.f32 %v320_v9, %v1404_v43 }
 0x25e   :  { %v325_v13 = vadd.f32 %v323_v11, %v322_v10 }
 0x260   :  { %1044 = vtanh.f32 %v325_v13 }
 0x266   :  { %v1045_v14 = vpop.eup %1044 }
 0x267   :  { %329 = vrot.lane.b32.xlu1 %v1045_v14, %s1108_s3 }
 0x2d9   :  { %v330_v16 = vpop.permute.xlu1 %329 }
 0x2da   :  { %v332_v19 = vmul.f32 %v330_v16, %v327_v15 }
 0x2dc   :  { %v1431_v20 = vadd.f32 %v333_v17, %v332_v19 }
 0x2de   :  { %336 = vst [vmem:[#allocation1] ss:$4 sm:$0xff] %v1431_v20 }
 0x2e5   :  { %v337_v21 = vld.sshfl [vmem:[#allocation1] sm:$0xff pattern:$0x73625140] }
 0x2e6   :  { %338 = vrot.lane.b32.xlu2 %v337_v21, %s1108_s3 }
 0x340   :  { %v339_v22 = vpop.permute.xlu2 %338 }
 0x341   :  { %1010 = vmatmul.msk.f32.vlgmr.msrb.gmra.mxu2 %vm175_vm0, %v339_v22  ;;  %1011 = vmatmul.msk.f32.vlgmr.msrb.gmra.mxu3 %vm175_vm0, %v339_v22 }
 0x342   :  { %670 = vmatpush.msrb.mxu2 %v1153_v0  ;;  %690 = vmatpush.msrb.mxu3 %v1229_v24 }
 0x344   :  { %671 = vmatpush.msrb.mxu2 %v1158_v1  ;;  %691 = vmatpush.msrb.mxu3 %v1238_v26 }
 0x346   :  { %672 = vmatpush.msrb.mxu2 %v1173_v6  ;;  %692 = vmatpush.msrb.mxu3 %v1254_v29 }
 0x348   :  { %673 = vmatpush.msrb.mxu2 %v1191_v12  ;;  %693 = vmatpush.msrb.mxu3 %v1273_v32 }
 0x34a   :  { %674 = vmatpush.msrb.mxu2 %v1206_v18  ;;  %694 = vmatpush.msrb.mxu3 %v1282_v33 }
 0x34c   :  { %675 = vmatpush.msrb.mxu2 %v1224_v23  ;;  %695 = vmatpush.msrb.mxu3 %v1291_v34 }
 0x34e   :  { %676 = vmatpush.msrb.mxu2 %v1246_v28  ;;  %696 = vmatpush.msrb.mxu3 %v1303_v35 }
 0x350   :  { %677 = vmatpush.msrb.mxu2 %v1260_v30  ;;  %697 = vmatpush.msrb.mxu3 %v1311_v37 }
 0x3c4   :  { %v359_v25 = vpop.f32.mrf.mxu2  ;;  %v379_v49 = vpop.f32.mrf.mxu3 }
 0x3c5   :  { %v360_v36 = vadd.f32 %v359_v25, %v1373_v42  ;;  %v380_v54 = vadd.f32 %v379_v49, %v1398_v8 }
 0x3c7   :  { %v382_v38 = vadd.f32 %v360_v36, %v133_v27 }
 0x3c9   :  { %v1012_v39 = vmul.f32 -1.442695, %v382_v38 }
 0x3cb   :  { %1046 = vpow2.f32 %v1012_v39 }
 0x3d1   :  { %v1047_v40 = vpop.eup %1046 }
 0x3d2   :  { %v386_v41 = vadd.f32 1.0, %v1047_v40 }
 0x3d4   :  { %1048 = vrcp.f32 %v386_v41  ;;  %v398_v46 = vand.u32 2147483648, %v386_v41  ;;  %v396_v48 = vand.u32 2147483647, %v386_v41  ;;  %vm392_vm15 = vweird.f32 %v386_v41 }
 0x3d6   :  { %v399_v52 = vor.u32 1.1754944e-38, %v398_v46  ;;  %vm397_vm3 = vcmp.eq.f32.partialorder %v396_v48, 8.507059e+37 }
 0x3da   :  { %v1049_v44 = vpop.eup %1048 }
 0x3db   :  { %v388_v45 = vmul.f32 %v1049_v44, %v386_v41  ;;  %vm393_vm14 = vweird.f32 %v1049_v44 }
 0x3dc   :  { %vm394_vm1 = vmor %vm392_vm15, %vm393_vm14 }
 0x3dd   :  { %v389_v31 = vsub.f32 1.0, %v388_v45 }
 0x3df   :  { %v390_v47 = vmul.f32 %v1049_v44, %v389_v31 }
 0x3e1   :  { %v391_v50 = vadd.f32 %v1049_v44, %v390_v47 }
 0x3e3   :  { %v395_v55 = vsel %vm394_vm1, %v1049_v44, %v391_v50 }
 0x3e4   :  { %v400_v56 = vsel %vm397_vm3, %v399_v52, %v395_v55 }
 0x3e5   :  { %v402_v57 = vmul.f32 %v400_v56, %v380_v54  ;;  %v407_v3 = vsub.f32 1.0, %v400_v56  ;;  %v413_v51 = vmul.f32 %v400_v56, %v1431_v20 }
 0x3e7   :  { %v405_v59 = vadd.f32 %v403_v58, %v402_v57 }
 0x3e9   :  { %1050 = vtanh.f32 %v405_v59 }
 0x3ef   :  { %v1051_v60 = vpop.eup %1050 }
 0x3f0   :  { %409 = vrot.lane.b32.xlu2 %v1051_v60, %s1108_s3  ;;  %v563_v60 = vrot.slane %v1387_v61, 2 }
 0x44a   :  { %v410_v4 = vpop.permute.xlu2 %409 }
 0x44b   :  { %v412_v5 = vmul.f32 %v410_v4, %v407_v3 }
 0x44d   :  { %v1458_v7 = vadd.f32 %v413_v51, %v412_v5 }
 0x44f   :  { %416 = vst [vmem:[#allocation1] ss:$4 sm:$0xff] %v1458_v7 }
 0x456   :  { %v417_v9 = vld.sshfl [vmem:[#allocation1] sm:$0xff pattern:$0x73625140] }
 0x457   :  { %418 = vrot.lane.b32.xlu0 %v417_v9, %s1108_s3 }
 0x4c9   :  { %v419_v10 = vpop.permute.xlu0 %418 }
 0x4ca   :  { %1013 = vmatmul.msk.f32.vlgmr.msra.gmra.mxu0 %vm175_vm0, %v419_v10  ;;  %1014 = vmatmul.msk.f32.vlgmr.msra.gmra.mxu1 %vm175_vm0, %v419_v10 }
 0x4cb   :  { %750 = vmatpush.msra.mxu0 %v1153_v0  ;;  %770 = vmatpush.msra.mxu1 %v1229_v24 }
 0x4cd   :  { %751 = vmatpush.msra.mxu0 %v1158_v1  ;;  %771 = vmatpush.msra.mxu1 %v1238_v26  ;;  %v136_v1 = vrot.slane %v1384_v53, 6 }
 0x4cf   :  { %752 = vmatpush.msra.mxu0 %v1173_v6  ;;  %772 = vmatpush.msra.mxu1 %v1254_v29  ;;  %v483_v15 = vrot.slane %v136_v1, 2 }
 0x4d1   :  { %753 = vmatpush.msra.mxu0 %v1191_v12  ;;  %773 = vmatpush.msra.mxu1 %v1273_v32 }
 0x4d3   :  { %754 = vmatpush.msra.mxu0 %v1206_v18  ;;  %774 = vmatpush.msra.mxu1 %v1282_v33 }
 0x4d5   :  { %755 = vmatpush.msra.mxu0 %v1224_v23  ;;  %775 = vmatpush.msra.mxu1 %v1291_v34 }
 0x4d7   :  { %756 = vmatpush.msra.mxu0 %v1246_v28  ;;  %776 = vmatpush.msra.mxu1 %v1303_v35 }
 0x4d9   :  { %757 = vmatpush.msra.mxu0 %v1260_v30  ;;  %777 = vmatpush.msra.mxu1 %v1311_v37 }
 0x547   :  { %v439_v0 = vpop.f32.mrf.mxu0  ;;  %v459_v34 = vpop.f32.mrf.mxu1 }
 0x548   :  { %v440_v6 = vadd.f32 %v439_v0, %v1373_v42  ;;  %v460_v53 = vadd.f32 %v459_v34, %v1398_v8 }
 0x54a   :  { %v462_v12 = vadd.f32 %v440_v6, %v136_v1 }
 0x54c   :  { %v1015_v18 = vmul.f32 -1.442695, %v462_v12 }
 0x54e   :  { %1052 = vpow2.f32 %v1015_v18  ;;  %v139_v18 = vrot.slane %v1390_v62, 2 }
 0x554   :  { %v1053_v24 = vpop.eup %1052 }
 0x555   :  { %v466_v23 = vadd.f32 1.0, %v1053_v24 }
 0x557   :  { %1054 = vrcp.f32 %v466_v23  ;;  %v478_v32 = vand.u32 2147483648, %v466_v23  ;;  %v476_v30 = vand.u32 2147483647, %v466_v23  ;;  %vm472_vm6 = vweird.f32 %v466_v23 }
 0x559   :  { %v479_v37 = vor.u32 1.1754944e-38, %v478_v32  ;;  %vm477_vm8 = vcmp.eq.f32.partialorder %v476_v30, 8.507059e+37 }
 0x55d   :  { %v1055_v26 = vpop.eup %1054 }
 0x55e   :  { %v468_v29 = vmul.f32 %v1055_v26, %v466_v23  ;;  %vm473_vm4 = vweird.f32 %v1055_v26 }
 0x55f   :  { %vm474_vm7 = vmor %vm472_vm6, %vm473_vm4 }
 0x560   :  { %v469_v28 = vsub.f32 1.0, %v468_v29 }
 0x562   :  { %v470_v33 = vmul.f32 %v1055_v26, %v469_v28 }
 0x564   :  { %v471_v35 = vadd.f32 %v1055_v26, %v470_v33 }
 0x566   :  { %v475_v11 = vsel %vm474_vm7, %v1055_v26, %v471_v35 }
 0x567   :  { %v480_v13 = vsel %vm477_vm8, %v479_v37, %v475_v11 }
 0x568   :  { %v482_v14 = vmul.f32 %v480_v13, %v460_v53  ;;  %v487_v19 = vsub.f32 1.0, %v480_v13  ;;  %v493_v22 = vmul.f32 %v480_v13, %v1458_v7 }
 0x56a   :  { %v485_v16 = vadd.f32 %v483_v15, %v482_v14 }
 0x56c   :  { %1056 = vtanh.f32 %v485_v16 }
 0x572   :  { %v1057_v17 = vpop.eup %1056 }
 0x573   :  { %489 = vrot.lane.b32.xlu1 %v1057_v17, %s1108_s3  ;;  %v643_v17 = vrot.slane %v139_v18, 2 }
 0x5e5   :  { %v490_v21 = vpop.permute.xlu1 %489 }
 0x5e6   :  { %v492_v25 = vmul.f32 %v490_v21, %v487_v19 }
 0x5e8   :  { %v1485_v27 = vadd.f32 %v493_v22, %v492_v25 }
 0x5ea   :  { %496 = vst [vmem:[#allocation1] ss:$4 sm:$0xff] %v1485_v27 }
 0x5f1   :  { %v497_v36 = vld.sshfl [vmem:[#allocation1] sm:$0xff pattern:$0x73625140] }
 0x5f2   :  { %498 = vrot.lane.b32.xlu2 %v497_v36, %s1108_s3 }
 0x64c   :  { %v499_v38 = vpop.permute.xlu2 %498 }
 0x64d   :  { %1016 = vmatmul.msk.f32.vlgmr.msra.gmra.mxu2 %vm175_vm0, %v499_v38  ;;  %1017 = vmatmul.msk.f32.vlgmr.msra.gmra.mxu3 %vm175_vm0, %v499_v38 }
 0x6d0   :  { %v519_v39 = vpop.f32.mrf.mxu2  ;;  %v539_v54 = vpop.f32.mrf.mxu3 }
 0x6d1   :  { %v520_v40 = vadd.f32 %v519_v39, %v1373_v42  ;;  %v540_v57 = vadd.f32 %v539_v54, %v1398_v8 }
 0x6d3   :  { %v542_v41 = vadd.f32 %v520_v40, %v1387_v61 }
 0x6d5   :  { %v1018_v44 = vmul.f32 -1.442695, %v542_v41 }
 0x6d7   :  { %1058 = vpow2.f32 %v1018_v44 }
 0x6dd   :  { %v1059_v45 = vpop.eup %1058 }
 0x6de   :  { %v546_v31 = vadd.f32 1.0, %v1059_v45  ;;  %v141_v45 = vrot.slane %v1393_v63, 4 }
 0x6e0   :  { %1060 = vrcp.f32 %v546_v31  ;;  %v558_v49 = vand.u32 2147483648, %v546_v31  ;;  %v556_v52 = vand.u32 2147483647, %v546_v31  ;;  %vm552_vm10 = vweird.f32 %v546_v31 }
 0x6e2   :  { %v559_v56 = vor.u32 1.1754944e-38, %v558_v49  ;;  %vm557_vm12 = vcmp.eq.f32.partialorder %v556_v52, 8.507059e+37 }
 0x6e6   :  { %v1061_v46 = vpop.eup %1060 }
 0x6e7   :  { %v548_v47 = vmul.f32 %v1061_v46, %v546_v31  ;;  %vm553_vm9 = vweird.f32 %v1061_v46 }
 0x6e8   :  { %vm554_vm11 = vmor %vm552_vm10, %vm553_vm9 }
 0x6e9   :  { %v549_v48 = vsub.f32 1.0, %v548_v47 }
 0x6eb   :  { %v550_v50 = vmul.f32 %v1061_v46, %v549_v48 }
 0x6ed   :  { %v551_v55 = vadd.f32 %v1061_v46, %v550_v50 }
 0x6ef   :  { %v555_v58 = vsel %vm554_vm11, %v1061_v46, %v551_v55 }
 0x6f0   :  { %v560_v59 = vsel %vm557_vm12, %v559_v56, %v555_v58  ;;  %vm831_vm12 = vcmask 1041409  }
 0x6f1   :  { %v562_v3 = vmul.f32 %v560_v59, %v540_v57  ;;  %v567_v5 = vsub.f32 1.0, %v560_v59  ;;  %v573_v10 = vmul.f32 %v560_v59, %v1485_v27 }
 0x6f3   :  { %v565_v4 = vadd.f32 %v563_v60, %v562_v3 }
 0x6f5   :  { %1062 = vtanh.f32 %v565_v4 }
 0x6fb   :  { %v1063_v51 = vpop.eup %1062 }
 0x6fc   :  { %569 = vrot.lane.b32.xlu0 %v1063_v51, %s1108_s3 }
 0x76e   :  { %v570_v9 = vpop.permute.xlu0 %569 }
 0x76f   :  { %v572_v0 = vmul.f32 %v570_v9, %v567_v5  ;;  %v723_v5 = vrot.slane %v141_v45, 2 }
 0x771   :  { %v1497_v1 = vadd.f32 %v573_v10, %v572_v0 }
 0x773   :  { %576 = vst [vmem:[#allocation1] ss:$4 sm:$0xff] %v1497_v1 }
 0x77a   :  { %v577_v6 = vld.sshfl [vmem:[#allocation1] sm:$0xff pattern:$0x73625140] }
 0x77b   :  { %578 = vrot.lane.b32.xlu1 %v577_v6, %s1108_s3 }
 0x7ed   :  { %v579_v12 = vpop.permute.xlu1 %578 }
 0x7ee   :  { %1019 = vmatmul.msk.f32.vlgmr.msrb.gmra.mxu0 %vm175_vm0, %v579_v12  ;;  %1020 = vmatmul.msk.f32.vlgmr.msrb.gmra.mxu1 %vm175_vm0, %v579_v12 }
 0x86b   :  { %v599_v61 = vpop.f32.mrf.mxu0  ;;  %v619_v53 = vpop.f32.mrf.mxu1 }
 0x86c   :  { %v600_v24 = vadd.f32 %v599_v61, %v1373_v42  ;;  %v620_v13 = vadd.f32 %v619_v53, %v1398_v8 }
 0x86e   :  { %v622_v23 = vadd.f32 %v600_v24, %v139_v18 }
 0x870   :  { %v1021_v26 = vmul.f32 -1.442695, %v622_v23 }
 0x872   :  { %1064 = vpow2.f32 %v1021_v26 }
 0x878   :  { %v1065_v29 = vpop.eup %1064 }
 0x879   :  { %v626_v28 = vadd.f32 1.0, %v1065_v29  ;;  %v143_v29 = vrot.slane %v1396_v2, 6 }
 0x87b   :  { %1066 = vrcp.f32 %v626_v28  ;;  %v638_v34 = vand.u32 2147483648, %v626_v28  ;;  %v636_v37 = vand.u32 2147483647, %v626_v28  ;;  %vm632_vm14 = vweird.f32 %v626_v28 }
 0x87d   :  { %v639_v62 = vor.u32 1.1754944e-38, %v638_v34  ;;  %vm637_vm1 = vcmp.eq.f32.partialorder %v636_v37, 8.507059e+37 }
 0x881   :  { %v1067_v32 = vpop.eup %1066 }
 0x882   :  { %v628_v33 = vmul.f32 %v1067_v32, %v626_v28  ;;  %vm633_vm13 = vweird.f32 %v1067_v32 }
 0x883   :  { %vm634_vm15 = vmor %vm632_vm14, %vm633_vm13  ;;  %vm833_vm13 = vcmask 1043459   ;;  %vm826_vm14 = vcmask 1040384  }
 0x884   :  { %v629_v30 = vsub.f32 1.0, %v628_v33 }
 0x886   :  { %v630_v35 = vmul.f32 %v1067_v32, %v629_v30 }
 0x888   :  { %v631_v11 = vadd.f32 %v1067_v32, %v630_v35 }
 0x88a   :  { %v635_v14 = vsel %vm634_vm15, %v1067_v32, %v631_v11  ;;  %vm828_vm15 = vcmask 1042434  }
 0x88b   :  { %v640_v15 = vsel %vm637_vm1, %v639_v62, %v635_v14  ;;  %vm835_vm1 = vcmask 1042433  }
 0x88c   :  { %v642_v16 = vmul.f32 %v640_v15, %v620_v13  ;;  %v647_v22 = vsub.f32 1.0, %v640_v15  ;;  %v653_v36 = vmul.f32 %v640_v15, %v1497_v1 }
 0x88e   :  { %v645_v19 = vadd.f32 %v643_v17, %v642_v16 }
 0x890   :  { %1068 = vtanh.f32 %v645_v19 }
 0x896   :  { %v1069_v21 = vpop.eup %1068 }
 0x897   :  { %649 = vrot.lane.b32.xlu2 %v1069_v21, %s1108_s3  ;;  %v803_v21 = vrot.slane %v143_v29, 2 }
 0x8f1   :  { %v650_v25 = vpop.permute.xlu2 %649 }
 0x8f2   :  { %v652_v38 = vmul.f32 %v650_v25, %v647_v22 }
 0x8f4   :  { %v1508_v39 = vadd.f32 %v653_v36, %v652_v38  ;;  %v823_v36 = vrot.slane %v1404_v43, 1  ;;  %v824_v38 = vrot.slane %v1404_v43, 2 }
 0x8f6   :  { %656 = vst [vmem:[#allocation1] ss:$4 sm:$0xff] %v1508_v39 }
 0x8fd   :  { %v657_v40 = vld.sshfl [vmem:[#allocation1] sm:$0xff pattern:$0x73625140] }
 0x8fe   :  { %658 = vrot.lane.b32.xlu0 %v657_v40, %s1108_s3  ;;  %v825_v40 = vrot.slane %v1404_v43, 3 }
 0x970   :  { %v659_v41 = vpop.permute.xlu0 %658 }
 0x971   :  { %1022 = vmatmul.msk.f32.vlgmr.msrb.gmra.mxu2 %vm175_vm0, %v659_v41  ;;  %1023 = vmatmul.msk.f32.vlgmr.msrb.gmra.mxu3 %vm175_vm0, %v659_v41  ;;  %v841_v41 = vrot.slane %v1431_v20, 2 }
 0x9f4   :  { %v679_v44 = vpop.f32.mrf.mxu2  ;;  %v699_v58 = vpop.f32.mrf.mxu3 }
 0x9f5   :  { %v680_v31 = vadd.f32 %v679_v44, %v1373_v42  ;;  %v700_v60 = vadd.f32 %v699_v58, %v1398_v8  ;;  %v842_v44 = vrot.slane %v1431_v20, 3 }
 0x9f7   :  { %v702_v46 = vadd.f32 %v680_v31, %v141_v45  ;;  %v832_v31 = vsel %vm831_vm12, %v1404_v43, %v823_v36 }
 0x9f9   :  { %v1024_v47 = vmul.f32 -1.442695, %v702_v46  ;;  %v834_v46 = vsel %vm833_vm13, %v824_v38, %v825_v40 }
 0x9fa   :  { %v1555_v58 = vsel %vm835_vm1, %v832_v31, %v834_v46 }
 0x9fb   :  { %1070 = vpow2.f32 %v1024_v47  ;;  %v844_v47 = vsel %vm828_vm15, %v841_v41, %v842_v44 }
 0xa01   :  { %v1071_v48 = vpop.eup %1070 }
 0xa02   :  { %v706_v49 = vadd.f32 1.0, %v1071_v48  ;;  %v850_v48 = vrot.slane %v1458_v7, 1 }
 0xa04   :  { %1072 = vrcp.f32 %v706_v49  ;;  %v718_v55 = vand.u32 2147483648, %v706_v49  ;;  %v716_v57 = vand.u32 2147483647, %v706_v49  ;;  %vm712_vm4 = vweird.f32 %v706_v49 }
 0xa06   :  { %v719_v63 = vor.u32 1.1754944e-38, %v718_v55  ;;  %vm717_vm7 = vcmp.eq.f32.partialorder %v716_v57, 8.507059e+37  ;;  %v827_v55 = vsel %vm826_vm14, %v1404_v43, %v823_v36 }
 0xa0a   :  { %v1073_v50 = vpop.eup %1072 }
 0xa0b   :  { %v708_v52 = vmul.f32 %v1073_v50, %v706_v49  ;;  %vm713_vm3 = vweird.f32 %v1073_v50  ;;  %v851_v49 = vrot.slane %v1458_v7, 2 }
 0xa0c   :  { %vm714_vm6 = vmor %vm712_vm4, %vm713_vm3  ;;  %vm942_vm3 = vcmask 1042432   ;;  %vm945_vm4 = vcmask 1043456  }
 0xa0d   :  { %v709_v54 = vsub.f32 1.0, %v708_v52 }
 0xa0f   :  { %v710_v56 = vmul.f32 %v1073_v50, %v709_v54  ;;  %v847_v54 = vsel %vm833_vm13, %v841_v41, %v842_v44 }
 0xa11   :  { %v711_v59 = vadd.f32 %v1073_v50, %v710_v56  ;;  %v829_v56 = vsel %vm828_vm15, %v824_v38, %v825_v40 }
 0xa13   :  { %v715_v3 = vsel %vm714_vm6, %v1073_v50, %v711_v59  ;;  %v852_v50 = vrot.slane %v1458_v7, 3  ;;  %v860_v59 = vrot.slane %v1485_v27, 1  ;;  %vm948_vm6 = vcmask 1044480  }
 0xa14   :  { %v720_v4 = vsel %vm717_vm7, %v719_v63, %v715_v3  ;;  %v853_v3 = vsel %vm826_vm14, %v1458_v7, %v850_v48  ;;  %vm953_vm7 = vcmask 1046528  }
 0xa15   :  { %v722_v51 = vmul.f32 %v720_v4, %v700_v60  ;;  %v727_v0 = vsub.f32 1.0, %v720_v4  ;;  %v733_v12 = vmul.f32 %v720_v4, %v1508_v39  ;;  %v856_v60 = vsel %vm831_vm12, %v1458_v7, %v850_v48 }
 0xa16   :  { %v854_v43 = vsel %vm828_vm15, %v851_v49, %v852_v50  ;;  %v861_v4 = vrot.slane %v1485_v27, 2 }
 0xa17   :  { %v725_v9 = vadd.f32 %v723_v5, %v722_v51  ;;  %v862_v51 = vrot.slane %v1485_v27, 3  ;;  %v830_v5 = vsel %vm126_vm2, %v827_v55, %v829_v56  ;;  %v855_v7 = vsel %vm126_vm2, %v853_v3, %v854_v43 }
 0xa19   :  { %1074 = vtanh.f32 %v725_v9  ;;  %v870_v9 = vrot.slane %v1497_v1, 1 }
 0xa1f   :  { %v1075_v10 = vpop.eup %1074 }
 0xa20   :  { %729 = vrot.lane.b32.xlu1 %v1075_v10, %s1108_s3  ;;  %v871_v10 = vrot.slane %v1497_v1, 2 }
 0xa92   :  { %v730_v6 = vpop.permute.xlu1 %729 }
 0xa93   :  { %v732_v61 = vmul.f32 %v730_v6, %v727_v0  ;;  %v872_v0 = vrot.slane %v1497_v1, 3  ;;  %v837_v6 = vrot.slane %v1555_v58, 1 }
 0xa95   :  { %v1519_v18 = vadd.f32 %v733_v12, %v732_v61  ;;  %v863_v61 = vsel %vm826_vm14, %v1485_v27, %v860_v59 }
 0xa97   :  { %736 = vst [vmem:[#allocation1] ss:$4 sm:$0xff] %v1519_v18 }
 0xa9e   :  { %v737_v24 = vld.sshfl [vmem:[#allocation1] sm:$0xff pattern:$0x73625140] }
 0xa9f   :  { %738 = vrot.lane.b32.xlu2 %v737_v24, %s1108_s3 }
 0xaf9   :  { %v739_v23 = vpop.permute.xlu2 %738 }
 0xafa   :  { %1025 = vmatmul.msk.f32.vlgmr.msra.gmra.mxu0 %vm175_vm0, %v739_v23  ;;  %1026 = vmatmul.msk.f32.vlgmr.msra.gmra.mxu1 %vm175_vm0, %v739_v23 }
 0xb77   :  { %v759_v26 = vpop.f32.mrf.mxu0  ;;  %v779_v14 = vpop.f32.mrf.mxu1 }
 0xb78   :  { %v760_v28 = vadd.f32 %v759_v26, %v1373_v42  ;;  %v780_v42 = vadd.f32 %v779_v14, %v1398_v8  ;;  %v840_v8 = vrot.slane %v1431_v20, 1  ;;  %v864_v26 = vsel %vm828_vm15, %v861_v4, %v862_v51 }
 0xb7a   :  { %v782_v32 = vadd.f32 %v760_v28, %v143_v29  ;;  %v843_v45 = vsel %vm826_vm14, %v1431_v20, %v840_v8  ;;  %v846_v52 = vsel %vm831_vm12, %v1431_v20, %v840_v8  ;;  %v857_v20 = vsel %vm833_vm13, %v851_v49, %v852_v50 }
 0xb7b   :  { %v845_v57 = vsel %vm126_vm2, %v843_v45, %v844_v47  ;;  %v848_v63 = vsel %vm835_vm1, %v846_v52, %v847_v54  ;;  %v858_v12 = vsel %vm835_vm1, %v856_v60, %v857_v20  ;;  %v880_v29 = vrot.slane %v1508_v39, 1 }
 0xb7c   :  { %v1027_v33 = vmul.f32 -1.442695, %v782_v32  ;;  %v910_v24 = vperm.slane %v845_v57, 0  ;;  %v849_v23 = vrot.slane %v848_v63, 1  ;;  %v881_v28 = vrot.slane %v1508_v39, 2 }
 0xb7d   :  { %v882_v32 = vrot.slane %v1508_v39, 3  ;;  %v883_v41 = vsel %vm826_vm14, %v1508_v39, %v880_v29 }
 0xb7e   :  { %1076 = vpow2.f32 %v1027_v33  ;;  %v873_v33 = vsel %vm826_vm14, %v1497_v1, %v870_v9  ;;  %v938_v14 = vsel %vm826_vm14, %v830_v5, %v910_v24 }
 0xb7f   :  { %v884_v44 = vsel %vm828_vm15, %v881_v28, %v882_v32 }
 0xb84   :  { %v1077_v30 = vpop.eup %1076 }
 0xb85   :  { %v786_v34 = vadd.f32 1.0, %v1077_v30  ;;  %v859_v30 = vrot.slane %v858_v12, 1 }
 0xb87   :  { %1078 = vrcp.f32 %v786_v34  ;;  %v798_v11 = vand.u32 2147483648, %v786_v34  ;;  %v796_v13 = vand.u32 2147483647, %v786_v34  ;;  %vm792_vm9 = vweird.f32 %v786_v34 }
 0xb89   :  { %v799_v2 = vor.u32 1.1754944e-38, %v798_v11  ;;  %vm797_vm11 = vcmp.eq.f32.partialorder %v796_v13, 8.507059e+37  ;;  %v891_v11 = vrot.slane %v1519_v18, 2  ;;  %v865_v13 = vsel %vm126_vm2, %v863_v61, %v864_v26 }
 0xb8a   :  { %v918_v36 = vperm.slane %v865_v13, 0 }
 0xb8d   :  { %v1079_v35 = vpop.eup %1078 }
 0xb8e   :  { %v788_v37 = vmul.f32 %v1079_v35, %v786_v34  ;;  %vm793_vm8 = vweird.f32 %v1079_v35  ;;  %v866_v34 = vsel %vm831_vm12, %v1485_v27, %v860_v59  ;;  %v914_v27 = vperm.slane %v855_v7, 0 }
 0xb8f   :  { %vm794_vm10 = vmor %vm792_vm9, %vm793_vm8 }
 0xb90   :  { %v789_v53 = vsub.f32 1.0, %v788_v37  ;;  %v874_v37 = vsel %vm828_vm15, %v871_v10, %v872_v0  ;;  %v940_v55 = vsel %vm126_vm2, %v938_v14, %v914_v27 }
 0xb91   :  { %v943_v63 = vsel %vm942_vm3, %v940_v55, %v918_v36 }
 0xb92   :  { %v790_v62 = vmul.f32 %v1079_v35, %v789_v53  ;;  %v890_v53 = vrot.slane %v1519_v18, 1 }
 0xb94   :  { %v791_v15 = vadd.f32 %v1079_v35, %v790_v62  ;;  %v892_v62 = vrot.slane %v1519_v18, 3  ;;  %v893_v46 = vsel %vm826_vm14, %v1519_v18, %v890_v53 }
 0xb96   :  { %v795_v16 = vsel %vm794_vm10, %v1079_v35, %v791_v15  ;;  %v867_v35 = vsel %vm833_vm13, %v861_v4, %v862_v51  ;;  %v876_v15 = vsel %vm831_vm12, %v1497_v1, %v870_v9  ;;  %v896_v1 = vsel %vm831_vm12, %v1519_v18, %v890_v53 }
 0xb97   :  { %v1528_v17 = vsel %vm797_vm11, %v799_v2, %v795_v16  ;;  %v877_v2 = vsel %vm833_vm13, %v871_v10, %v872_v0  ;;  %v887_v16 = vsel %vm833_vm13, %v881_v28, %v882_v32  ;;  %v897_v40 = vsel %vm833_vm13, %v891_v11, %v892_v62 }
 0xb98   :  { %v802_v19 = vmul.f32 %v1528_v17, %v780_v42  ;;  %v886_v42 = vsel %vm831_vm12, %v1508_v39, %v880_v29  ;;  %v878_v38 = vsel %vm835_vm1, %v876_v15, %v877_v2  ;;  %v807_v8 = vsub.f32 1.0, %v1528_v17 }
 0xb99   :  { %v888_v45 = vsel %vm835_vm1, %v886_v42, %v887_v16  ;;  %v894_v47 = vsel %vm828_vm15, %v891_v11, %v892_v62  ;;  %v813_v50 = vmul.f32 %v1528_v17, %v1519_v18  ;;  %v898_v54 = vsel %vm835_vm1, %v896_v1, %v897_v40 }
 0xb9a   :  { %v805_v22 = vadd.f32 %v803_v21, %v802_v19  ;;  %v911_v19 = vperm.slane %v849_v23, 0  ;;  %v875_v21 = vsel %vm126_vm2, %v873_v33, %v874_v37  ;;  %v885_v39 = vsel %vm126_vm2, %v883_v41, %v884_v44 }
 0xb9b   :  { %v922_v48 = vperm.slane %v875_v21, 0  ;;  %v879_v56 = vrot.slane %v878_v38, 1  ;;  %v889_v57 = vrot.slane %v888_v45, 1  ;;  %v895_v59 = vsel %vm126_vm2, %v893_v46, %v894_v47 }
 0xb9c   :  { %1080 = vtanh.f32 %v805_v22  ;;  %v868_v22 = vsel %vm835_vm1, %v866_v34, %v867_v35  ;;  %v939_v60 = vsel %vm826_vm14, %v837_v6, %v911_v19  ;;  %v899_v18 = vrot.slane %v898_v54, 1 }
 0xb9d   :  { %v869_v49 = vrot.slane %v868_v22, 1  ;;  %v946_v20 = vsel %vm945_vm4, %v943_v63, %v922_v48  ;;  %v926_v5 = vperm.slane %v885_v39, 0  ;;  %v930_v9 = vperm.slane %v895_v59, 0 }
 0xb9e   :  { %v923_v10 = vperm.slane %v879_v56, 0  ;;  %v927_v0 = vperm.slane %v889_v57, 0  ;;  %v931_v26 = vperm.slane %v899_v18, 0 }
 0xb9f   :  { %v919_v17 = vperm.slane %v869_v49, 0  ;;  %v949_v28 = vsel %vm948_vm6, %v946_v20, %v926_v5 }
 0xba2   :  { %v1081_v25 = vpop.eup %1080 }
 0xba3   :  { %809 = vrot.lane.b32.xlu0 %v1081_v25, %s1108_s3  ;;  %v915_v25 = vperm.slane %v859_v30, 0  ;;  %v951_v30 = vsel %vm134_vm5, %v949_v28, %v930_v9 }
 0xba5   :  { %v941_v3 = vsel %vm126_vm2, %v939_v60, %v915_v25 }
 0xba6   :  { %v944_v33 = vsel %vm942_vm3, %v941_v3, %v919_v17 }
 0xba7   :  { %v947_v34 = vsel %vm945_vm4, %v944_v33, %v923_v10 }
 0xba8   :  { %v950_v53 = vsel %vm948_vm6, %v947_v34, %v927_v0 }
 0xba9   :  { %v952_v62 = vsel %vm134_vm5, %v950_v53, %v931_v26 }
 0xc15   :  { %v810_v31 = vpop.permute.xlu0 %809 }
 0xc16   :  { %v812_v52 = vmul.f32 %v810_v31, %v807_v8 }
 0xc18   :  { %v814_v58 = vadd.f32 %v813_v50, %v812_v52 }
 0xc1a   :  { %816 = vst [vmem:[#allocation1] ss:$4 sm:$0xff] %v814_v58  ;;  %v900_v43 = vrot.slane %v814_v58, 1  ;;  %v901_v4 = vrot.slane %v814_v58, 2  ;;  %v902_v51 = vrot.slane %v814_v58, 3 }
 0xc1c   :  { %v903_v12 = vsel %vm826_vm14, %v814_v58, %v900_v43  ;;  %v904_v7 = vsel %vm828_vm15, %v901_v4, %v902_v51  ;;  %v906_v6 = vsel %vm831_vm12, %v814_v58, %v900_v43  ;;  %v907_v61 = vsel %vm833_vm13, %v901_v4, %v902_v51 }
 0xc1d   :  { %v905_v24 = vsel %vm126_vm2, %v903_v12, %v904_v7  ;;  %v908_v23 = vsel %vm835_vm1, %v906_v6, %v907_v61  ;;  %vm821_vm2 = vcmask 517120  }
 0xc1e   :  { %v934_v29 = vperm.slane %v905_v24, 0  ;;  %v909_v32 = vrot.slane %v908_v23, 1 }
 0xc20   :  { %v954_v35 = vsel %vm953_vm7, %v951_v30, %v934_v29  ;;  %v935_v37 = vperm.slane %v909_v32, 0 }
 0xc21   :  { %958 = vrot.lane.b32.xlu2 %v954_v35, %s1108_s3  ;;  %v817_v11 = vld.sshfl [vmem:[#allocation1] sm:$0xff pattern:$0x73625140] }
 0xc22   :  { %818 = vrot.lane.b32.xlu1 %v817_v11, %s1108_s3  ;;  %v955_v13 = vsel %vm953_vm7, %v952_v62, %v935_v37 }
 0xc23   :  { %960 = vrot.lane.b32.xlu0 %v955_v13, %s1108_s3 }
 0xc7b   :  { %v959_v14 = vpop.permute.xlu2 %958 }
 0xc7c   :  { %964 = vst.msk [vmem:[%s1655_s6] sm:$0xff] %vm175_vm0, %v959_v14 }
 0xc94   :  { %v819_v15 = vpop.permute.xlu1 %818 }
 0xc95   :  { %822 = vst.msk [vmem:[#allocation2] sm:$0x3] %vm821_vm2, %v819_v15  ;;  %v961_v2 = vpop.permute.xlu0 %960 }
 0xc96   :  { %965 = vst.msk [vmem:[%s1655_s6 + $0x8] sm:$0xff] %vm175_vm0, %v961_v2  ;;  %978 = dma.vmem_to_hbm [thread:$0]  %s974_s22, 32, %s976_s25, [#allocation3]  }
 0xc97   :  { %1106 = dma.done.wait [#allocation3], 32  }
 0xc98   :  { %1107 = vsyncadd [#allocation3], 4294967264 }
 0xc99   :  { %985 = vsyncpa [#allocation3], 1 }

// kernel: seq2seq_forward.3
= control target key start
LH: loop header
LB: loop body
LE: loop exit
PB: predicated region body
PF: predicated region fallthrough
CT: control target
= control target key end

     0   :  { %vm92_vm0 = vcmask 261120   ;;  %v1320_v38 = vmov 0.0   ;;  %vm144_vm1 = vcmask 1043458   ;;  %v163_v58 = vlaneseq  ;;  %s2100_s1 = inlined_call_operand.vmem [shape: bf16[32,192], index: 1, kind: input, shape index: {}]   ;;  %s2101_s0 = inlined_call_operand.vmem [shape: bf16[10,2,32], index: 0, kind: input, shape index: {}]   ;;  %s2102_s3 = inlined_call_operand.vmem [shape: f32[64,192], index: 3, kind: input, shape index: {}]   ;;  %s2103_s2 = inlined_call_operand.vmem [shape: f32[1,192], index: 2, kind: input, shape index: {}]   ;;  %s2104_s4 = inlined_call_operand.vmem [shape: f32[1,192], index: 4, kind: input, shape index: {}]   ;;  %s2105_s6 = inlined_call_operand.vmem [shape: f32[2,64], index: 6, kind: output, shape index: {1}]   ;;  %s2106_s5 = inlined_call_operand.vmem [shape: f32[2,10,64], index: 5, kind: output, shape index: {0}]  }
   0x1   :  { %v1216_v0 = vld [vmem:[%s2100_s1 + $0x10] sm:$0xf]  ;;  %v1257_v1 = vld [vmem:[%s2100_s1 + $0x14] sm:$0xf0]  ;;  %v1256_v2 = vld [vmem:[%s2100_s1 + $0x14] sm:$0xf] }
   0x2   :  { %v1217_v3 = vor.u32 %v1257_v1, %v1216_v0  ;;  %v1218_v4 = vld [vmem:[%s2100_s1 + $0x18] sm:$0xf0]  ;;  %v1208_v5 = vld [vmem:[%s2100_s1] sm:$0xf]  ;;  %v1255_v6 = vld [vmem:[%s2100_s1 + $0x4] sm:$0xf0] }
   0x3   :  { %v1221_v7 = vor.u32 %v1256_v2, %v1218_v4  ;;  %v1254_v8 = vld [vmem:[%s2100_s1 + $0x4] sm:$0xf]  ;;  %v1210_v9 = vld [vmem:[%s2100_s1 + $0x8] sm:$0xf0]  ;;  %v23_v10 = vld [vmem:[%s2101_s0] sm:$0x1]  ;;  %v1209_v11 = vor.u32 %v1255_v6, %v1208_v5 }
   0x4   :  { %103 = vmatpush.bf16.msra.mxu0 %v1217_v3  ;;  %v24_v12 = vld [vmem:[%s2101_s0 + $0x1] sm:$0x1]  ;;  %v1213_v13 = vor.u32 %v1254_v8, %v1210_v9  ;;  %v25_v14 = vld [vmem:[%s2101_s0 + $0x2] sm:$0x1]  ;;  %v26_v15 = vld [vmem:[%s2101_s0 + $0x3] sm:$0x1] }
   0x5   :  { %121 = vmatpush.bf16.msra.mxu1 %v1221_v7  ;;  %44 = vst [vmem:[#allocation1] ss:$9 sm:$0xff] %v23_v10  ;;  %v27_v16 = vld [vmem:[%s2101_s0 + $0x4] sm:$0x1]  ;;  %v1399_v17 = vld [vmem:[%s2102_s3 + $0x70] sm:$0xff]  ;;  %v1426_v23 = vld [vmem:[%s2102_s3 + $0x78] sm:$0xff] }
   0x6   :  { %47 = vst [vmem:[#allocation1 + $0x1] ss:$9 sm:$0xff] %v24_v12  ;;  %v1404_v18 = vld [vmem:[%s2102_s3 + $0x60] sm:$0xff]  ;;  %239 = vmatpush.msra.mxu2 %v1399_v17  ;;  %v1416_v21 = vld [vmem:[%s2102_s3 + $0x50] sm:$0xff]  ;;  %v1431_v24 = vld [vmem:[%s2102_s3 + $0x68] sm:$0xff]  ;;  %259 = vmatpush.msra.mxu3 %v1426_v23  ;;  %vm142_vm2 = vcmask 1041408  }
   0x7   :  { %v28_v19 = vld [vmem:[%s2101_s0 + $0x5] sm:$0x1]  ;;  %50 = vst [vmem:[#allocation1 + $0x2] ss:$9 sm:$0xff] %v25_v14  ;;  %v29_v20 = vld [vmem:[%s2101_s0 + $0x6] sm:$0x1] }
   0x8   :  { %104 = vmatpush.bf16.msra.mxu0 %v1209_v11  ;;  %53 = vst [vmem:[#allocation1 + $0x3] ss:$9 sm:$0xff] %v26_v15  ;;  %v30_v22 = vld [vmem:[%s2101_s0 + $0x7] sm:$0x1]  ;;  %240 = vmatpush.msra.mxu2 %v1404_v18  ;;  %v1444_v26 = vld [vmem:[%s2102_s3 + $0x58] sm:$0xff]  ;;  %v1450_v27 = vld [vmem:[%s2102_s3 + $0x30] sm:$0xff] }
   0x9   :  { %122 = vmatpush.bf16.msra.mxu1 %v1213_v13  ;;  %56 = vst [vmem:[#allocation1 + $0x4] ss:$9 sm:$0xff] %v27_v16  ;;  %v1436_v25 = vld [vmem:[%s2102_s3 + $0x40] sm:$0xff]  ;;  %260 = vmatpush.msra.mxu3 %v1431_v24  ;;  %v1458_v28 = vld [vmem:[%s2102_s3 + $0x48] sm:$0xff]  ;;  %v1472_v30 = vld [vmem:[%s2102_s3 + $0x38] sm:$0xff]  ;;  %v1588_v61 = vand.u32 127, %v163_v58 }
   0xa   :  { %59 = vst [vmem:[#allocation1 + $0x5] ss:$9 sm:$0xff] %v28_v19  ;;  %241 = vmatpush.msra.mxu2 %v1416_v21  ;;  %v1464_v29 = vld [vmem:[%s2102_s3 + $0x20] sm:$0xff]  ;;  %v1478_v31 = vld [vmem:[%s2102_s3 + $0x10] sm:$0xff]  ;;  %v31_v32 = vld [vmem:[%s2101_s0 + $0x8] sm:$0x1] }
   0xb   :  { %62 = vst [vmem:[#allocation1 + $0x6] ss:$9 sm:$0xff] %v29_v20  ;;  %261 = vmatpush.msra.mxu3 %v1444_v26  ;;  %v32_v33 = vld [vmem:[%s2101_s0 + $0x9] sm:$0x1]  ;;  %v1493_v34 = vld [vmem:[%s2102_s3] sm:$0xff]  ;;  %v1509_v37 = vld [vmem:[%s2102_s3 + $0x18] sm:$0xff] }
   0xc   :  { %415 = vmatpush.msrb.mxu0 %v1399_v17  ;;  %65 = vst [vmem:[#allocation1 + $0x7] ss:$9 sm:$0xff] %v30_v22  ;;  %242 = vmatpush.msra.mxu2 %v1436_v25  ;;  %v1499_v35 = vld [vmem:[%s2102_s3 + $0x28] sm:$0xff]  ;;  %v37_v45 = vld [vmem:[%s2103_s2] sm:$0x3]  ;;  %v170_v2 = vand.u32 63, %v1588_v61 }
   0xd   :  { %435 = vmatpush.msrb.mxu1 %v1426_v23  ;;  %262 = vmatpush.msra.mxu3 %v1458_v28  ;;  %v1516_v39 = vld [vmem:[%s2102_s3 + $0x8] sm:$0xff]  ;;  %v39_v46 = vperm.slane %v37_v45, 0  ;;  %v40_v47 = vperm.slane %v37_v45, 1  ;;  %2115 = vst [vmem:[#allocation2_spill] sm:$0xff] %v1588_v61  ;;  %v221_v62 = vld [vmem:[%s2104_s4] sm:$0x3] }
   0xe   :  { %416 = vmatpush.msrb.mxu0 %v1404_v18  ;;  %243 = vmatpush.msra.mxu2 %v1450_v27  ;;  %v1602_v3 = vperm.slane %v221_v62, 0  ;;  %vm1604_vm3 = vcmp.ge.s32.totalorder %v170_v2, 32  ;;  %vm150_vm4 = vcmask 1045504   ;;  %vm147_vm5 = vcmask 1045508   ;;  %s1321_s4 = smov 64  }
   0xf   :  { %436 = vmatpush.msrb.mxu1 %v1431_v24  ;;  %263 = vmatpush.msra.mxu3 %v1472_v30  ;;  %vm227_vm11 = vcmask 523264  }
  0x10   :  { %417 = vmatpush.msrb.mxu0 %v1416_v21  ;;  %244 = vmatpush.msra.mxu2 %v1464_v29 }
  0x11   :  { %437 = vmatpush.msrb.mxu1 %v1444_v26  ;;  %264 = vmatpush.msra.mxu3 %v1499_v35 }
  0x12   :  { %418 = vmatpush.msrb.mxu0 %v1436_v25  ;;  %245 = vmatpush.msra.mxu2 %v1478_v31 }
  0x13   :  { %438 = vmatpush.msrb.mxu1 %v1458_v28  ;;  %v66_v36 = vld [vmem:[#allocation1] sm:$0xff]  ;;  %265 = vmatpush.msra.mxu3 %v1509_v37 }
  0x14   :  { %419 = vmatpush.msrb.mxu0 %v1450_v27  ;;  %1224 = vmatmul.msk.bf16.vlgmr.msra.gmra.mxu1 %vm92_vm0, %v66_v36  ;;  %68 = vst [vmem:[#allocation1] ss:$9 sm:$0xff] %v31_v32 }
  0x15   :  { %439 = vmatpush.msrb.mxu1 %v1472_v30  ;;  %1222 = vmatmul.msk.bf16.vlgmr.msra.gmra.mxu0 %vm92_vm0, %v66_v36  ;;  %70 = vst [vmem:[#allocation1 + $0x1] ss:$9 sm:$0xff] %v32_v33 }
  0x16   :  { %420 = vmatpush.msrb.mxu0 %v1464_v29  ;;  %246 = vmatpush.msra.mxu2 %v1493_v34 }
  0x17   :  { %247 = vmatmul.f32.vlgmr.msra.gmra.mxu2 %v1320_v38  ;;  %440 = vmatpush.msrb.mxu1 %v1499_v35 }
  0x18   :  { %421 = vmatpush.msrb.mxu0 %v1478_v31  ;;  %327 = vmatpush.msrb.mxu2 %v1399_v17 }
  0x19   :  { %266 = vmatpush.msra.mxu3 %v1516_v39  ;;  %441 = vmatpush.msrb.mxu1 %v1509_v37 }
  0x1a   :  { %422 = vmatpush.msrb.mxu0 %v1493_v34  ;;  %328 = vmatpush.msrb.mxu2 %v1404_v18 }
  0x1b   :  { %267 = vmatmul.f32.vlgmr.msra.gmra.mxu3 %v1320_v38  ;;  %442 = vmatpush.msrb.mxu1 %v1516_v39 }
  0x1c   :  { %347 = vmatpush.msrb.mxu3 %v1426_v23  ;;  %329 = vmatpush.msrb.mxu2 %v1416_v21  ;;  %v71_v40 = vld [vmem:[#allocation1] sm:$0xff] }
  0x1d   :  { %591 = vmatpush.msra.mxu0 %v1399_v17  ;;  %611 = vmatpush.msra.mxu1 %v1426_v23 }
  0x1e   :  { %348 = vmatpush.msrb.mxu3 %v1431_v24  ;;  %330 = vmatpush.msrb.mxu2 %v1436_v25 }
  0x1f   :  { %592 = vmatpush.msra.mxu0 %v1404_v18  ;;  %612 = vmatpush.msra.mxu1 %v1431_v24 }
  0x20   :  { %349 = vmatpush.msrb.mxu3 %v1444_v26  ;;  %331 = vmatpush.msrb.mxu2 %v1450_v27 }
  0x21   :  { %593 = vmatpush.msra.mxu0 %v1416_v21  ;;  %613 = vmatpush.msra.mxu1 %v1444_v26 }
  0x22   :  { %350 = vmatpush.msrb.mxu3 %v1458_v28  ;;  %332 = vmatpush.msrb.mxu2 %v1464_v29 }
  0x23   :  { %594 = vmatpush.msra.mxu0 %v1436_v25  ;;  %614 = vmatpush.msra.mxu1 %v1458_v28 }
  0x24   :  { %351 = vmatpush.msrb.mxu3 %v1472_v30  ;;  %333 = vmatpush.msrb.mxu2 %v1478_v31 }
  0x25   :  { %1223 = vmatmul.msk.bf16.gmra.mxu0 %vm92_vm0, %v71_v40  ;;  %1225 = vmatmul.msk.bf16.gmra.mxu1 %vm92_vm0, %v71_v40 }
  0x26   :  { %352 = vmatpush.msrb.mxu3 %v1499_v35  ;;  %334 = vmatpush.msrb.mxu2 %v1493_v34 }
  0x27   :  { %595 = vmatpush.msra.mxu0 %v1450_v27  ;;  %615 = vmatpush.msra.mxu1 %v1472_v30 }
  0x28   :  { %503 = vmatpush.msra.mxu2 %v1399_v17  ;;  %353 = vmatpush.msrb.mxu3 %v1509_v37 }
  0x29   :  { %596 = vmatpush.msra.mxu0 %v1464_v29  ;;  %616 = vmatpush.msra.mxu1 %v1499_v35 }
  0x2a   :  { %504 = vmatpush.msra.mxu2 %v1404_v18  ;;  %354 = vmatpush.msrb.mxu3 %v1516_v39 }
  0x2b   :  { %597 = vmatpush.msra.mxu0 %v1478_v31  ;;  %617 = vmatpush.msra.mxu1 %v1509_v37 }
  0x2c   :  { %523 = vmatpush.msra.mxu3 %v1426_v23  ;;  %505 = vmatpush.msra.mxu2 %v1416_v21 }
  0x2d   :  { %598 = vmatpush.msra.mxu0 %v1493_v34  ;;  %618 = vmatpush.msra.mxu1 %v1516_v39 }
  0x2e   :  { %524 = vmatpush.msra.mxu3 %v1431_v24  ;;  %506 = vmatpush.msra.mxu2 %v1436_v25 }
  0x30   :  { %525 = vmatpush.msra.mxu3 %v1444_v26  ;;  %507 = vmatpush.msra.mxu2 %v1450_v27 }
  0x32   :  { %526 = vmatpush.msra.mxu3 %v1458_v28  ;;  %508 = vmatpush.msra.mxu2 %v1464_v29 }
  0x34   :  { %527 = vmatpush.msra.mxu3 %v1472_v30  ;;  %509 = vmatpush.msra.mxu2 %v1478_v31 }
  0x36   :  { %528 = vmatpush.msra.mxu3 %v1499_v35  ;;  %510 = vmatpush.msra.mxu2 %v1493_v34 }
  0x38   :  { %529 = vmatpush.msra.mxu3 %v1509_v37 }
  0x3a   :  { %530 = vmatpush.msra.mxu3 %v1516_v39 }
  0x91   :  { %v124_v42 = vpop.f32.mrf.mxu1 }
  0x92   :  { %v106_v41 = vpop.f32.mrf.mxu0  ;;  %v125_v55 = vadd.f32 %v124_v42, %v40_v47 }
  0x93   :  { %v1584_v59 = vadd.f32 %v106_v41, %v39_v46 }
  0x94   :  { %v1586_v60 = vrot.slane %v125_v55, 6 }
  0x96   :  { %v1596_v63 = vsel %vm142_vm2, %v1584_v59, %v1586_v60  ;;  %v1618_v13 = vsel %vm144_vm1, %v1584_v59, %v1586_v60 }
  0x97   :  { %v146_v16 = vrot.slane %v1618_v13, 2 }
  0x99   :  { %v126_v44 = vpop.f32.mrf.mxu1 }
  0x9a   :  { %v108_v43 = vpop.f32.mrf.mxu0  ;;  %v248_v4 = vpop.f32.mrf.mxu2  ;;  %v127_v12 = vadd.f32 %v126_v44, %v40_v47  ;;  %v165_v44 = vadd.s32 128, %v1588_v61 }
  0x9b   :  { %v249_v6 = vadd.f32 %v248_v4, %v1602_v3  ;;  %v109_v22 = vadd.f32 %v108_v43, %v39_v46  ;;  %v1643_v43 = vsel %vm147_vm5, %v1584_v59, %v1586_v60 }
  0x9c   :  { %v1620_v15 = vrot.slane %v127_v12, 6  ;;  %v177_v55 = vand.u32 63, %v165_v44 }
  0x9e   :  { %v1631_v33 = vsel %vm150_vm4, %v1620_v15, %v109_v22  ;;  %vm1658_vm9 = vcmp.ge.s32.totalorder %v177_v55, 32 }
  0x9f   :  { %v159_v38 = vrot.slane %v1631_v33, 6 }
  0xa2   :  { %v111_v48 = vpop.f32.mrf.mxu0  ;;  %v129_v49 = vpop.f32.mrf.mxu1 }
  0xa3   :  { %v112_v50 = vadd.f32 %v111_v48, %v39_v46  ;;  %v130_v51 = vadd.f32 %v129_v49, %v40_v47  ;;  %v149_v46 = vrot.slane %v1643_v43, 4  ;;  %v1649_v48 = vperm.slane %v221_v62, 1 }
  0xa4   :  { %v156_v62 = vsel %vm147_vm5, %v109_v22, %v1620_v15 }
  0xa5   :  { %v141_v52 = vrot.slane %v130_v51, 6 }
  0xa7   :  { %v1579_v53 = vsel %vm144_vm1, %v112_v50, %v141_v52  ;;  %v1610_v7 = vsel %vm142_vm2, %v112_v50, %v141_v52  ;;  %v268_v50 = vpop.f32.mrf.mxu3 }
  0xa8   :  { %v162_v54 = vrot.slane %v1579_v53, 2  ;;  %v269_v58 = vadd.f32 %v268_v50, %v1649_v48 }
  0xaa   :  { %193 = vst [vmem:[#allocation1] ss:$4 sm:$0xff] %v162_v54  ;;  %v113_v56 = vpop.f32.mrf.mxu0  ;;  %v131_v57 = vpop.f32.mrf.mxu1 }
  0xb1   :  { %v194_v0 = vld.sshfl [vmem:[#allocation1] sm:$0xff pattern:$0x73625140]  ;;  %v1598_v1 = vld.sshfl [vmem:[#allocation1 + $0x8] sm:$0xff pattern:$0x73625140] }
  0xb2   :  { %198 = vst [vmem:[#allocation1] ss:$4 sm:$0xff] %v1596_v63 }
  0xb9   :  { %v199_v8 = vld.sshfl [vmem:[#allocation1] sm:$0xff pattern:$0x73625140]  ;;  %v200_v9 = vld.sshfl [vmem:[#allocation1 + $0x8] sm:$0xff pattern:$0x73625140] }
  0xba   :  { %302 = vst [vmem:[#allocation1] ss:$4 sm:$0xff] %v1610_v7  ;;  %v203_v10 = vsel %vm1604_vm3, %v194_v0, %v199_v8  ;;  %v204_v12 = vsel %vm1658_vm9, %v1598_v1, %v200_v9  ;;  %v154_v1 = vsel %vm144_vm1, %v109_v22, %v1620_v15 }
  0xbb   :  { %v271_v11 = vadd.f32 %v249_v6, %v203_v10  ;;  %v157_v10 = vrot.slane %v156_v62, 4  ;;  %v155_v9 = vrot.slane %v154_v1, 2 }
  0xbd   :  { %v1226_v14 = vmul.f32 -1.442695, %v271_v11 }
  0xbf   :  { %1260 = vpow2.f32 %v1226_v14 }
  0xc1   :  { %v1623_v19 = vld.sshfl [vmem:[#allocation1] sm:$0xff pattern:$0x73625140]  ;;  %v1625_v20 = vld.sshfl [vmem:[#allocation1 + $0x8] sm:$0xff pattern:$0x73625140] }
  0xc2   :  { %307 = vst [vmem:[#allocation1] ss:$4 sm:$0xff] %v146_v16 }
  0xc5   :  { %v1261_v32 = vpop.eup %1260 }
  0xc6   :  { %v275_v36 = vadd.f32 1.0, %v1261_v32 }
  0xc8   :  { %1262 = vrcp.f32 %v275_v36  ;;  %v287_v51 = vand.u32 2147483648, %v275_v36  ;;  %v285_v57 = vand.u32 2147483647, %v275_v36  ;;  %vm281_vm7 = vweird.f32 %v275_v36 }
  0xc9   :  { %v1634_v40 = vld.sshfl [vmem:[#allocation1] sm:$0xff pattern:$0x73625140]  ;;  %v1636_v41 = vld.sshfl [vmem:[#allocation1 + $0x8] sm:$0xff pattern:$0x73625140] }
  0xca   :  { %390 = vst [vmem:[#allocation1] ss:$4 sm:$0xff] %v159_v38  ;;  %v288_v2 = vor.u32 1.1754944e-38, %v287_v51  ;;  %vm286_vm10 = vcmp.eq.f32.partialorder %v285_v57, 8.507059e+37 }
  0xce   :  { %v1263_v42 = vpop.eup %1262 }
  0xcf   :  { %v277_v45 = vmul.f32 %v1263_v42, %v275_v36  ;;  %vm282_vm6 = vweird.f32 %v1263_v42 }
  0xd0   :  { %vm283_vm8 = vmor %vm281_vm7, %vm282_vm6 }
  0xd1   :  { %v1647_v47 = vld.sshfl [vmem:[#allocation1 + $0x8] sm:$0xff pattern:$0x73625140]  ;;  %v278_v49 = vsub.f32 1.0, %v277_v45 }
  0xd2   :  { %v1651_v52 = vld.sshfl [vmem:[#allocation1] sm:$0xff pattern:$0x73625140] }
  0xd3   :  { %v279_v56 = vmul.f32 %v1263_v42, %v278_v49  ;;  %395 = vst [vmem:[#allocation1] ss:$4 sm:$0xff] %v149_v46 }
  0xd5   :  { %v280_v0 = vadd.f32 %v1263_v42, %v279_v56 }
  0xd7   :  { %v284_v6 = vsel %vm283_vm8, %v1263_v42, %v280_v0  ;;  %v151_v42 = vsel %vm150_vm4, %v1586_v60, %v1584_v59  ;;  %v153_v59 = vsel %vm142_vm2, %v109_v22, %v1620_v15 }
  0xd8   :  { %v1662_v8 = vsel %vm286_vm10, %v288_v2, %v284_v6  ;;  %v152_v44 = vrot.slane %v151_v42, 6 }
  0xd9   :  { %v291_v11 = vmul.f32 %v1662_v8, %v269_v58  ;;  %v300_v15 = vmul.f32 0.0, %v1662_v8 }
  0xda   :  { %v1668_v14 = vld.sshfl [vmem:[#allocation1] sm:$0xff pattern:$0x73625140]  ;;  %v1670_v32 = vld.sshfl [vmem:[#allocation1 + $0x8] sm:$0xff pattern:$0x73625140] }
  0xdb   :  { %v292_v36 = vadd.f32 %v291_v11, %v204_v12  ;;  %478 = vst [vmem:[#allocation1] ss:$4 sm:$0xff] %v157_v10 }
  0xdd   :  { %1264 = vtanh.f32 %v292_v36 }
  0xe2   :  { %v1675_v45 = vld.sshfl [vmem:[#allocation1] sm:$0xff pattern:$0x73625140]  ;;  %v1677_v49 = vld.sshfl [vmem:[#allocation1 + $0x8] sm:$0xff pattern:$0x73625140] }
  0xe3   :  { %v1265_v50 = vpop.eup %1264  ;;  %483 = vst [vmem:[#allocation1] ss:$4 sm:$0xff] %v152_v44 }
  0xe4   :  { %296 = vrot.lane.b32.xlu0 %v1265_v50, %s1321_s4 }
  0xea   :  { %v1682_v51 = vld.sshfl [vmem:[#allocation1] sm:$0xff pattern:$0x73625140]  ;;  %v1684_v55 = vld.sshfl [vmem:[#allocation1 + $0x8] sm:$0xff pattern:$0x73625140] }
  0xeb   :  { %566 = vst [vmem:[#allocation1] ss:$4 sm:$0xff] %v155_v9 }
  0xf2   :  { %v1688_v60 = vld.sshfl [vmem:[#allocation1 + $0x8] sm:$0xff pattern:$0x73625140]  ;;  %v1690_v56 = vld.sshfl [vmem:[#allocation1] sm:$0xff pattern:$0x73625140] }
  0xf3   :  { %571 = vst [vmem:[#allocation1] ss:$4 sm:$0xff] %v153_v59 }
  0xfa   :  { %v1692_v57 = vld.sshfl [vmem:[#allocation1] sm:$0xff pattern:$0x73625140]  ;;  %v1694_v58 = vld.sshfl [vmem:[#allocation1 + $0x8] sm:$0xff pattern:$0x73625140] }
  0xfb   :  { %654 = vst [vmem:[#allocation1] ss:$4 sm:$0xff] %v153_v59 }
 0x102   :  { %v1696_v0 = vld.sshfl [vmem:[#allocation1 + $0x8] sm:$0xff pattern:$0x73625140]  ;;  %v1698_v62 = vld.sshfl [vmem:[#allocation1] sm:$0xff pattern:$0x73625140] }
 0x103   :  { %659 = vst [vmem:[#allocation1] ss:$4 sm:$0xff] %v155_v9 }
 0x10a   :  { %v1700_v2 = vld.sshfl [vmem:[#allocation1] sm:$0xff pattern:$0x73625140]  ;;  %v1702_v6 = vld.sshfl [vmem:[#allocation1 + $0x8] sm:$0xff pattern:$0x73625140] }
 0x10b   :  { %742 = vst [vmem:[#allocation1] ss:$4 sm:$0xff] %v152_v44 }
 0x112   :  { %v1712_v11 = vld.sshfl [vmem:[#allocation1] sm:$0xff pattern:$0x73625140]  ;;  %v1714_v12 = vld.sshfl [vmem:[#allocation1 + $0x8] sm:$0xff pattern:$0x73625140] }
 0x113   :  { %747 = vst [vmem:[#allocation1] ss:$4 sm:$0xff] %v157_v10 }
 0x11a   :  { %v1716_v36 = vld.sshfl [vmem:[#allocation1] sm:$0xff pattern:$0x73625140]  ;;  %v1718_v42 = vld.sshfl [vmem:[#allocation1 + $0x8] sm:$0xff pattern:$0x73625140] }
 0x11b   :  { %830 = vst [vmem:[#allocation1] ss:$4 sm:$0xff] %v149_v46 }
 0x122   :  { %v1730_v44 = vld.sshfl [vmem:[#allocation1] sm:$0xff pattern:$0x73625140]  ;;  %v1732_v10 = vld.sshfl [vmem:[#allocation1 + $0x8] sm:$0xff pattern:$0x73625140] }
 0x123   :  { %835 = vst [vmem:[#allocation1] ss:$4 sm:$0xff] %v159_v38 }
 0x12a   :  { %v1736_v9 = vld.sshfl [vmem:[#allocation1] sm:$0xff pattern:$0x73625140]  ;;  %v1738_v59 = vld.sshfl [vmem:[#allocation1 + $0x8] sm:$0xff pattern:$0x73625140] }
 0x12b   :  { %918 = vst [vmem:[#allocation1] ss:$4 sm:$0xff] %v146_v16 }
 0x132   :  { %v1750_v46 = vld.sshfl [vmem:[#allocation1] sm:$0xff pattern:$0x73625140]  ;;  %v1752_v33 = vld.sshfl [vmem:[#allocation1 + $0x8] sm:$0xff pattern:$0x73625140] }
 0x133   :  { %2120 = vst [vmem:[#allocation3_spill] sm:$0xff] %v1750_v46 }
 0x134   :  { %2121 = vst [vmem:[#allocation4_spill] sm:$0xff] %v1752_v33 }
 0x135   :  { %923 = vst [vmem:[#allocation1] ss:$4 sm:$0xff] %v1610_v7  ;;  %v294_v7 = vsub.f32 1.0, %v1662_v8 }
 0x13c   :  { %v1755_v38 = vld.sshfl [vmem:[#allocation1] sm:$0xff pattern:$0x73625140]  ;;  %v1757_v1 = vld.sshfl [vmem:[#allocation1 + $0x8] sm:$0xff pattern:$0x73625140] }
 0x13d   :  { %2122 = vst [vmem:[#allocation5_spill] sm:$0xff] %v1755_v38 }
 0x13e   :  { %2123 = vst [vmem:[#allocation6_spill] sm:$0xff] %v1757_v1 }
 0x13f   :  { %1006 = vst [vmem:[#allocation1] ss:$4 sm:$0xff] %v1596_v63  ;;  %v312_v63 = vsel %vm1604_vm3, %v1623_v19, %v1634_v40 }
 0x146   :  { %v1768_v16 = vld.sshfl [vmem:[#allocation1] sm:$0xff pattern:$0x73625140]  ;;  %v1770_v43 = vld.sshfl [vmem:[#allocation1 + $0x8] sm:$0xff pattern:$0x73625140] }
 0x147   :  { %2124 = vst [vmem:[#allocation7_spill] sm:$0xff] %v1768_v16 }
 0x148   :  { %2125 = vst [vmem:[#allocation8_spill] sm:$0xff] %v1770_v43 }
 0x149   :  { %1011 = vst [vmem:[#allocation1] ss:$4 sm:$0xff] %v162_v54 }
 0x150   :  { %v1013_v5 = vld.sshfl [vmem:[#allocation1 + $0x8] sm:$0xff pattern:$0x73625140] }
 0x156   :  { %v297_v22 = vpop.permute.xlu0 %296 }
 0x157   :  { %v299_v50 = vmul.f32 %v297_v22, %v294_v7 }
 0x159   :  { %v301_v61 = vadd.f32 %v300_v15, %v299_v50 }
 0x15b   :  { %315 = vrot.lane.b32.xlu0 %v301_v61, %s1321_s4 }
 0x1cd   :  { %v1777_v13 = vpop.permute.xlu0 %315 }
 0x1ce   :  { %2126 = vst [vmem:[#allocation9_spill] sm:$0xff] %v1777_v13  ;;  %1227 = vmatmul.msk.f32.vlgmr.msrb.gmra.mxu2 %vm227_vm11, %v1777_v13  ;;  %1228 = vmatmul.msk.f32.vlgmr.msrb.gmra.mxu3 %vm227_vm11, %v1777_v13 }
 0x1cf   :  { %679 = vmatpush.msrb.mxu2 %v1399_v17  ;;  %699 = vmatpush.msrb.mxu3 %v1426_v23 }
 0x1d1   :  { %680 = vmatpush.msrb.mxu2 %v1404_v18  ;;  %700 = vmatpush.msrb.mxu3 %v1431_v24 }
 0x1d3   :  { %681 = vmatpush.msrb.mxu2 %v1416_v21  ;;  %701 = vmatpush.msrb.mxu3 %v1444_v26 }
 0x1d5   :  { %682 = vmatpush.msrb.mxu2 %v1436_v25  ;;  %702 = vmatpush.msrb.mxu3 %v1458_v28 }
 0x1d7   :  { %683 = vmatpush.msrb.mxu2 %v1450_v27  ;;  %703 = vmatpush.msrb.mxu3 %v1472_v30 }
 0x1d9   :  { %684 = vmatpush.msrb.mxu2 %v1464_v29  ;;  %704 = vmatpush.msrb.mxu3 %v1499_v35 }
 0x1db   :  { %685 = vmatpush.msrb.mxu2 %v1478_v31  ;;  %705 = vmatpush.msrb.mxu3 %v1509_v37 }
 0x1dd   :  { %686 = vmatpush.msrb.mxu2 %v1493_v34  ;;  %706 = vmatpush.msrb.mxu3 %v1516_v39 }
 0x251   :  { %v336_v53 = vpop.f32.mrf.mxu2  ;;  %v356_v38 = vpop.f32.mrf.mxu3 }
 0x252   :  { %v337_v54 = vadd.f32 %v336_v53, %v1602_v3  ;;  %v357_v19 = vadd.f32 %v356_v38, %v1649_v48 }
 0x254   :  { %v359_v8 = vadd.f32 %v337_v54, %v312_v63 }
 0x256   :  { %v1229_v15 = vmul.f32 -1.442695, %v359_v8 }
 0x258   :  { %1266 = vpow2.f32 %v1229_v15 }
 0x25e   :  { %v1267_v22 = vpop.eup %1266 }
 0x25f   :  { %v363_v50 = vadd.f32 1.0, %v1267_v22 }
 0x261   :  { %1268 = vrcp.f32 %v363_v50  ;;  %v375_v16 = vand.u32 2147483648, %v363_v50  ;;  %v373_v33 = vand.u32 2147483647, %v363_v50  ;;  %vm369_vm13 = vweird.f32 %v363_v50 }
 0x263   :  { %v376_v46 = vor.u32 1.1754944e-38, %v375_v16  ;;  %vm374_vm15 = vcmp.eq.f32.partialorder %v373_v33, 8.507059e+37 }
 0x267   :  { %v1269_v7 = vpop.eup %1268 }
 0x268   :  { %v365_v13 = vmul.f32 %v1269_v7, %v363_v50  ;;  %vm370_vm12 = vweird.f32 %v1269_v7 }
 0x269   :  { %vm371_vm14 = vmor %vm369_vm13, %vm370_vm12 }
 0x26a   :  { %v366_v43 = vsub.f32 1.0, %v365_v13  ;;  %v313_v13 = vsel %vm1658_vm9, %v1625_v20, %v1636_v41  ;;  %v400_v41 = vsel %vm1604_vm3, %v1651_v52, %v1668_v14 }
 0x26c   :  { %v367_v1 = vmul.f32 %v1269_v7, %v366_v43 }
 0x26e   :  { %v368_v53 = vadd.f32 %v1269_v7, %v367_v1 }
 0x270   :  { %v372_v40 = vsel %vm371_vm14, %v1269_v7, %v368_v53 }
 0x271   :  { %v377_v54 = vsel %vm374_vm15, %v376_v46, %v372_v40 }
 0x272   :  { %v379_v63 = vmul.f32 %v377_v54, %v357_v19  ;;  %v382_v1 = vsub.f32 1.0, %v377_v54  ;;  %v388_v22 = vmul.f32 %v377_v54, %v301_v61 }
 0x274   :  { %v380_v8 = vadd.f32 %v379_v63, %v313_v13 }
 0x276   :  { %1270 = vtanh.f32 %v380_v8 }
 0x27c   :  { %v1271_v43 = vpop.eup %1270 }
 0x27d   :  { %384 = vrot.lane.b32.xlu1 %v1271_v43, %s1321_s4 }
 0x2ef   :  { %v385_v15 = vpop.permute.xlu1 %384 }
 0x2f0   :  { %v387_v16 = vmul.f32 %v385_v15, %v382_v1 }
 0x2f2   :  { %v389_v50 = vadd.f32 %v388_v22, %v387_v16 }
 0x2f4   :  { %403 = vrot.lane.b32.xlu1 %v389_v50, %s1321_s4 }
 0x366   :  { %v1811_v33 = vpop.permute.xlu1 %403 }
 0x367   :  { %1230 = vmatmul.msk.f32.vlgmr.msrb.gmra.mxu0 %vm227_vm11, %v1811_v33  ;;  %1231 = vmatmul.msk.f32.vlgmr.msrb.gmra.mxu1 %vm227_vm11, %v1811_v33 }
 0x368   :  { %767 = vmatpush.msrb.mxu0 %v1399_v17  ;;  %787 = vmatpush.msrb.mxu1 %v1426_v23 }
 0x36a   :  { %768 = vmatpush.msrb.mxu0 %v1404_v18  ;;  %788 = vmatpush.msrb.mxu1 %v1431_v24 }
 0x36c   :  { %769 = vmatpush.msrb.mxu0 %v1416_v21  ;;  %789 = vmatpush.msrb.mxu1 %v1444_v26 }
 0x36e   :  { %770 = vmatpush.msrb.mxu0 %v1436_v25  ;;  %790 = vmatpush.msrb.mxu1 %v1458_v28 }
 0x370   :  { %771 = vmatpush.msrb.mxu0 %v1450_v27  ;;  %791 = vmatpush.msrb.mxu1 %v1472_v30 }
 0x372   :  { %772 = vmatpush.msrb.mxu0 %v1464_v29  ;;  %792 = vmatpush.msrb.mxu1 %v1499_v35 }
 0x374   :  { %773 = vmatpush.msrb.mxu0 %v1478_v31  ;;  %793 = vmatpush.msrb.mxu1 %v1509_v37 }
 0x376   :  { %774 = vmatpush.msrb.mxu0 %v1493_v34  ;;  %794 = vmatpush.msrb.mxu1 %v1516_v39 }
 0x3e4   :  { %v424_v61 = vpop.f32.mrf.mxu0  ;;  %v444_v43 = vpop.f32.mrf.mxu1 }
 0x3e5   :  { %v425_v20 = vadd.f32 %v424_v61, %v1602_v3  ;;  %v445_v52 = vadd.f32 %v444_v43, %v1649_v48  ;;  %v401_v61 = vsel %vm1658_vm9, %v1647_v47, %v1670_v32 }
 0x3e7   :  { %v447_v46 = vadd.f32 %v425_v20, %v400_v41 }
 0x3e9   :  { %v1232_v38 = vmul.f32 -1.442695, %v447_v46 }
 0x3eb   :  { %1272 = vpow2.f32 %v1232_v38 }
 0x3f1   :  { %v1273_v7 = vpop.eup %1272 }
 0x3f2   :  { %v451_v53 = vadd.f32 1.0, %v1273_v7 }
 0x3f4   :  { %1274 = vrcp.f32 %v451_v53  ;;  %v463_v63 = vand.u32 2147483648, %v451_v53  ;;  %v461_v8 = vand.u32 2147483647, %v451_v53  ;;  %vm457_vm1 = vweird.f32 %v451_v53 }
 0x3f6   :  { %v464_v15 = vor.u32 1.1754944e-38, %v463_v63  ;;  %vm462_vm6 = vcmp.eq.f32.partialorder %v461_v8, 8.507059e+37 }
 0x3fa   :  { %v1275_v19 = vpop.eup %1274 }
 0x3fb   :  { %v453_v40 = vmul.f32 %v1275_v19, %v451_v53  ;;  %vm458_vm0 = vweird.f32 %v1275_v19 }
 0x3fc   :  { %vm459_vm5 = vmor %vm457_vm1, %vm458_vm0 }
 0x3fd   :  { %v454_v54 = vsub.f32 1.0, %v453_v40 }
 0x3ff   :  { %v455_v13 = vmul.f32 %v1275_v19, %v454_v54 }
 0x401   :  { %v456_v1 = vadd.f32 %v1275_v19, %v455_v13 }
 0x403   :  { %v460_v14 = vsel %vm459_vm5, %v1275_v19, %v456_v1 }
 0x404   :  { %v465_v22 = vsel %vm462_vm6, %v464_v15, %v460_v14 }
 0x405   :  { %v467_v16 = vmul.f32 %v465_v22, %v445_v52  ;;  %v470_v46 = vsub.f32 1.0, %v465_v22  ;;  %v476_v7 = vmul.f32 %v465_v22, %v389_v50  ;;  %v488_v50 = vsel %vm1604_vm3, %v1675_v45, %v1682_v51 }
 0x407   :  { %v468_v20 = vadd.f32 %v467_v16, %v401_v61 }
 0x409   :  { %1276 = vtanh.f32 %v468_v20 }
 0x40f   :  { %v1277_v41 = vpop.eup %1276 }
 0x410   :  { %472 = vrot.lane.b32.xlu2 %v1277_v41, %s1321_s4 }
 0x46a   :  { %v473_v38 = vpop.permute.xlu2 %472 }
 0x46b   :  { %v475_v53 = vmul.f32 %v473_v38, %v470_v46  ;;  %v489_v38 = vsel %vm1658_vm9, %v1677_v49, %v1684_v55 }
 0x46d   :  { %v477_v40 = vadd.f32 %v476_v7, %v475_v53 }
 0x46f   :  { %491 = vrot.lane.b32.xlu2 %v477_v40, %s1321_s4 }
 0x4c9   :  { %v1845_v19 = vpop.permute.xlu2 %491 }
 0x4ca   :  { %1233 = vmatmul.msk.f32.vlgmr.msra.gmra.mxu2 %vm227_vm11, %v1845_v19  ;;  %1234 = vmatmul.msk.f32.vlgmr.msra.gmra.mxu3 %vm227_vm11, %v1845_v19 }
 0x4cb   :  { %855 = vmatpush.msra.mxu2 %v1399_v17  ;;  %875 = vmatpush.msra.mxu3 %v1426_v23 }
 0x4cd   :  { %856 = vmatpush.msra.mxu2 %v1404_v18  ;;  %876 = vmatpush.msra.mxu3 %v1431_v24 }
 0x4cf   :  { %857 = vmatpush.msra.mxu2 %v1416_v21  ;;  %877 = vmatpush.msra.mxu3 %v1444_v26 }
 0x4d1   :  { %858 = vmatpush.msra.mxu2 %v1436_v25  ;;  %878 = vmatpush.msra.mxu3 %v1458_v28 }
 0x4d3   :  { %859 = vmatpush.msra.mxu2 %v1450_v27  ;;  %879 = vmatpush.msra.mxu3 %v1472_v30 }
 0x4d5   :  { %860 = vmatpush.msra.mxu2 %v1464_v29  ;;  %880 = vmatpush.msra.mxu3 %v1499_v35 }
 0x4d7   :  { %861 = vmatpush.msra.mxu2 %v1478_v31  ;;  %881 = vmatpush.msra.mxu3 %v1509_v37 }
 0x4d9   :  { %862 = vmatpush.msra.mxu2 %v1493_v34  ;;  %882 = vmatpush.msra.mxu3 %v1516_v39 }
 0x54d   :  { %v512_v47 = vpop.f32.mrf.mxu2  ;;  %v532_v16 = vpop.f32.mrf.mxu3 }
 0x54e   :  { %v513_v32 = vadd.f32 %v512_v47, %v1602_v3  ;;  %v533_v45 = vadd.f32 %v532_v16, %v1649_v48 }
 0x550   :  { %v535_v54 = vadd.f32 %v513_v32, %v488_v50 }
 0x552   :  { %v1235_v63 = vmul.f32 -1.442695, %v535_v54 }
 0x554   :  { %1278 = vpow2.f32 %v1235_v63 }
 0x55a   :  { %v1279_v13 = vpop.eup %1278 }
 0x55b   :  { %v539_v8 = vadd.f32 1.0, %v1279_v13 }
 0x55d   :  { %1280 = vrcp.f32 %v539_v8  ;;  %v551_v52 = vand.u32 2147483648, %v539_v8  ;;  %v549_v22 = vand.u32 2147483647, %v539_v8  ;;  %vm545_vm8 = vweird.f32 %v539_v8 }
 0x55f   :  { %v552_v20 = vor.u32 1.1754944e-38, %v551_v52  ;;  %vm550_vm12 = vcmp.eq.f32.partialorder %v549_v22, 8.507059e+37 }
 0x563   :  { %v1281_v43 = vpop.eup %1280 }
 0x564   :  { %v541_v1 = vmul.f32 %v1281_v43, %v539_v8  ;;  %vm546_vm7 = vweird.f32 %v1281_v43 }
 0x565   :  { %vm547_vm10 = vmor %vm545_vm8, %vm546_vm7 }
 0x566   :  { %v542_v15 = vsub.f32 1.0, %v541_v1 }
 0x568   :  { %v543_v14 = vmul.f32 %v1281_v43, %v542_v15 }
 0x56a   :  { %v544_v61 = vadd.f32 %v1281_v43, %v543_v14 }
 0x56c   :  { %v548_v51 = vsel %vm547_vm10, %v1281_v43, %v544_v61 }
 0x56d   :  { %v553_v41 = vsel %vm550_vm12, %v552_v20, %v548_v51 }
 0x56e   :  { %v555_v46 = vmul.f32 %v553_v41, %v533_v45  ;;  %v558_v47 = vsub.f32 1.0, %v553_v41  ;;  %v564_v50 = vmul.f32 %v553_v41, %v477_v40  ;;  %v576_v40 = vsel %vm1604_vm3, %v1690_v56, %v1692_v57 }
 0x570   :  { %v556_v7 = vadd.f32 %v555_v46, %v489_v38 }
 0x572   :  { %1282 = vtanh.f32 %v556_v7  ;;  %v577_v7 = vsel %vm1658_vm9, %v1688_v60, %v1694_v58 }
 0x578   :  { %v1283_v53 = vpop.eup %1282 }
 0x579   :  { %560 = vrot.lane.b32.xlu0 %v1283_v53, %s1321_s4 }
 0x5eb   :  { %v561_v32 = vpop.permute.xlu0 %560 }
 0x5ec   :  { %v563_v54 = vmul.f32 %v561_v32, %v558_v47 }
 0x5ee   :  { %v565_v63 = vadd.f32 %v564_v50, %v563_v54 }
 0x5f0   :  { %579 = vrot.lane.b32.xlu1 %v565_v63, %s1321_s4 }
 0x662   :  { %v1879_v13 = vpop.permute.xlu1 %579 }
 0x663   :  { %1236 = vmatmul.msk.f32.vlgmr.msra.gmra.mxu0 %vm227_vm11, %v1879_v13  ;;  %1237 = vmatmul.msk.f32.vlgmr.msra.gmra.mxu1 %vm227_vm11, %v1879_v13 }
 0x664   :  { %943 = vmatpush.msra.mxu0 %v1399_v17  ;;  %963 = vmatpush.msra.mxu1 %v1426_v23 }
 0x666   :  { %944 = vmatpush.msra.mxu0 %v1404_v18  ;;  %964 = vmatpush.msra.mxu1 %v1431_v24 }
 0x668   :  { %945 = vmatpush.msra.mxu0 %v1416_v21  ;;  %965 = vmatpush.msra.mxu1 %v1444_v26 }
 0x66a   :  { %946 = vmatpush.msra.mxu0 %v1436_v25  ;;  %966 = vmatpush.msra.mxu1 %v1458_v28 }
 0x66c   :  { %947 = vmatpush.msra.mxu0 %v1450_v27  ;;  %967 = vmatpush.msra.mxu1 %v1472_v30 }
 0x66e   :  { %948 = vmatpush.msra.mxu0 %v1464_v29  ;;  %968 = vmatpush.msra.mxu1 %v1499_v35 }
 0x670   :  { %949 = vmatpush.msra.mxu0 %v1478_v31  ;;  %969 = vmatpush.msra.mxu1 %v1509_v37 }
 0x672   :  { %950 = vmatpush.msra.mxu0 %v1493_v34  ;;  %970 = vmatpush.msra.mxu1 %v1516_v39 }
 0x6e0   :  { %v600_v49 = vpop.f32.mrf.mxu0  ;;  %v620_v45 = vpop.f32.mrf.mxu1 }
 0x6e1   :  { %v601_v55 = vadd.f32 %v600_v49, %v1602_v3  ;;  %v621_v56 = vadd.f32 %v620_v45, %v1649_v48 }
 0x6e3   :  { %v623_v8 = vadd.f32 %v601_v55, %v576_v40 }
 0x6e5   :  { %v1238_v43 = vmul.f32 -1.442695, %v623_v8 }
 0x6e7   :  { %1284 = vpow2.f32 %v1238_v43 }
 0x6ed   :  { %v1285_v1 = vpop.eup %1284 }
 0x6ee   :  { %v627_v15 = vadd.f32 1.0, %v1285_v1 }
 0x6f0   :  { %1286 = vrcp.f32 %v627_v15  ;;  %v639_v16 = vand.u32 2147483648, %v627_v15  ;;  %v637_v20 = vand.u32 2147483647, %v627_v15  ;;  %vm633_vm14 = vweird.f32 %v627_v15 }
 0x6f2   :  { %v640_v41 = vor.u32 1.1754944e-38, %v639_v16  ;;  %vm638_vm0 = vcmp.eq.f32.partialorder %v637_v20, 8.507059e+37 }
 0x6f6   :  { %v1287_v52 = vpop.eup %1286 }
 0x6f7   :  { %v629_v14 = vmul.f32 %v1287_v52, %v627_v15  ;;  %vm634_vm13 = vweird.f32 %v1287_v52 }
 0x6f8   :  { %vm635_vm15 = vmor %vm633_vm14, %vm634_vm13 }
 0x6f9   :  { %v630_v22 = vsub.f32 1.0, %v629_v14 }
 0x6fb   :  { %v631_v61 = vmul.f32 %v1287_v52, %v630_v22 }
 0x6fd   :  { %v632_v51 = vadd.f32 %v1287_v52, %v631_v61  ;;  %v2129_v61 = vsel %vm1604_vm3, %v1712_v11, %v1716_v36 }
 0x6ff   :  { %v636_v57 = vsel %vm635_vm15, %v1287_v52, %v632_v51 }
 0x700   :  { %v641_v46 = vsel %vm638_vm0, %v640_v41, %v636_v57 }
 0x701   :  { %v643_v38 = vmul.f32 %v641_v46, %v621_v56  ;;  %v646_v32 = vsub.f32 1.0, %v641_v46  ;;  %v652_v54 = vmul.f32 %v641_v46, %v565_v63  ;;  %v2128_v63 = vsel %vm1658_vm9, %v1696_v0, %v1702_v6 }
 0x703   :  { %v644_v53 = vadd.f32 %v643_v38, %v577_v7 }
 0x705   :  { %1288 = vtanh.f32 %v644_v53 }
 0x70b   :  { %v1289_v47 = vpop.eup %1288 }
 0x70c   :  { %648 = vrot.lane.b32.xlu2 %v1289_v47, %s1321_s4 }
 0x766   :  { %v649_v50 = vpop.permute.xlu2 %648 }
 0x767   :  { %v651_v49 = vmul.f32 %v649_v50, %v646_v32 }
 0x769   :  { %v653_v55 = vadd.f32 %v652_v54, %v651_v49 }
 0x76b   :  { %667 = vrot.lane.b32.xlu0 %v653_v55, %s1321_s4 }
 0x7dd   :  { %v1913_v40 = vpop.permute.xlu0 %667 }
 0x7de   :  { %1239 = vmatmul.msk.f32.vlgmr.msrb.gmra.mxu2 %vm227_vm11, %v1913_v40  ;;  %1240 = vmatmul.msk.f32.vlgmr.msrb.gmra.mxu3 %vm227_vm11, %v1913_v40 }
 0x7df   :  { %1031 = vmatpush.msrb.mxu2 %v1399_v17  ;;  %1051 = vmatpush.msrb.mxu3 %v1426_v23 }
 0x7e1   :  { %1032 = vmatpush.msrb.mxu2 %v1404_v18  ;;  %1052 = vmatpush.msrb.mxu3 %v1431_v24 }
 0x7e3   :  { %1033 = vmatpush.msrb.mxu2 %v1416_v21  ;;  %1053 = vmatpush.msrb.mxu3 %v1444_v26  ;;  %v2127_v21 = vsel %vm1604_vm3, %v1698_v62, %v1700_v2 }
 0x7e5   :  { %1034 = vmatpush.msrb.mxu2 %v1436_v25  ;;  %1054 = vmatpush.msrb.mxu3 %v1458_v28 }
 0x7e7   :  { %1035 = vmatpush.msrb.mxu2 %v1450_v27  ;;  %1055 = vmatpush.msrb.mxu3 %v1472_v30 }
 0x7e9   :  { %1036 = vmatpush.msrb.mxu2 %v1464_v29  ;;  %1056 = vmatpush.msrb.mxu3 %v1499_v35 }
 0x7eb   :  { %1037 = vmatpush.msrb.mxu2 %v1478_v31  ;;  %1057 = vmatpush.msrb.mxu3 %v1509_v37 }
 0x7ed   :  { %1038 = vmatpush.msrb.mxu2 %v1493_v34  ;;  %1058 = vmatpush.msrb.mxu3 %v1516_v39 }
 0x861   :  { %v688_v17 = vpop.f32.mrf.mxu2  ;;  %v708_v35 = vpop.f32.mrf.mxu3 }
 0x862   :  { %v689_v18 = vadd.f32 %v688_v17, %v1602_v3  ;;  %v709_v60 = vadd.f32 %v708_v35, %v1649_v48 }
 0x864   :  { %v711_v23 = vadd.f32 %v689_v18, %v2127_v21 }
 0x866   :  { %v1241_v24 = vmul.f32 -1.442695, %v711_v23 }
 0x868   :  { %1290 = vpow2.f32 %v1241_v24 }
 0x86e   :  { %v1291_v25 = vpop.eup %1290 }
 0x86f   :  { %v715_v26 = vadd.f32 1.0, %v1291_v25 }
 0x871   :  { %1292 = vrcp.f32 %v715_v26  ;;  %v727_v30 = vand.u32 2147483648, %v715_v26  ;;  %v725_v34 = vand.u32 2147483647, %v715_v26  ;;  %vm721_vm5 = vweird.f32 %v715_v26 }
 0x873   :  { %v728_v39 = vor.u32 1.1754944e-38, %v727_v30  ;;  %vm726_vm7 = vcmp.eq.f32.partialorder %v725_v34, 8.507059e+37 }
 0x877   :  { %v1293_v27 = vpop.eup %1292 }
 0x878   :  { %v717_v28 = vmul.f32 %v1293_v27, %v715_v26  ;;  %vm722_vm1 = vweird.f32 %v1293_v27 }
 0x879   :  { %vm723_vm6 = vmor %vm721_vm5, %vm722_vm1 }
 0x87a   :  { %v718_v29 = vsub.f32 1.0, %v717_v28  ;;  %v2131_v28 = vsel %vm1604_vm3, %v1730_v44, %v1736_v9 }
 0x87c   :  { %v719_v31 = vmul.f32 %v1293_v27, %v718_v29 }
 0x87e   :  { %v720_v37 = vadd.f32 %v1293_v27, %v719_v31 }
 0x880   :  { %v724_v58 = vsel %vm723_vm6, %v1293_v27, %v720_v37 }
 0x881   :  { %v729_v62 = vsel %vm726_vm7, %v728_v39, %v724_v58 }
 0x882   :  { %v731_v2 = vmul.f32 %v729_v62, %v709_v60  ;;  %v734_v1 = vsub.f32 1.0, %v729_v62  ;;  %v740_v52 = vmul.f32 %v729_v62, %v653_v55  ;;  %v2130_v55 = vsel %vm1658_vm9, %v1714_v12, %v1718_v42 }
 0x884   :  { %v732_v8 = vadd.f32 %v731_v2, %v2128_v63 }
 0x886   :  { %1294 = vtanh.f32 %v732_v8 }
 0x88c   :  { %v1295_v43 = vpop.eup %1294 }
 0x88d   :  { %736 = vrot.lane.b32.xlu1 %v1295_v43, %s1321_s4 }
 0x8ff   :  { %v737_v15 = vpop.permute.xlu1 %736 }
 0x900   :  { %v739_v14 = vmul.f32 %v737_v15, %v734_v1  ;;  %v2132_v15 = vsel %vm1658_vm9, %v1732_v10, %v1738_v59 }
 0x902   :  { %v741_v22 = vadd.f32 %v740_v52, %v739_v14 }
 0x904   :  { %755 = vrot.lane.b32.xlu2 %v741_v22, %s1321_s4 }
 0x95e   :  { %v1949_v16 = vpop.permute.xlu2 %755 }
 0x95f   :  { %1242 = vmatmul.msk.f32.vlgmr.msrb.gmra.mxu0 %vm227_vm11, %v1949_v16  ;;  %1243 = vmatmul.msk.f32.vlgmr.msrb.gmra.mxu1 %vm227_vm11, %v1949_v16 }
 0x9dc   :  { %v776_v0 = vpop.f32.mrf.mxu0  ;;  %v796_v47 = vpop.f32.mrf.mxu1 }
 0x9dd   :  { %v777_v6 = vadd.f32 %v776_v0, %v1602_v3  ;;  %v797_v11 = vadd.f32 %v796_v47, %v1649_v48 }
 0x9df   :  { %v799_v20 = vadd.f32 %v777_v6, %v2129_v61 }
 0x9e1   :  { %v1244_v45 = vmul.f32 -1.442695, %v799_v20 }
 0x9e3   :  { %1296 = vpow2.f32 %v1244_v45 }
 0x9e9   :  { %v1297_v51 = vpop.eup %1296 }
 0x9ea   :  { %v803_v41 = vadd.f32 1.0, %v1297_v51  ;;  %v2133_v51 = vld [vmem:[#allocation3_spill] sm:$0xff] }
 0x9ec   :  { %1298 = vrcp.f32 %v803_v41  ;;  %v815_v38 = vand.u32 2147483648, %v803_v41  ;;  %v813_v53 = vand.u32 2147483647, %v803_v41  ;;  %vm809_vm10 = vweird.f32 %v803_v41 }
 0x9ee   :  { %v816_v50 = vor.u32 1.1754944e-38, %v815_v38  ;;  %vm814_vm13 = vcmp.eq.f32.partialorder %v813_v53, 8.507059e+37 }
 0x9f2   :  { %v1299_v56 = vpop.eup %1298 }
 0x9f3   :  { %v805_v57 = vmul.f32 %v1299_v56, %v803_v41  ;;  %vm810_vm8 = vweird.f32 %v1299_v56  ;;  %v2134_v41 = vld [vmem:[#allocation5_spill] sm:$0xff] }
 0x9f4   :  { %vm811_vm12 = vmor %vm809_vm10, %vm810_vm8 }
 0x9f5   :  { %v806_v46 = vsub.f32 1.0, %v805_v57 }
 0x9f7   :  { %v807_v7 = vmul.f32 %v1299_v56, %v806_v46 }
 0x9f9   :  { %v808_v32 = vadd.f32 %v1299_v56, %v807_v7 }
 0x9fb   :  { %v812_v36 = vsel %vm811_vm12, %v1299_v56, %v808_v32  ;;  %v2135_v56 = vsel %vm1604_vm3, %v2133_v51, %v2134_v41 }
 0x9fc   :  { %v817_v54 = vsel %vm814_vm13, %v816_v50, %v812_v36 }
 0x9fd   :  { %v819_v49 = vmul.f32 %v817_v54, %v797_v11  ;;  %v822_v21 = vsub.f32 1.0, %v817_v54  ;;  %v828_v24 = vmul.f32 %v817_v54, %v741_v22 }
 0x9ff   :  { %v820_v17 = vadd.f32 %v819_v49, %v2130_v55 }
 0xa01   :  { %1300 = vtanh.f32 %v820_v17 }
 0xa07   :  { %v1301_v18 = vpop.eup %1300 }
 0xa08   :  { %824 = vrot.lane.b32.xlu0 %v1301_v18, %s1321_s4 }
 0xa7a   :  { %v825_v23 = vpop.permute.xlu0 %824 }
 0xa7b   :  { %v827_v25 = vmul.f32 %v825_v23, %v822_v21 }
 0xa7d   :  { %v829_v26 = vadd.f32 %v828_v24, %v827_v25  ;;  %v2136_v24 = vld [vmem:[#allocation4_spill] sm:$0xff]  ;;  %v2137_v25 = vld [vmem:[#allocation6_spill] sm:$0xff] }
 0xa7f   :  { %843 = vrot.lane.b32.xlu1 %v829_v26, %s1321_s4 }
 0xaf1   :  { %v1969_v27 = vpop.permute.xlu1 %843 }
 0xaf2   :  { %1245 = vmatmul.msk.f32.vlgmr.msra.gmra.mxu2 %vm227_vm11, %v1969_v27  ;;  %1246 = vmatmul.msk.f32.vlgmr.msra.gmra.mxu3 %vm227_vm11, %v1969_v27 }
 0xb75   :  { %v864_v12 = vpop.f32.mrf.mxu2  ;;  %v884_v2 = vpop.f32.mrf.mxu3 }
 0xb76   :  { %v865_v42 = vadd.f32 %v864_v12, %v1602_v3  ;;  %v885_v44 = vadd.f32 %v884_v2, %v1649_v48 }
 0xb78   :  { %v887_v29 = vadd.f32 %v865_v42, %v2131_v28 }
 0xb7a   :  { %v1247_v30 = vmul.f32 -1.442695, %v887_v29 }
 0xb7c   :  { %1302 = vpow2.f32 %v1247_v30 }
 0xb82   :  { %v1303_v31 = vpop.eup %1302 }
 0xb83   :  { %v891_v34 = vadd.f32 1.0, %v1303_v31 }
 0xb85   :  { %1304 = vrcp.f32 %v891_v34  ;;  %v903_v60 = vand.u32 2147483648, %v891_v34  ;;  %v901_v62 = vand.u32 2147483647, %v891_v34  ;;  %vm897_vm15 = vweird.f32 %v891_v34 }
 0xb87   :  { %v904_v8 = vor.u32 1.1754944e-38, %v903_v60  ;;  %vm902_vm1 = vcmp.eq.f32.partialorder %v901_v62, 8.507059e+37 }
 0xb8b   :  { %v1305_v35 = vpop.eup %1304 }
 0xb8c   :  { %v893_v37 = vmul.f32 %v1305_v35, %v891_v34  ;;  %vm898_vm14 = vweird.f32 %v1305_v35 }
 0xb8d   :  { %vm899_vm0 = vmor %vm897_vm15, %vm898_vm14  ;;  %vm1173_vm15 = vcmask 1040384  }
 0xb8e   :  { %v894_v39 = vsub.f32 1.0, %v893_v37  ;;  %v1012_v37 = vld.sshfl [vmem:[#allocation1] sm:$0xff pattern:$0x73625140] }
 0xb90   :  { %v895_v58 = vmul.f32 %v1305_v35, %v894_v39 }
 0xb92   :  { %v896_v63 = vadd.f32 %v1305_v35, %v895_v58  ;;  %v2139_v58 = vld [vmem:[#allocation7_spill] sm:$0xff] }
 0xb93   :  { %v1016_v62 = vsel %vm1604_vm3, %v2139_v58, %v1012_v37 }
 0xb94   :  { %v900_v9 = vsel %vm899_vm0, %v1305_v35, %v896_v63  ;;  %vm1178_vm0 = vcmask 1042432  }
 0xb95   :  { %v905_v43 = vsel %vm902_vm1, %v904_v8, %v900_v9  ;;  %vm1181_vm1 = vcmask 1043456  }
 0xb96   :  { %v907_v1 = vmul.f32 %v905_v43, %v885_v44  ;;  %v910_v22 = vsub.f32 1.0, %v905_v43  ;;  %v916_v6 = vmul.f32 %v905_v43, %v829_v26  ;;  %v2138_v26 = vsel %vm1658_vm9, %v2136_v24, %v2137_v25 }
 0xb98   :  { %v908_v52 = vadd.f32 %v907_v1, %v2132_v15 }
 0xb9a   :  { %1306 = vtanh.f32 %v908_v52 }
 0xba0   :  { %v1307_v14 = vpop.eup %1306 }
 0xba1   :  { %912 = vrot.lane.b32.xlu2 %v1307_v14, %s1321_s4 }
 0xbfb   :  { %v913_v0 = vpop.permute.xlu2 %912 }
 0xbfc   :  { %v915_v61 = vmul.f32 %v913_v0, %v910_v22 }
 0xbfe   :  { %v917_v20 = vadd.f32 %v916_v6, %v915_v61 }
 0xc00   :  { %931 = vrot.lane.b32.xlu0 %v917_v20, %s1321_s4 }
 0xc72   :  { %v1989_v45 = vpop.permute.xlu0 %931 }
 0xc73   :  { %1248 = vmatmul.msk.f32.vlgmr.msra.gmra.mxu0 %vm227_vm11, %v1989_v45  ;;  %1249 = vmatmul.msk.f32.vlgmr.msra.gmra.mxu1 %vm227_vm11, %v1989_v45 }
 0xcf0   :  { %v952_v10 = vpop.f32.mrf.mxu0  ;;  %v972_v54 = vpop.f32.mrf.mxu1 }
 0xcf1   :  { %v953_v59 = vadd.f32 %v952_v10, %v1602_v3  ;;  %v973_v17 = vadd.f32 %v972_v54, %v1649_v48 }
 0xcf3   :  { %v975_v57 = vadd.f32 %v953_v59, %v2135_v56  ;;  %v2140_v59 = vld [vmem:[#allocation8_spill] sm:$0xff] }
 0xcf4   :  { %v1017_v51 = vsel %vm1658_vm9, %v2140_v59, %v1013_v5  ;;  %vm1098_vm9 = vcmask 517120  }
 0xcf5   :  { %v1250_v46 = vmul.f32 -1.442695, %v975_v57 }
 0xcf7   :  { %1308 = vpow2.f32 %v1250_v46 }
 0xcfd   :  { %v1309_v38 = vpop.eup %1308 }
 0xcfe   :  { %v979_v7 = vadd.f32 1.0, %v1309_v38 }
 0xd00   :  { %1310 = vrcp.f32 %v979_v7  ;;  %v991_v50 = vand.u32 2147483648, %v979_v7  ;;  %v989_v36 = vand.u32 2147483647, %v979_v7  ;;  %vm985_vm6 = vweird.f32 %v979_v7 }
 0xd02   :  { %v992_v55 = vor.u32 1.1754944e-38, %v991_v50  ;;  %vm990_vm8 = vcmp.eq.f32.partialorder %v989_v36, 8.507059e+37 }
 0xd06   :  { %v1311_v53 = vpop.eup %1310 }
 0xd07   :  { %v981_v47 = vmul.f32 %v1311_v53, %v979_v7  ;;  %vm986_vm5 = vweird.f32 %v1311_v53 }
 0xd08   :  { %vm987_vm7 = vmor %vm985_vm6, %vm986_vm5  ;;  %vm1184_vm5 = vcmask 1044480   ;;  %vm1189_vm6 = vcmask 1046528  }
 0xd09   :  { %v982_v32 = vsub.f32 1.0, %v981_v47 }
 0xd0b   :  { %v983_v11 = vmul.f32 %v1311_v53, %v982_v32 }
 0xd0d   :  { %v984_v49 = vadd.f32 %v1311_v53, %v983_v11 }
 0xd0f   :  { %v988_v18 = vsel %vm987_vm7, %v1311_v53, %v984_v49 }
 0xd10   :  { %v993_v21 = vsel %vm990_vm8, %v992_v55, %v988_v18 }
 0xd11   :  { %v995_v23 = vmul.f32 %v993_v21, %v973_v17  ;;  %v998_v28 = vsub.f32 1.0, %v993_v21  ;;  %v1004_v30 = vmul.f32 %v993_v21, %v917_v20 }
 0xd13   :  { %v996_v12 = vadd.f32 %v995_v23, %v2138_v26 }
 0xd15   :  { %1312 = vtanh.f32 %v996_v12 }
 0xd1b   :  { %v1313_v42 = vpop.eup %1312 }
 0xd1c   :  { %1000 = vrot.lane.b32.xlu1 %v1313_v42, %s1321_s4 }
 0xd8e   :  { %v1001_v29 = vpop.permute.xlu1 %1000 }
 0xd8f   :  { %v1003_v31 = vmul.f32 %v1001_v29, %v998_v28  ;;  %v2142_v29 = vld [vmem:[#allocation9_spill] sm:$0xff] }
 0xd91   :  { %v1005_v34 = vadd.f32 %v1004_v30, %v1003_v31 }
 0xd93   :  { %1019 = vrot.lane.b32.xlu2 %v1005_v34, %s1321_s4 }
 0xded   :  { %v2009_v35 = vpop.permute.xlu2 %1019 }
 0xdee   :  { %1251 = vmatmul.msk.f32.vlgmr.msrb.gmra.mxu2 %vm227_vm11, %v2009_v35  ;;  %1252 = vmatmul.msk.f32.vlgmr.msrb.gmra.mxu3 %vm227_vm11, %v2009_v35 }
 0xe71   :  { %v1040_v39 = vpop.f32.mrf.mxu2  ;;  %v1060_v22 = vpop.f32.mrf.mxu3 }
 0xe72   :  { %v1041_v60 = vadd.f32 %v1040_v39, %v1602_v3  ;;  %v1061_v6 = vadd.f32 %v1060_v22, %v1649_v48  ;;  %v2141_v48 = vld [vmem:[#allocation2_spill] sm:$0xff] }
 0xe73   :  { %vm192_vm14 = vcmp.ge.s32.totalorder %v2141_v48, 32 }
 0xe74   :  { %v1063_v2 = vadd.f32 %v1041_v60, %v1016_v62  ;;  %v1113_v4 = vsel %vm192_vm14, %v1949_v16, %v1913_v40  ;;  %v1114_v47 = vsel %vm192_vm14, %v1913_v40, %v1949_v16  ;;  %v1110_v32 = vsel %vm192_vm14, %v1969_v27, %v1879_v13 }
 0xe75   :  { %v1129_v50 = vrot.slane %v1113_v4, 1  ;;  %v1104_v11 = vsel %vm192_vm14, %v2009_v35, %v1811_v33  ;;  %v1131_v36 = vrot.slane %v1114_v47, 1  ;;  %v1115_v54 = vsel %vm192_vm14, %v1879_v13, %v1969_v27 }
 0xe76   :  { %v1253_v63 = vmul.f32 -1.442695, %v1063_v2  ;;  %v1127_v49 = vrot.slane %v1110_v32, 1  ;;  %v1107_v40 = vsel %vm192_vm14, %v1989_v45, %v1845_v19  ;;  %v1116_v16 = vsel %vm192_vm14, %v1845_v19, %v1989_v45 }
 0xe77   :  { %v1123_v55 = vrot.slane %v1104_v11, 1  ;;  %v1153_v17 = vperm.slane %v1113_v4, 0  ;;  %v1154_v18 = vperm.slane %v1129_v50, 0  ;;  %v1157_v21 = vperm.slane %v1114_v47, 0 }
 0xe78   :  { %1314 = vpow2.f32 %v1253_v63  ;;  %v1158_v23 = vperm.slane %v1131_v36, 0  ;;  %v1133_v24 = vrot.slane %v1115_v54, 1  ;;  %v1149_v25 = vperm.slane %v1110_v32, 0 }
 0xe79   :  { %v1150_v13 = vperm.slane %v1127_v49, 0  ;;  %v1125_v27 = vrot.slane %v1107_v40, 1  ;;  %v1135_v26 = vrot.slane %v1116_v16, 1  ;;  %v1145_v12 = vperm.slane %v1107_v40, 0 }
 0xe7a   :  { %v1117_v42 = vsel %vm192_vm14, %v1811_v33, %v2009_v35  ;;  %v1141_v28 = vperm.slane %v1104_v11, 0  ;;  %v1142_v19 = vperm.slane %v1123_v55, 0  ;;  %v1162_v22 = vperm.slane %v1133_v24, 0 }
 0xe7b   :  { %v1146_v39 = vperm.slane %v1125_v27, 0  ;;  %v1137_v60 = vrot.slane %v1117_v42, 1  ;;  %v1166_v5 = vperm.slane %v1135_v26, 0 }
 0xe7e   :  { %v1315_v8 = vpop.eup %1314 }
 0xe7f   :  { %v1067_v44 = vadd.f32 1.0, %v1315_v8 }
 0xe81   :  { %1316 = vrcp.f32 %v1067_v44  ;;  %v1079_v15 = vand.u32 2147483648, %v1067_v44  ;;  %v1077_v14 = vand.u32 2147483647, %v1067_v44  ;;  %vm1073_vm12 = vweird.f32 %v1067_v44 }
 0xe83   :  { %v1080_v3 = vor.u32 1.1754944e-38, %v1079_v15  ;;  %vm1078_vm3 = vcmp.eq.f32.partialorder %v1077_v14, 8.507059e+37 }
 0xe87   :  { %v1317_v9 = vpop.eup %1316 }
 0xe88   :  { %v1069_v43 = vmul.f32 %v1317_v9, %v1067_v44  ;;  %vm1074_vm10 = vweird.f32 %v1317_v9  ;;  %v1161_v44 = vperm.slane %v1115_v54, 0 }
 0xe89   :  { %vm1075_vm13 = vmor %vm1073_vm12, %vm1074_vm10 }
 0xe8a   :  { %v1070_v1 = vsub.f32 1.0, %v1069_v43 }
 0xe8c   :  { %v1071_v52 = vmul.f32 %v1317_v9, %v1070_v1  ;;  %v1165_v1 = vperm.slane %v1116_v16, 0 }
 0xe8e   :  { %v1072_v0 = vadd.f32 %v1317_v9, %v1071_v52 }
 0xe90   :  { %v1076_v61 = vsel %vm1075_vm13, %v1317_v9, %v1072_v0 }
 0xe91   :  { %v1081_v20 = vsel %vm1078_vm3, %v1080_v3, %v1076_v61 }
 0xe92   :  { %v1083_v10 = vmul.f32 %v1081_v20, %v1061_v6  ;;  %v1086_v57 = vsub.f32 1.0, %v1081_v20  ;;  %v1092_v38 = vmul.f32 %v1081_v20, %v1005_v34 }
 0xe94   :  { %v1084_v41 = vadd.f32 %v1083_v10, %v1017_v51 }
 0xe96   :  { %1318 = vtanh.f32 %v1084_v41 }
 0xe9c   :  { %v1319_v56 = vpop.eup %1318 }
 0xe9d   :  { %1088 = vrot.lane.b32.xlu0 %v1319_v56, %s1321_s4 }
 0xf0f   :  { %v1089_v46 = vpop.permute.xlu0 %1088 }
 0xf10   :  { %v1091_v7 = vmul.f32 %v1089_v46, %v1086_v57 }
 0xf12   :  { %v1093_v53 = vadd.f32 %v1092_v38, %v1091_v7 }
 0xf14   :  { %1095 = vrot.lane.b32.xlu1 %v1093_v53, %s1321_s4 }
 0xf86   :  { %v1096_v45 = vpop.permute.xlu1 %1095 }
 0xf87   :  { %1099 = vst.msk [vmem:[%s2105_s6] sm:$0x3] %vm1098_vm9, %v1096_v45  ;;  %v1101_v30 = vsel %vm192_vm14, %v1096_v45, %v2142_v29  ;;  %v1118_v31 = vsel %vm192_vm14, %v2142_v29, %v1096_v45 }
 0xf88   :  { %v1120_v34 = vrot.slane %v1101_v30, 1  ;;  %v1140_v33 = vrot.slane %v1118_v31, 1  ;;  %v1169_v35 = vperm.slane %v1118_v31, 0  ;;  %v1174_v37 = vsel %vm1173_vm15, %v1101_v30, %v1141_v28 }
 0xf89   :  { %v1176_v58 = vsel %vm142_vm2, %v1174_v37, %v1145_v12 }
 0xf8a   :  { %v1170_v62 = vperm.slane %v1140_v33, 0  ;;  %v1175_v2 = vsel %vm1173_vm15, %v1120_v34, %v1142_v19  ;;  %v1179_v63 = vsel %vm1178_vm0, %v1176_v58, %v1149_v25  ;;  %v1192_v8 = vsel %vm1173_vm15, %v1117_v42, %v1169_v35 }
 0xf8b   :  { %v1177_v9 = vsel %vm142_vm2, %v1175_v2, %v1146_v39  ;;  %v1182_v43 = vsel %vm1181_vm1, %v1179_v63, %v1153_v17  ;;  %1195 = vst.msk [vmem:[%s2106_s5 + $0x8] sm:$0x3] %vm1098_vm9, %v1192_v8 }
 0xf8c   :  { %v1180_v15 = vsel %vm1178_vm0, %v1177_v9, %v1150_v13  ;;  %v1185_v52 = vsel %vm1184_vm5, %v1182_v43, %v1157_v21  ;;  %v1193_v14 = vsel %vm1173_vm15, %v1137_v60, %v1170_v62 }
 0xf8d   :  { %v1183_v0 = vsel %vm1181_vm1, %v1180_v15, %v1154_v18  ;;  %v1187_v3 = vsel %vm150_vm4, %v1185_v52, %v1161_v44  ;;  %1197 = vst.msk [vmem:[%s2106_s5 + $0x18] sm:$0x3] %vm1098_vm9, %v1193_v14 }
 0xf8e   :  { %v1186_v6 = vsel %vm1184_vm5, %v1183_v0, %v1158_v23  ;;  %v1190_v61 = vsel %vm1189_vm6, %v1187_v3, %v1165_v1 }
 0xf8f   :  { %v1188_v20 = vsel %vm150_vm4, %v1186_v6, %v1162_v22  ;;  %1194 = vst.msk [vmem:[%s2106_s5] sm:$0xff] %vm227_vm11, %v1190_v61 }
 0xf90   :  { %v1191_v10 = vsel %vm1189_vm6, %v1188_v20, %v1166_v5 }
 0xf91   :  { %1196 = vst.msk [vmem:[%s2106_s5 + $0x10] sm:$0xff] %vm227_vm11, %v1191_v10 }

</bundles_post_ra>
